<compile_context>
chip_gen: v6e
topology: v6e:2x2x1
jax: 0.10.0
libtpu: 0.0.40
codegen_flags: <defaults>
</compile_context>

<pallas_src>
import numpy as np
import jax
import jax.numpy as jnp
from jax import lax
from jax.experimental import pallas as pl
from jax.experimental.pallas import tpu as pltpu

# ----------------------------- configuration ------------------------------
MAP_SIZE = 16          # map_size
K_IN = 3               # k_in
K_OUT = 24             # k_out
N_FEATURES = 32        # n_features
PIXEL_HIDDEN = 128     # pixel_hidden_dim
PIXEL_N_RES = 4        # pixel_n_residuals
FEATURE_HIDDEN = 64    # feature_hidden_dim
FEATURE_N_RES = 4      # feature_n_residuals
BATCH = 2
EPS = 1e-5             # PyTorch LayerNorm default eps

# ---- flat channel-major layout constants used by the fused kernel ----------
H_IN = MAP_SIZE + 2                      # 18  padded input spatial size
P = MAP_SIZE * MAP_SIZE                  # 256 pixels after conv2
FLAT_B = H_IN * H_IN                     # 324 per-batch flat stride (row-major 18x18)
N_X = BATCH * FLAT_B                     # 648 flattened input columns
TAPS = ((0, 0), (0, 1), (1, 0), (1, 1))  # 2x2 stencil taps (di, dj)
OFFS = tuple(di * H_IN + dj for di, dj in TAPS)          # (0, 1, 18, 19)
# widths chosen so every shifted slice stays in-bounds:
#   per-batch valid conv2 rows span flat offsets 0 .. 15*19 = 285  -> SEL_ROWS = 286
#   conv2 columns kept:     (B-1)*324 + 286 = 610                  -> N2
#   conv1 columns needed:   610 + 19 = 629                         -> N1
#   input columns needed:   629 + 19 = 648 = N_X                   -> exact fit
SEL_ROWS = (MAP_SIZE - 1) * (H_IN + 1) + 1                    # 286
N2 = (BATCH - 1) * FLAT_B + SEL_ROWS                          # 610
N1 = N2 + OFFS[-1]                                            # 629
assert N1 + OFFS[-1] == N_X

# ---- packed f32 parameter-blob layout (rows x 256 lanes) -------------------
C_W1 = 0                               # conv1 weight lanes [0:12]
C_B1 = 4 * K_IN                        # conv1 bias column  lane 12
C_B2 = C_B1 + 1                        # conv2 bias column  lane 13
C_W2 = C_B2 + 1                        # conv2 weight lanes [14:110], tap t at 14+24t
R_CONV = 0                             # 24 rows
R_WPC = R_CONV + K_OUT                 # 24: projection (conv-channel part), 32 rows
R_POS = R_WPC + N_FEATURES             # 56: precomputed positional constant, 32 rows
R_PG = R_POS + N_FEATURES              # 88: pixel LN gamma, 4 rows
R_PB = R_PG + PIXEL_N_RES              # 92: pixel LN beta, 4 rows
R_PB1 = R_PB + PIXEL_N_RES             # 96: pixel MLP bias1 (128 lanes), 4 rows
R_PB2 = R_PB1 + PIXEL_N_RES            # 100: pixel MLP bias2, 4 rows
R_EYE = R_PB2 + PIXEL_N_RES            # 104: 32x32 identity (max-pool relayout), 32 rows
R_FW1 = R_EYE + N_FEATURES             # 136: fw1^T packed, 32 rows, layer l at lanes 64l..
R_FW2 = R_FW1 + N_FEATURES             # 168: fw2^T packed, 64 rows, layer l at lanes 32l..
R_FVEC = R_FW2 + FEATURE_HIDDEN        # 232: per-layer fg|fb|fb2 row + fb1 row, 8 rows
BLOB_ROWS = R_FVEC + 2 * FEATURE_N_RES  # 240
BLOB_COLS = 256


# ----------------------- fused OheNet forward kernel -----------------------
def ohe_fused_kernel(xcols_ref, sel_ref, pw1_ref, pw2_ref, blob_ref, out_ref):
    f32, bf16 = jnp.float32, jnp.bfloat16
    B, F, K = BATCH, N_FEATURES, K_OUT

    # ---- carve small parameters out of the packed f32 blob (static views) ----
    w1 = blob_ref[R_CONV:R_CONV + K, C_W1:C_W1 + 4 * K_IN]          # (24, 12)
    b1 = blob_ref[R_CONV:R_CONV + K, C_B1:C_B1 + 1]                 # (24, 1)
    b2 = blob_ref[R_CONV:R_CONV + K, C_B2:C_B2 + 1]                 # (24, 1)

    # ---- Convolution block: 2x Conv2d(2x2, VALID) + ReLU, channel-major ----
    # conv1: single K = 4*k_in GEMM over pre-shifted input columns.
    h1 = jnp.maximum(
        jnp.dot(w1, xcols_ref[...], preferred_element_type=f32) + b1, 0.0)   # (24, 629)
    # conv2: four accumulated K = k_out GEMMs on lane-shifted slices of the
    # live conv1 value (no sublane concat, no VMEM scratch round trip).
    z = None
    for t, o in enumerate(OFFS):
        w2_t = blob_ref[R_CONV:R_CONV + K, C_W2 + K * t:C_W2 + K * (t + 1)]  # (24, 24)
        part = jnp.dot(w2_t, h1[:, o:o + N2], preferred_element_type=f32)
        z = part if z is None else z + part
    h2 = jnp.maximum(z + b2, 0.0)                                   # (24, 610)

    # ---- per-batch compaction (bf16 0/1 selection GEMM) + projection ----
    wpc = blob_ref[R_WPC:R_WPC + F, 0:K]                            # (32, 24)
    pos = blob_ref[R_POS:R_POS + F, :]                              # (32, 256) constant
    sel = sel_ref[...]                                              # (286, 256) bf16
    ys = []
    for b in range(B):
        h2b = h2[:, b * FLAT_B:b * FLAT_B + SEL_ROWS].astype(bf16)  # (24, 286)
        h2c = jnp.dot(h2b, sel, preferred_element_type=f32)         # (24, 256) dense pixels
        ys.append(jnp.dot(wpc, h2c, preferred_element_type=f32) + pos)
    y = jnp.concatenate(ys, axis=0)                                 # (B*F, P) = (64, 256)

    # ---- pixel residual block: LayerNorm(P) + Linear(P->128)+ReLU+Linear(128->P) ----
    for l in range(PIXEL_N_RES):
        g = blob_ref[R_PG + l:R_PG + l + 1, :]                      # (1, 256)
        bta = blob_ref[R_PB + l:R_PB + l + 1, :]
        bh = blob_ref[R_PB1 + l:R_PB1 + l + 1, 0:PIXEL_HIDDEN]      # (1, 128)
        bo = blob_ref[R_PB2 + l:R_PB2 + l + 1, :]
        mu = jnp.mean(y, axis=-1, keepdims=True)
        var = jnp.mean(y * y, axis=-1, keepdims=True) - mu * mu     # one-pass stats (f32)
        yn = (y - mu) * lax.rsqrt(var + EPS) * g + bta
        h = jnp.maximum(
            jnp.dot(yn.astype(bf16), pw1_ref[l], preferred_element_type=f32) + bh, 0.0)
        y = y + jnp.dot(h.astype(bf16), pw2_ref[l], preferred_element_type=f32) + bo

    # ---- FeaturewiseMaxPool + (B*F,1)->(B,F) relayout via stored identity ----
    m = jnp.max(y, axis=-1, keepdims=True)                          # (64, 1)
    eye = blob_ref[R_EYE:R_EYE + F, 0:F]                            # (32, 32) identity
    v = jnp.concatenate(
        [jnp.sum(jnp.broadcast_to(m[b * F:(b + 1) * F, :], (F, F)) * eye,
                 axis=0, keepdims=True) for b in range(B)], axis=0)  # (2, 32), exact f32

    # ---- feature residual block in row-vector (B, F) form ----
    for l in range(FEATURE_N_RES):
        r0 = R_FVEC + 2 * l
        fg = blob_ref[r0:r0 + 1, 0:F]
        fb = blob_ref[r0:r0 + 1, F:2 * F]
        fb2 = blob_ref[r0:r0 + 1, 2 * F:3 * F]
        fb1 = blob_ref[r0 + 1:r0 + 2, 0:FEATURE_HIDDEN]
        fw1 = blob_ref[R_FW1:R_FW1 + F,
                       FEATURE_HIDDEN * l:FEATURE_HIDDEN * (l + 1)]   # (32, 64) = W1^T
        fw2 = blob_ref[R_FW2:R_FW2 + FEATURE_HIDDEN,
                       F * l:F * (l + 1)]                             # (64, 32) = W2^T
        mu = jnp.mean(v, axis=-1, keepdims=True)
        var = jnp.mean(v * v, axis=-1, keepdims=True) - mu * mu
        vn = (v - mu) * lax.rsqrt(var + EPS) * fg + fb
        hh = jnp.maximum(jnp.dot(vn, fw1, preferred_element_type=f32) + fb1, 0.0)
        v = v + jnp.dot(hh, fw2, preferred_element_type=f32) + fb2

    out_ref[...] = v                                                # (B, F)


# ------------------------------- wrappers -----------------------------------
def prepare_kernel_params(prm):
    """One-time host-side repack of the PyTorch-layout parameters into
    (sel_bf16, pw1_bf16, pw2_bf16, f32 blob) -> 4 constant DMAs per call."""
    S = MAP_SIZE
    blob = np.zeros((BLOB_ROWS, BLOB_COLS), np.float32)

    # conv block rows: one column block per 2x2 tap, tap order == OFFS.
    w1 = np.concatenate([np.asarray(prm["conv1_w"])[:, :, di, dj] for di, dj in TAPS], axis=1)
    w2 = np.concatenate([np.asarray(prm["conv2_w"])[:, :, di, dj] for di, dj in TAPS], axis=1)
    blob[R_CONV:R_CONV + K_OUT, C_W1:C_W1 + 4 * K_IN] = w1
    blob[R_CONV:R_CONV + K_OUT, C_B1] = np.asarray(prm["conv1_b"])
    blob[R_CONV:R_CONV + K_OUT, C_B2] = np.asarray(prm["conv2_b"])
    blob[R_CONV:R_CONV + K_OUT, C_W2:C_W2 + 4 * K_OUT] = w2

    # positional-encoding projection: conv-channel part + precomputed `pos` constant.
    wp = np.asarray(prm["wp"], np.float32)
    blob[R_WPC:R_WPC + N_FEATURES, 0:K_OUT] = wp[:, :K_OUT]
    lin = np.linspace(-1.0, 1.0, S).astype(np.float32)
    xx = np.broadcast_to(lin[:, None], (S, S)).reshape(1, P)        # row-index channel
    yy = np.broadcast_to(lin[None, :], (S, S)).reshape(1, P)        # column-index channel
    xy = np.concatenate([xx, yy], axis=0).astype(np.float32)        # (2, 256)
    blob[R_POS:R_POS + N_FEATURES, :] = wp[:, K_OUT:K_OUT + 2] @ xy + np.asarray(prm["bp"])

    # pixel residual LayerNorm params / MLP biases
    blob[R_PG:R_PG + PIXEL_N_RES, :] = np.asarray(prm["pg"])[:, 0, :]
    blob[R_PB:R_PB + PIXEL_N_RES, :] = np.asarray(prm["pb"])[:, 0, :]
    blob[R_PB1:R_PB1 + PIXEL_N_RES, 0:PIXEL_HIDDEN] = np.asarray(prm["pb1"])[:, 0, :]
    blob[R_PB2:R_PB2 + PIXEL_N_RES, :] = np.asarray(prm["pb2"])[:, 0, :]

    # identity used by the (B*F,1)->(B,F) max-pool relayout
    blob[R_EYE:R_EYE + N_FEATURES, 0:N_FEATURES] = np.eye(N_FEATURES, dtype=np.float32)

    # feature residual block (row-vector form: W^T, row biases)
    fw1 = np.asarray(prm["fw1"]); fw2 = np.asarray(prm["fw2"])
    fg = np.asarray(prm["fg"]); fb = np.asarray(prm["fb"])
    fb1 = np.asarray(prm["fb1"]); fb2 = np.asarray(prm["fb2"])
    for l in range(FEATURE_N_RES):
        blob[R_FW1:R_FW1 + N_FEATURES,
             FEATURE_HIDDEN * l:FEATURE_HIDDEN * (l + 1)] = fw1[l].T      # (32, 64)
        blob[R_FW2:R_FW2 + FEATURE_HIDDEN,
             N_FEATURES * l:N_FEATURES * (l + 1)] = fw2[l].T              # (64, 32)
        r0 = R_FVEC + 2 * l
        blob[r0, 0:N_FEATURES] = fg[l, :, 0]
        blob[r0, N_FEATURES:2 * N_FEATURES] = fb[l, :, 0]
        blob[r0, 2 * N_FEATURES:3 * N_FEATURES] = fb2[l, :, 0]
        blob[r0 + 1, 0:FEATURE_HIDDEN] = fb1[l, :, 0]

    # per-batch 0/1 selection: flat-18 offset i*18 + j -> dense pixel i*16 + j
    sel = np.zeros((SEL_ROWS, P), np.float32)
    for i in range(S):
        for j in range(S):
            sel[i * H_IN + j, i * S + j] = 1.0

    return (jnp.asarray(sel, dtype=jnp.bfloat16),
            jnp.asarray(prm["pw1"], dtype=jnp.bfloat16),   # (4, 256, 128)
            jnp.asarray(prm["pw2"], dtype=jnp.bfloat16),   # (4, 128, 256)
            jnp.asarray(blob))


def ohenet_forward_pallas(x, kparams):
    """x: (B, k_in, map_size+2, map_size+2) NCHW -> (B, n_features)."""
    sel_bf16, pw1_bf16, pw2_bf16, blob = kparams
    Bx, Cin, Hp, Wp = x.shape
    # NCHW -> channel-major flat (Cin, B*H*W); column index = b*324 + i*18 + j
    x_flat = jnp.transpose(x, (1, 0, 2, 3)).reshape(Cin, Bx * Hp * Wp)
    # im2col for conv1: one row-block of Cin channels per 2x2 tap (lane shift)
    xcols = jnp.concatenate([x_flat[:, o:o + N1] for o in OFFS], axis=0)  # (4*Cin, N1)
    return pl.pallas_call(
        ohe_fused_kernel,
        out_shape=jax.ShapeDtypeStruct((Bx, N_FEATURES), jnp.float32),
        compiler_params=pltpu.CompilerParams(vmem_limit_bytes=32 * 1024 * 1024),
        cost_estimate=pl.CostEstimate(flops=45_000_000, transcendentals=300,
                                      bytes_accessed=1_000_000),
    )(xcols, sel_bf16, pw1_bf16, pw2_bf16, blob)


# --------------------------- pure-JAX reference ----------------------------
def reference_forward(x, prm):
    def conv2x2(inp, w, b):
        out = lax.conv_general_dilated(
            inp, w, (1, 1), "VALID", dimension_numbers=("NCHW", "OIHW", "NCHW"))
        return jnp.maximum(out + b[None, :, None, None], 0.0)

    h = conv2x2(x, prm["conv1_w"], prm["conv1_b"])
    h = conv2x2(h, prm["conv2_w"], prm["conv2_b"])            # (B, K, S, S)
    B, K, S, _ = h.shape
    lin = jnp.linspace(-1.0, 1.0, S)
    xx = jnp.broadcast_to(lin[:, None], (S, S))[None, None]
    yy = jnp.broadcast_to(lin[None, :], (S, S))[None, None]
    h = jnp.concatenate(
        [h, jnp.broadcast_to(xx, (B, 1, S, S)), jnp.broadcast_to(yy, (B, 1, S, S))], axis=1)
    h = h.reshape(B, K + 2, S * S)                            # (B, C, P)
    y = jnp.einsum("fc,bcp->bfp", prm["wp"], h) + prm["bp"][None, :, :]   # (B, F, P)
    for l in range(PIXEL_N_RES):
        mu = y.mean(-1, keepdims=True)
        var = ((y - mu) ** 2).mean(-1, keepdims=True)
        yn = (y - mu) / jnp.sqrt(var + EPS) * prm["pg"][l] + prm["pb"][l]
        hd = jnp.maximum(jnp.einsum("bfp,ph->bfh", yn, prm["pw1"][l]) + prm["pb1"][l], 0.0)
        y = y + jnp.einsum("bfh,hp->bfp", hd, prm["pw2"][l]) + prm["pb2"][l]
    v = y.max(-1)                                             # (B, F)
    for l in range(FEATURE_N_RES):
        mu = v.mean(-1, keepdims=True)
        var = ((v - mu) ** 2).mean(-1, keepdims=True)
        vn = (v - mu) / jnp.sqrt(var + EPS) * prm["fg"][l, :, 0] + prm["fb"][l, :, 0]
        hd = jnp.maximum(vn @ prm["fw1"][l].T + prm["fb1"][l, :, 0], 0.0)
        v = v + hd @ prm["fw2"][l].T + prm["fb2"][l, :, 0]
    return v


# ------------------------------- parameters --------------------------------
def init_params(key):
    S = MAP_SIZE
    Pp = S * S
    C = K_OUT + 2
    ks = iter(jax.random.split(key, 24))
    nrm = lambda shape, scale=0.1: scale * jax.random.normal(next(ks), shape, jnp.float32)
    return dict(
        conv1_w=nrm((K_OUT, K_IN, 2, 2)), conv1_b=nrm((K_OUT,)),
        conv2_w=nrm((K_OUT, K_OUT, 2, 2)), conv2_b=nrm((K_OUT,)),
        wp=nrm((N_FEATURES, C)), bp=nrm((N_FEATURES, 1)),
        pg=1.0 + nrm((PIXEL_N_RES, 1, Pp), 0.05),
        pb=nrm((PIXEL_N_RES, 1, Pp), 0.05),
        pw1=nrm((PIXEL_N_RES, Pp, PIXEL_HIDDEN)),
        pb1=nrm((PIXEL_N_RES, 1, PIXEL_HIDDEN)),
        pw2=nrm((PIXEL_N_RES, PIXEL_HIDDEN, Pp)),
        pb2=nrm((PIXEL_N_RES, 1, Pp)),
        fg=1.0 + nrm((FEATURE_N_RES, N_FEATURES, 1), 0.05),
        fb=nrm((FEATURE_N_RES, N_FEATURES, 1), 0.05),
        fw1=nrm((FEATURE_N_RES, FEATURE_HIDDEN, N_FEATURES)),
        fb1=nrm((FEATURE_N_RES, FEATURE_HIDDEN, 1)),
        fw2=nrm((FEATURE_N_RES, N_FEATURES, FEATURE_HIDDEN)),
        fb2=nrm((FEATURE_N_RES, N_FEATURES, 1)),
    )


if __name__ == "__main__":
    key = jax.random.PRNGKey(0)
    kx, kp = jax.random.split(key)
    x = jax.random.normal(kx, (BATCH, K_IN, MAP_SIZE + 2, MAP_SIZE + 2), jnp.float32)
    prm = init_params(kp)
    kparams = prepare_kernel_params(prm)

    fwd = jax.jit(ohenet_forward_pallas)
    out = jax.block_until_ready(fwd(x, kparams))
    assert out.shape == (BATCH, N_FEATURES), out.shape

    # Accurate f32 baseline; kernel matmuls run single-pass bf16 on the MXU
    # (identical numerics to default-precision f32 matmuls), hence tolerance.
    with jax.default_matmul_precision("highest"):
        ref = reference_forward(x, prm)
    if not np.allclose(np.asarray(out), np.asarray(ref), rtol=3e-2, atol=3e-2):
        raise AssertionError(
            f"mismatch vs reference, max abs err = {float(jnp.max(jnp.abs(out - ref)))}")
    print("KERNEL_OK")
</pallas_src>

<mosaic_0001>
module attributes {stable_mosaic.version = 11 : i64} {
  func.func @ohe_fused_kernel(%arg0: memref<12x629xf32, #tpu.memory_space<vmem>>, %arg1: memref<286x256xbf16, #tpu.memory_space<vmem>>, %arg2: memref<4x256x128xbf16, #tpu.memory_space<vmem>>, %arg3: memref<4x128x256xbf16, #tpu.memory_space<vmem>>, %arg4: memref<240x256xf32, #tpu.memory_space<vmem>>, %arg5: memref<2x32xf32, #tpu.memory_space<vmem>>) attributes {dimension_semantics = [], scalar_prefetch = 0 : i64, scratch_operands = 0 : i64, tpu.core_type = #tpu.core_type<tc>} {
    %c0 = arith.constant 0 : index
    %c0_0 = arith.constant 0 : index
    %0 = vector.load %arg4[%c0, %c0_0] : memref<240x256xf32, #tpu.memory_space<vmem>>, vector<24x12xf32>
    %c0_1 = arith.constant 0 : index
    %c12 = arith.constant 12 : index
    %1 = vector.load %arg4[%c0_1, %c12] : memref<240x256xf32, #tpu.memory_space<vmem>>, vector<24x1xf32>
    %c0_2 = arith.constant 0 : index
    %c13 = arith.constant 13 : index
    %2 = vector.load %arg4[%c0_2, %c13] : memref<240x256xf32, #tpu.memory_space<vmem>>, vector<24x1xf32>
    %c0_3 = arith.constant 0 : index
    %c0_4 = arith.constant 0 : index
    %3 = vector.load %arg0[%c0_3, %c0_4] : memref<12x629xf32, #tpu.memory_space<vmem>>, vector<12x629xf32>
    %cst = arith.constant dense<0.000000e+00> : vector<24x629xf32>
    %4 = tpu.matmul %0, %3, %cst {dimension_numbers = #tpu.dot_dimension_numbers<[1], [0], [0], [1], [0, 0, 1, 1], [], []>} : vector<24x12xf32>, vector<12x629xf32>, vector<24x629xf32> -> vector<24x629xf32>
    %5 = vector.broadcast %1 : vector<24x1xf32> to vector<24x629xf32>
    %6 = arith.addf %4, %5 : vector<24x629xf32>
    %cst_5 = arith.constant 0.000000e+00 : f32
    %7 = vector.broadcast %cst_5 : f32 to vector<24x629xf32>
    %8 = arith.maximumf %6, %7 : vector<24x629xf32>
    %c0_6 = arith.constant 0 : index
    %c14 = arith.constant 14 : index
    %9 = vector.load %arg4[%c0_6, %c14] : memref<240x256xf32, #tpu.memory_space<vmem>>, vector<24x24xf32>
    %10 = vector.extract_strided_slice %8 {offsets = [0, 0], sizes = [24, 610], strides = [1, 1]} : vector<24x629xf32> to vector<24x610xf32>
    %cst_7 = arith.constant dense<0.000000e+00> : vector<24x610xf32>
    %11 = tpu.matmul %9, %10, %cst_7 {dimension_numbers = #tpu.dot_dimension_numbers<[1], [0], [0], [1], [0, 0, 1, 1], [], []>} : vector<24x24xf32>, vector<24x610xf32>, vector<24x610xf32> -> vector<24x610xf32>
    %c0_8 = arith.constant 0 : index
    %c38 = arith.constant 38 : index
    %12 = vector.load %arg4[%c0_8, %c38] : memref<240x256xf32, #tpu.memory_space<vmem>>, vector<24x24xf32>
    %13 = vector.extract_strided_slice %8 {offsets = [0, 1], sizes = [24, 610], strides = [1, 1]} : vector<24x629xf32> to vector<24x610xf32>
    %cst_9 = arith.constant dense<0.000000e+00> : vector<24x610xf32>
    %14 = tpu.matmul %12, %13, %cst_9 {dimension_numbers = #tpu.dot_dimension_numbers<[1], [0], [0], [1], [0, 0, 1, 1], [], []>} : vector<24x24xf32>, vector<24x610xf32>, vector<24x610xf32> -> vector<24x610xf32>
    %15 = arith.addf %11, %14 : vector<24x610xf32>
    %c0_10 = arith.constant 0 : index
    %c62 = arith.constant 62 : index
    %16 = vector.load %arg4[%c0_10, %c62] : memref<240x256xf32, #tpu.memory_space<vmem>>, vector<24x24xf32>
    %17 = vector.extract_strided_slice %8 {offsets = [0, 18], sizes = [24, 610], strides = [1, 1]} : vector<24x629xf32> to vector<24x610xf32>
    %cst_11 = arith.constant dense<0.000000e+00> : vector<24x610xf32>
    %18 = tpu.matmul %16, %17, %cst_11 {dimension_numbers = #tpu.dot_dimension_numbers<[1], [0], [0], [1], [0, 0, 1, 1], [], []>} : vector<24x24xf32>, vector<24x610xf32>, vector<24x610xf32> -> vector<24x610xf32>
    %19 = arith.addf %15, %18 : vector<24x610xf32>
    %c0_12 = arith.constant 0 : index
    %c86 = arith.constant 86 : index
    %20 = vector.load %arg4[%c0_12, %c86] : memref<240x256xf32, #tpu.memory_space<vmem>>, vector<24x24xf32>
    %21 = vector.extract_strided_slice %8 {offsets = [0, 19], sizes = [24, 610], strides = [1, 1]} : vector<24x629xf32> to vector<24x610xf32>
    %cst_13 = arith.constant dense<0.000000e+00> : vector<24x610xf32>
    %22 = tpu.matmul %20, %21, %cst_13 {dimension_numbers = #tpu.dot_dimension_numbers<[1], [0], [0], [1], [0, 0, 1, 1], [], []>} : vector<24x24xf32>, vector<24x610xf32>, vector<24x610xf32> -> vector<24x610xf32>
    %23 = arith.addf %19, %22 : vector<24x610xf32>
    %24 = vector.broadcast %2 : vector<24x1xf32> to vector<24x610xf32>
    %25 = arith.addf %23, %24 : vector<24x610xf32>
    %cst_14 = arith.constant 0.000000e+00 : f32
    %26 = vector.broadcast %cst_14 : f32 to vector<24x610xf32>
    %27 = arith.maximumf %25, %26 : vector<24x610xf32>
    %c24 = arith.constant 24 : index
    %c0_15 = arith.constant 0 : index
    %28 = vector.load %arg4[%c24, %c0_15] : memref<240x256xf32, #tpu.memory_space<vmem>>, vector<32x24xf32>
    %c56 = arith.constant 56 : index
    %c0_16 = arith.constant 0 : index
    %29 = vector.load %arg4[%c56, %c0_16] : memref<240x256xf32, #tpu.memory_space<vmem>>, vector<32x256xf32>
    %c0_17 = arith.constant 0 : index
    %c0_18 = arith.constant 0 : index
    %30 = vector.load %arg1[%c0_17, %c0_18] : memref<286x256xbf16, #tpu.memory_space<vmem>>, vector<286x256xbf16>
    %31 = vector.extract_strided_slice %27 {offsets = [0, 0], sizes = [24, 286], strides = [1, 1]} : vector<24x610xf32> to vector<24x286xf32>
    %32 = arith.truncf %31 : vector<24x286xf32> to vector<24x286xbf16>
    %cst_19 = arith.constant dense<0.000000e+00> : vector<24x256xf32>
    %33 = tpu.matmul %32, %30, %cst_19 {dimension_numbers = #tpu.dot_dimension_numbers<[1], [0], [0], [1], [0, 0, 1, 1], [], []>} : vector<24x286xbf16>, vector<286x256xbf16>, vector<24x256xf32> -> vector<24x256xf32>
    %cst_20 = arith.constant dense<0.000000e+00> : vector<32x256xf32>
    %34 = tpu.matmul %28, %33, %cst_20 {dimension_numbers = #tpu.dot_dimension_numbers<[1], [0], [0], [1], [0, 0, 1, 1], [], []>} : vector<32x24xf32>, vector<24x256xf32>, vector<32x256xf32> -> vector<32x256xf32>
    %35 = arith.addf %34, %29 : vector<32x256xf32>
    %36 = vector.extract_strided_slice %27 {offsets = [0, 324], sizes = [24, 286], strides = [1, 1]} : vector<24x610xf32> to vector<24x286xf32>
    %37 = arith.truncf %36 : vector<24x286xf32> to vector<24x286xbf16>
    %cst_21 = arith.constant dense<0.000000e+00> : vector<24x256xf32>
    %38 = tpu.matmul %37, %30, %cst_21 {dimension_numbers = #tpu.dot_dimension_numbers<[1], [0], [0], [1], [0, 0, 1, 1], [], []>} : vector<24x286xbf16>, vector<286x256xbf16>, vector<24x256xf32> -> vector<24x256xf32>
    %cst_22 = arith.constant dense<0.000000e+00> : vector<32x256xf32>
    %39 = tpu.matmul %28, %38, %cst_22 {dimension_numbers = #tpu.dot_dimension_numbers<[1], [0], [0], [1], [0, 0, 1, 1], [], []>} : vector<32x24xf32>, vector<24x256xf32>, vector<32x256xf32> -> vector<32x256xf32>
    %40 = arith.addf %39, %29 : vector<32x256xf32>
    %41 = tpu.concatenate %35, %40 in 0 : vector<32x256xf32>, vector<32x256xf32> -> vector<64x256xf32>
    %c88 = arith.constant 88 : index
    %c0_23 = arith.constant 0 : index
    %42 = vector.load %arg4[%c88, %c0_23] : memref<240x256xf32, #tpu.memory_space<vmem>>, vector<1x256xf32>
    %c92 = arith.constant 92 : index
    %c0_24 = arith.constant 0 : index
    %43 = vector.load %arg4[%c92, %c0_24] : memref<240x256xf32, #tpu.memory_space<vmem>>, vector<1x256xf32>
    %c96 = arith.constant 96 : index
    %c0_25 = arith.constant 0 : index
    %44 = vector.load %arg4[%c96, %c0_25] : memref<240x256xf32, #tpu.memory_space<vmem>>, vector<1x128xf32>
    %c100 = arith.constant 100 : index
    %c0_26 = arith.constant 0 : index
    %45 = vector.load %arg4[%c100, %c0_26] : memref<240x256xf32, #tpu.memory_space<vmem>>, vector<1x256xf32>
    %cst_27 = arith.constant dense<0.000000e+00> : vector<64xf32>
    %46 = vector.multi_reduction <add>, %41, %cst_27 [1] : vector<64x256xf32> to vector<64xf32>
    %47 = vector.shape_cast %46 : vector<64xf32> to vector<64x1xf32>
    %cst_28 = arith.constant 2.560000e+02 : f32
    %48 = vector.broadcast %cst_28 : f32 to vector<64x1xf32>
    %49 = arith.divf %47, %48 : vector<64x1xf32>
    %50 = arith.mulf %41, %41 : vector<64x256xf32>
    %cst_29 = arith.constant dense<0.000000e+00> : vector<64xf32>
    %51 = vector.multi_reduction <add>, %50, %cst_29 [1] : vector<64x256xf32> to vector<64xf32>
    %52 = vector.shape_cast %51 : vector<64xf32> to vector<64x1xf32>
    %cst_30 = arith.constant 2.560000e+02 : f32
    %53 = vector.broadcast %cst_30 : f32 to vector<64x1xf32>
    %54 = arith.divf %52, %53 : vector<64x1xf32>
    %55 = arith.mulf %49, %49 : vector<64x1xf32>
    %56 = arith.subf %54, %55 : vector<64x1xf32>
    %57 = vector.broadcast %49 : vector<64x1xf32> to vector<64x256xf32>
    %58 = arith.subf %41, %57 : vector<64x256xf32>
    %cst_31 = arith.constant 9.99999974E-6 : f32
    %59 = vector.broadcast %cst_31 : f32 to vector<64x1xf32>
    %60 = arith.addf %56, %59 : vector<64x1xf32>
    %61 = math.rsqrt %60 : vector<64x1xf32>
    %62 = vector.broadcast %61 : vector<64x1xf32> to vector<64x256xf32>
    %63 = arith.mulf %58, %62 : vector<64x256xf32>
    %64 = vector.broadcast %42 : vector<1x256xf32> to vector<64x256xf32>
    %65 = arith.mulf %63, %64 : vector<64x256xf32>
    %66 = vector.broadcast %43 : vector<1x256xf32> to vector<64x256xf32>
    %67 = arith.addf %65, %66 : vector<64x256xf32>
    %68 = arith.truncf %67 : vector<64x256xf32> to vector<64x256xbf16>
    %c0_32 = arith.constant 0 : index
    %c0_33 = arith.constant 0 : index
    %c0_34 = arith.constant 0 : index
    %69 = vector.load %arg2[%c0_32, %c0_33, %c0_34] : memref<4x256x128xbf16, #tpu.memory_space<vmem>>, vector<1x256x128xbf16>
    %70 = vector.shape_cast %69 : vector<1x256x128xbf16> to vector<256x128xbf16>
    %cst_35 = arith.constant dense<0.000000e+00> : vector<64x128xf32>
    %71 = tpu.matmul %68, %70, %cst_35 {dimension_numbers = #tpu.dot_dimension_numbers<[1], [0], [0], [1], [0, 0, 1, 1], [], []>} : vector<64x256xbf16>, vector<256x128xbf16>, vector<64x128xf32> -> vector<64x128xf32>
    %72 = vector.broadcast %44 : vector<1x128xf32> to vector<64x128xf32>
    %73 = arith.addf %71, %72 : vector<64x128xf32>
    %cst_36 = arith.constant 0.000000e+00 : f32
    %74 = vector.broadcast %cst_36 : f32 to vector<64x128xf32>
    %75 = arith.maximumf %73, %74 : vector<64x128xf32>
    %76 = arith.truncf %75 : vector<64x128xf32> to vector<64x128xbf16>
    %c0_37 = arith.constant 0 : index
    %c0_38 = arith.constant 0 : index
    %c0_39 = arith.constant 0 : index
    %77 = vector.load %arg3[%c0_37, %c0_38, %c0_39] : memref<4x128x256xbf16, #tpu.memory_space<vmem>>, vector<1x128x256xbf16>
    %78 = vector.shape_cast %77 : vector<1x128x256xbf16> to vector<128x256xbf16>
    %cst_40 = arith.constant dense<0.000000e+00> : vector<64x256xf32>
    %79 = tpu.matmul %76, %78, %cst_40 {dimension_numbers = #tpu.dot_dimension_numbers<[1], [0], [0], [1], [0, 0, 1, 1], [], []>} : vector<64x128xbf16>, vector<128x256xbf16>, vector<64x256xf32> -> vector<64x256xf32>
    %80 = arith.addf %41, %79 : vector<64x256xf32>
    %81 = vector.broadcast %45 : vector<1x256xf32> to vector<64x256xf32>
    %82 = arith.addf %80, %81 : vector<64x256xf32>
    %c89 = arith.constant 89 : index
    %c0_41 = arith.constant 0 : index
    %83 = vector.load %arg4[%c89, %c0_41] : memref<240x256xf32, #tpu.memory_space<vmem>>, vector<1x256xf32>
    %c93 = arith.constant 93 : index
    %c0_42 = arith.constant 0 : index
    %84 = vector.load %arg4[%c93, %c0_42] : memref<240x256xf32, #tpu.memory_space<vmem>>, vector<1x256xf32>
    %c97 = arith.constant 97 : index
    %c0_43 = arith.constant 0 : index
    %85 = vector.load %arg4[%c97, %c0_43] : memref<240x256xf32, #tpu.memory_space<vmem>>, vector<1x128xf32>
    %c101 = arith.constant 101 : index
    %c0_44 = arith.constant 0 : index
    %86 = vector.load %arg4[%c101, %c0_44] : memref<240x256xf32, #tpu.memory_space<vmem>>, vector<1x256xf32>
    %cst_45 = arith.constant dense<0.000000e+00> : vector<64xf32>
    %87 = vector.multi_reduction <add>, %82, %cst_45 [1] : vector<64x256xf32> to vector<64xf32>
    %88 = vector.shape_cast %87 : vector<64xf32> to vector<64x1xf32>
    %cst_46 = arith.constant 2.560000e+02 : f32
    %89 = vector.broadcast %cst_46 : f32 to vector<64x1xf32>
    %90 = arith.divf %88, %89 : vector<64x1xf32>
    %91 = arith.mulf %82, %82 : vector<64x256xf32>
    %cst_47 = arith.constant dense<0.000000e+00> : vector<64xf32>
    %92 = vector.multi_reduction <add>, %91, %cst_47 [1] : vector<64x256xf32> to vector<64xf32>
    %93 = vector.shape_cast %92 : vector<64xf32> to vector<64x1xf32>
    %cst_48 = arith.constant 2.560000e+02 : f32
    %94 = vector.broadcast %cst_48 : f32 to vector<64x1xf32>
    %95 = arith.divf %93, %94 : vector<64x1xf32>
    %96 = arith.mulf %90, %90 : vector<64x1xf32>
    %97 = arith.subf %95, %96 : vector<64x1xf32>
    %98 = vector.broadcast %90 : vector<64x1xf32> to vector<64x256xf32>
    %99 = arith.subf %82, %98 : vector<64x256xf32>
    %cst_49 = arith.constant 9.99999974E-6 : f32
    %100 = vector.broadcast %cst_49 : f32 to vector<64x1xf32>
    %101 = arith.addf %97, %100 : vector<64x1xf32>
    %102 = math.rsqrt %101 : vector<64x1xf32>
    %103 = vector.broadcast %102 : vector<64x1xf32> to vector<64x256xf32>
    %104 = arith.mulf %99, %103 : vector<64x256xf32>
    %105 = vector.broadcast %83 : vector<1x256xf32> to vector<64x256xf32>
    %106 = arith.mulf %104, %105 : vector<64x256xf32>
    %107 = vector.broadcast %84 : vector<1x256xf32> to vector<64x256xf32>
    %108 = arith.addf %106, %107 : vector<64x256xf32>
    %109 = arith.truncf %108 : vector<64x256xf32> to vector<64x256xbf16>
    %c1 = arith.constant 1 : index
    %c0_50 = arith.constant 0 : index
    %c0_51 = arith.constant 0 : index
    %110 = vector.load %arg2[%c1, %c0_50, %c0_51] : memref<4x256x128xbf16, #tpu.memory_space<vmem>>, vector<1x256x128xbf16>
    %111 = vector.shape_cast %110 : vector<1x256x128xbf16> to vector<256x128xbf16>
    %cst_52 = arith.constant dense<0.000000e+00> : vector<64x128xf32>
    %112 = tpu.matmul %109, %111, %cst_52 {dimension_numbers = #tpu.dot_dimension_numbers<[1], [0], [0], [1], [0, 0, 1, 1], [], []>} : vector<64x256xbf16>, vector<256x128xbf16>, vector<64x128xf32> -> vector<64x128xf32>
    %113 = vector.broadcast %85 : vector<1x128xf32> to vector<64x128xf32>
    %114 = arith.addf %112, %113 : vector<64x128xf32>
    %cst_53 = arith.constant 0.000000e+00 : f32
    %115 = vector.broadcast %cst_53 : f32 to vector<64x128xf32>
    %116 = arith.maximumf %114, %115 : vector<64x128xf32>
    %117 = arith.truncf %116 : vector<64x128xf32> to vector<64x128xbf16>
    %c1_54 = arith.constant 1 : index
    %c0_55 = arith.constant 0 : index
    %c0_56 = arith.constant 0 : index
    %118 = vector.load %arg3[%c1_54, %c0_55, %c0_56] : memref<4x128x256xbf16, #tpu.memory_space<vmem>>, vector<1x128x256xbf16>
    %119 = vector.shape_cast %118 : vector<1x128x256xbf16> to vector<128x256xbf16>
    %cst_57 = arith.constant dense<0.000000e+00> : vector<64x256xf32>
    %120 = tpu.matmul %117, %119, %cst_57 {dimension_numbers = #tpu.dot_dimension_numbers<[1], [0], [0], [1], [0, 0, 1, 1], [], []>} : vector<64x128xbf16>, vector<128x256xbf16>, vector<64x256xf32> -> vector<64x256xf32>
    %121 = arith.addf %82, %120 : vector<64x256xf32>
    %122 = vector.broadcast %86 : vector<1x256xf32> to vector<64x256xf32>
    %123 = arith.addf %121, %122 : vector<64x256xf32>
    %c90 = arith.constant 90 : index
    %c0_58 = arith.constant 0 : index
    %124 = vector.load %arg4[%c90, %c0_58] : memref<240x256xf32, #tpu.memory_space<vmem>>, vector<1x256xf32>
    %c94 = arith.constant 94 : index
    %c0_59 = arith.constant 0 : index
    %125 = vector.load %arg4[%c94, %c0_59] : memref<240x256xf32, #tpu.memory_space<vmem>>, vector<1x256xf32>
    %c98 = arith.constant 98 : index
    %c0_60 = arith.constant 0 : index
    %126 = vector.load %arg4[%c98, %c0_60] : memref<240x256xf32, #tpu.memory_space<vmem>>, vector<1x128xf32>
    %c102 = arith.constant 102 : index
    %c0_61 = arith.constant 0 : index
    %127 = vector.load %arg4[%c102, %c0_61] : memref<240x256xf32, #tpu.memory_space<vmem>>, vector<1x256xf32>
    %cst_62 = arith.constant dense<0.000000e+00> : vector<64xf32>
    %128 = vector.multi_reduction <add>, %123, %cst_62 [1] : vector<64x256xf32> to vector<64xf32>
    %129 = vector.shape_cast %128 : vector<64xf32> to vector<64x1xf32>
    %cst_63 = arith.constant 2.560000e+02 : f32
    %130 = vector.broadcast %cst_63 : f32 to vector<64x1xf32>
    %131 = arith.divf %129, %130 : vector<64x1xf32>
    %132 = arith.mulf %123, %123 : vector<64x256xf32>
    %cst_64 = arith.constant dense<0.000000e+00> : vector<64xf32>
    %133 = vector.multi_reduction <add>, %132, %cst_64 [1] : vector<64x256xf32> to vector<64xf32>
    %134 = vector.shape_cast %133 : vector<64xf32> to vector<64x1xf32>
    %cst_65 = arith.constant 2.560000e+02 : f32
    %135 = vector.broadcast %cst_65 : f32 to vector<64x1xf32>
    %136 = arith.divf %134, %135 : vector<64x1xf32>
    %137 = arith.mulf %131, %131 : vector<64x1xf32>
    %138 = arith.subf %136, %137 : vector<64x1xf32>
    %139 = vector.broadcast %131 : vector<64x1xf32> to vector<64x256xf32>
    %140 = arith.subf %123, %139 : vector<64x256xf32>
    %cst_66 = arith.constant 9.99999974E-6 : f32
    %141 = vector.broadcast %cst_66 : f32 to vector<64x1xf32>
    %142 = arith.addf %138, %141 : vector<64x1xf32>
    %143 = math.rsqrt %142 : vector<64x1xf32>
    %144 = vector.broadcast %143 : vector<64x1xf32> to vector<64x256xf32>
    %145 = arith.mulf %140, %144 : vector<64x256xf32>
    %146 = vector.broadcast %124 : vector<1x256xf32> to vector<64x256xf32>
    %147 = arith.mulf %145, %146 : vector<64x256xf32>
    %148 = vector.broadcast %125 : vector<1x256xf32> to vector<64x256xf32>
    %149 = arith.addf %147, %148 : vector<64x256xf32>
    %150 = arith.truncf %149 : vector<64x256xf32> to vector<64x256xbf16>
    %c2 = arith.constant 2 : index
    %c0_67 = arith.constant 0 : index
    %c0_68 = arith.constant 0 : index
    %151 = vector.load %arg2[%c2, %c0_67, %c0_68] : memref<4x256x128xbf16, #tpu.memory_space<vmem>>, vector<1x256x128xbf16>
    %152 = vector.shape_cast %151 : vector<1x256x128xbf16> to vector<256x128xbf16>
    %cst_69 = arith.constant dense<0.000000e+00> : vector<64x128xf32>
    %153 = tpu.matmul %150, %152, %cst_69 {dimension_numbers = #tpu.dot_dimension_numbers<[1], [0], [0], [1], [0, 0, 1, 1], [], []>} : vector<64x256xbf16>, vector<256x128xbf16>, vector<64x128xf32> -> vector<64x128xf32>
    %154 = vector.broadcast %126 : vector<1x128xf32> to vector<64x128xf32>
    %155 = arith.addf %153, %154 : vector<64x128xf32>
    %cst_70 = arith.constant 0.000000e+00 : f32
    %156 = vector.broadcast %cst_70 : f32 to vector<64x128xf32>
    %157 = arith.maximumf %155, %156 : vector<64x128xf32>
    %158 = arith.truncf %157 : vector<64x128xf32> to vector<64x128xbf16>
    %c2_71 = arith.constant 2 : index
    %c0_72 = arith.constant 0 : index
    %c0_73 = arith.constant 0 : index
    %159 = vector.load %arg3[%c2_71, %c0_72, %c0_73] : memref<4x128x256xbf16, #tpu.memory_space<vmem>>, vector<1x128x256xbf16>
    %160 = vector.shape_cast %159 : vector<1x128x256xbf16> to vector<128x256xbf16>
    %cst_74 = arith.constant dense<0.000000e+00> : vector<64x256xf32>
    %161 = tpu.matmul %158, %160, %cst_74 {dimension_numbers = #tpu.dot_dimension_numbers<[1], [0], [0], [1], [0, 0, 1, 1], [], []>} : vector<64x128xbf16>, vector<128x256xbf16>, vector<64x256xf32> -> vector<64x256xf32>
    %162 = arith.addf %123, %161 : vector<64x256xf32>
    %163 = vector.broadcast %127 : vector<1x256xf32> to vector<64x256xf32>
    %164 = arith.addf %162, %163 : vector<64x256xf32>
    %c91 = arith.constant 91 : index
    %c0_75 = arith.constant 0 : index
    %165 = vector.load %arg4[%c91, %c0_75] : memref<240x256xf32, #tpu.memory_space<vmem>>, vector<1x256xf32>
    %c95 = arith.constant 95 : index
    %c0_76 = arith.constant 0 : index
    %166 = vector.load %arg4[%c95, %c0_76] : memref<240x256xf32, #tpu.memory_space<vmem>>, vector<1x256xf32>
    %c99 = arith.constant 99 : index
    %c0_77 = arith.constant 0 : index
    %167 = vector.load %arg4[%c99, %c0_77] : memref<240x256xf32, #tpu.memory_space<vmem>>, vector<1x128xf32>
    %c103 = arith.constant 103 : index
    %c0_78 = arith.constant 0 : index
    %168 = vector.load %arg4[%c103, %c0_78] : memref<240x256xf32, #tpu.memory_space<vmem>>, vector<1x256xf32>
    %cst_79 = arith.constant dense<0.000000e+00> : vector<64xf32>
    %169 = vector.multi_reduction <add>, %164, %cst_79 [1] : vector<64x256xf32> to vector<64xf32>
    %170 = vector.shape_cast %169 : vector<64xf32> to vector<64x1xf32>
    %cst_80 = arith.constant 2.560000e+02 : f32
    %171 = vector.broadcast %cst_80 : f32 to vector<64x1xf32>
    %172 = arith.divf %170, %171 : vector<64x1xf32>
    %173 = arith.mulf %164, %164 : vector<64x256xf32>
    %cst_81 = arith.constant dense<0.000000e+00> : vector<64xf32>
    %174 = vector.multi_reduction <add>, %173, %cst_81 [1] : vector<64x256xf32> to vector<64xf32>
    %175 = vector.shape_cast %174 : vector<64xf32> to vector<64x1xf32>
    %cst_82 = arith.constant 2.560000e+02 : f32
    %176 = vector.broadcast %cst_82 : f32 to vector<64x1xf32>
    %177 = arith.divf %175, %176 : vector<64x1xf32>
    %178 = arith.mulf %172, %172 : vector<64x1xf32>
    %179 = arith.subf %177, %178 : vector<64x1xf32>
    %180 = vector.broadcast %172 : vector<64x1xf32> to vector<64x256xf32>
    %181 = arith.subf %164, %180 : vector<64x256xf32>
    %cst_83 = arith.constant 9.99999974E-6 : f32
    %182 = vector.broadcast %cst_83 : f32 to vector<64x1xf32>
    %183 = arith.addf %179, %182 : vector<64x1xf32>
    %184 = math.rsqrt %183 : vector<64x1xf32>
    %185 = vector.broadcast %184 : vector<64x1xf32> to vector<64x256xf32>
    %186 = arith.mulf %181, %185 : vector<64x256xf32>
    %187 = vector.broadcast %165 : vector<1x256xf32> to vector<64x256xf32>
    %188 = arith.mulf %186, %187 : vector<64x256xf32>
    %189 = vector.broadcast %166 : vector<1x256xf32> to vector<64x256xf32>
    %190 = arith.addf %188, %189 : vector<64x256xf32>
    %191 = arith.truncf %190 : vector<64x256xf32> to vector<64x256xbf16>
    %c3 = arith.constant 3 : index
    %c0_84 = arith.constant 0 : index
    %c0_85 = arith.constant 0 : index
    %192 = vector.load %arg2[%c3, %c0_84, %c0_85] : memref<4x256x128xbf16, #tpu.memory_space<vmem>>, vector<1x256x128xbf16>
    %193 = vector.shape_cast %192 : vector<1x256x128xbf16> to vector<256x128xbf16>
    %cst_86 = arith.constant dense<0.000000e+00> : vector<64x128xf32>
    %194 = tpu.matmul %191, %193, %cst_86 {dimension_numbers = #tpu.dot_dimension_numbers<[1], [0], [0], [1], [0, 0, 1, 1], [], []>} : vector<64x256xbf16>, vector<256x128xbf16>, vector<64x128xf32> -> vector<64x128xf32>
    %195 = vector.broadcast %167 : vector<1x128xf32> to vector<64x128xf32>
    %196 = arith.addf %194, %195 : vector<64x128xf32>
    %cst_87 = arith.constant 0.000000e+00 : f32
    %197 = vector.broadcast %cst_87 : f32 to vector<64x128xf32>
    %198 = arith.maximumf %196, %197 : vector<64x128xf32>
    %199 = arith.truncf %198 : vector<64x128xf32> to vector<64x128xbf16>
    %c3_88 = arith.constant 3 : index
    %c0_89 = arith.constant 0 : index
    %c0_90 = arith.constant 0 : index
    %200 = vector.load %arg3[%c3_88, %c0_89, %c0_90] : memref<4x128x256xbf16, #tpu.memory_space<vmem>>, vector<1x128x256xbf16>
    %201 = vector.shape_cast %200 : vector<1x128x256xbf16> to vector<128x256xbf16>
    %cst_91 = arith.constant dense<0.000000e+00> : vector<64x256xf32>
    %202 = tpu.matmul %199, %201, %cst_91 {dimension_numbers = #tpu.dot_dimension_numbers<[1], [0], [0], [1], [0, 0, 1, 1], [], []>} : vector<64x128xbf16>, vector<128x256xbf16>, vector<64x256xf32> -> vector<64x256xf32>
    %203 = arith.addf %164, %202 : vector<64x256xf32>
    %204 = vector.broadcast %168 : vector<1x256xf32> to vector<64x256xf32>
    %205 = arith.addf %203, %204 : vector<64x256xf32>
    %cst_92 = arith.constant dense<0xFF800000> : vector<64xf32>
    %206 = vector.multi_reduction <maximumf>, %205, %cst_92 [1] : vector<64x256xf32> to vector<64xf32>
    %207 = vector.shape_cast %206 : vector<64xf32> to vector<64x1xf32>
    %c104 = arith.constant 104 : index
    %c0_93 = arith.constant 0 : index
    %208 = vector.load %arg4[%c104, %c0_93] : memref<240x256xf32, #tpu.memory_space<vmem>>, vector<32x32xf32>
    %209 = vector.extract_strided_slice %207 {offsets = [0, 0], sizes = [32, 1], strides = [1, 1]} : vector<64x1xf32> to vector<32x1xf32>
    %210 = vector.shape_cast %209 : vector<32x1xf32> to vector<32x1xf32>
    %211 = vector.broadcast %210 : vector<32x1xf32> to vector<32x32xf32>
    %212 = arith.mulf %211, %208 : vector<32x32xf32>
    %cst_94 = arith.constant dense<0.000000e+00> : vector<32xf32>
    %213 = vector.multi_reduction <add>, %212, %cst_94 [0] : vector<32x32xf32> to vector<32xf32>
    %214 = vector.shape_cast %213 : vector<32xf32> to vector<1x32xf32>
    %215 = vector.extract_strided_slice %207 {offsets = [32, 0], sizes = [32, 1], strides = [1, 1]} : vector<64x1xf32> to vector<32x1xf32>
    %216 = vector.shape_cast %215 : vector<32x1xf32> to vector<32x1xf32>
    %217 = vector.broadcast %216 : vector<32x1xf32> to vector<32x32xf32>
    %218 = arith.mulf %217, %208 : vector<32x32xf32>
    %cst_95 = arith.constant dense<0.000000e+00> : vector<32xf32>
    %219 = vector.multi_reduction <add>, %218, %cst_95 [0] : vector<32x32xf32> to vector<32xf32>
    %220 = vector.shape_cast %219 : vector<32xf32> to vector<1x32xf32>
    %221 = tpu.concatenate %214, %220 in 0 : vector<1x32xf32>, vector<1x32xf32> -> vector<2x32xf32>
    %c232 = arith.constant 232 : index
    %c0_96 = arith.constant 0 : index
    %222 = vector.load %arg4[%c232, %c0_96] : memref<240x256xf32, #tpu.memory_space<vmem>>, vector<1x32xf32>
    %c232_97 = arith.constant 232 : index
    %c32 = arith.constant 32 : index
    %223 = vector.load %arg4[%c232_97, %c32] : memref<240x256xf32, #tpu.memory_space<vmem>>, vector<1x32xf32>
    %c232_98 = arith.constant 232 : index
    %c64 = arith.constant 64 : index
    %224 = vector.load %arg4[%c232_98, %c64] : memref<240x256xf32, #tpu.memory_space<vmem>>, vector<1x32xf32>
    %c233 = arith.constant 233 : index
    %c0_99 = arith.constant 0 : index
    %225 = vector.load %arg4[%c233, %c0_99] : memref<240x256xf32, #tpu.memory_space<vmem>>, vector<1x64xf32>
    %c136 = arith.constant 136 : index
    %c0_100 = arith.constant 0 : index
    %226 = vector.load %arg4[%c136, %c0_100] : memref<240x256xf32, #tpu.memory_space<vmem>>, vector<32x64xf32>
    %c168 = arith.constant 168 : index
    %c0_101 = arith.constant 0 : index
    %227 = vector.load %arg4[%c168, %c0_101] : memref<240x256xf32, #tpu.memory_space<vmem>>, vector<64x32xf32>
    %cst_102 = arith.constant dense<0.000000e+00> : vector<2xf32>
    %228 = vector.multi_reduction <add>, %221, %cst_102 [1] : vector<2x32xf32> to vector<2xf32>
    %229 = vector.shape_cast %228 : vector<2xf32> to vector<2x1xf32>
    %cst_103 = arith.constant 3.200000e+01 : f32
    %230 = vector.broadcast %cst_103 : f32 to vector<2x1xf32>
    %231 = arith.divf %229, %230 : vector<2x1xf32>
    %232 = arith.mulf %221, %221 : vector<2x32xf32>
    %cst_104 = arith.constant dense<0.000000e+00> : vector<2xf32>
    %233 = vector.multi_reduction <add>, %232, %cst_104 [1] : vector<2x32xf32> to vector<2xf32>
    %234 = vector.shape_cast %233 : vector<2xf32> to vector<2x1xf32>
    %cst_105 = arith.constant 3.200000e+01 : f32
    %235 = vector.broadcast %cst_105 : f32 to vector<2x1xf32>
    %236 = arith.divf %234, %235 : vector<2x1xf32>
    %237 = arith.mulf %231, %231 : vector<2x1xf32>
    %238 = arith.subf %236, %237 : vector<2x1xf32>
    %239 = vector.broadcast %231 : vector<2x1xf32> to vector<2x32xf32>
    %240 = arith.subf %221, %239 : vector<2x32xf32>
    %cst_106 = arith.constant 9.99999974E-6 : f32
    %241 = vector.broadcast %cst_106 : f32 to vector<2x1xf32>
    %242 = arith.addf %238, %241 : vector<2x1xf32>
    %243 = math.rsqrt %242 : vector<2x1xf32>
    %244 = vector.broadcast %243 : vector<2x1xf32> to vector<2x32xf32>
    %245 = arith.mulf %240, %244 : vector<2x32xf32>
    %246 = vector.broadcast %222 : vector<1x32xf32> to vector<2x32xf32>
    %247 = arith.mulf %245, %246 : vector<2x32xf32>
    %248 = vector.broadcast %223 : vector<1x32xf32> to vector<2x32xf32>
    %249 = arith.addf %247, %248 : vector<2x32xf32>
    %cst_107 = arith.constant dense<0.000000e+00> : vector<2x64xf32>
    %250 = tpu.matmul %249, %226, %cst_107 {dimension_numbers = #tpu.dot_dimension_numbers<[1], [0], [0], [1], [0, 0, 1, 1], [], []>} : vector<2x32xf32>, vector<32x64xf32>, vector<2x64xf32> -> vector<2x64xf32>
    %251 = vector.broadcast %225 : vector<1x64xf32> to vector<2x64xf32>
    %252 = arith.addf %250, %251 : vector<2x64xf32>
    %cst_108 = arith.constant 0.000000e+00 : f32
    %253 = vector.broadcast %cst_108 : f32 to vector<2x64xf32>
    %254 = arith.maximumf %252, %253 : vector<2x64xf32>
    %cst_109 = arith.constant dense<0.000000e+00> : vector<2x32xf32>
    %255 = tpu.matmul %254, %227, %cst_109 {dimension_numbers = #tpu.dot_dimension_numbers<[1], [0], [0], [1], [0, 0, 1, 1], [], []>} : vector<2x64xf32>, vector<64x32xf32>, vector<2x32xf32> -> vector<2x32xf32>
    %256 = arith.addf %221, %255 : vector<2x32xf32>
    %257 = vector.broadcast %224 : vector<1x32xf32> to vector<2x32xf32>
    %258 = arith.addf %256, %257 : vector<2x32xf32>
    %c234 = arith.constant 234 : index
    %c0_110 = arith.constant 0 : index
    %259 = vector.load %arg4[%c234, %c0_110] : memref<240x256xf32, #tpu.memory_space<vmem>>, vector<1x32xf32>
    %c234_111 = arith.constant 234 : index
    %c32_112 = arith.constant 32 : index
    %260 = vector.load %arg4[%c234_111, %c32_112] : memref<240x256xf32, #tpu.memory_space<vmem>>, vector<1x32xf32>
    %c234_113 = arith.constant 234 : index
    %c64_114 = arith.constant 64 : index
    %261 = vector.load %arg4[%c234_113, %c64_114] : memref<240x256xf32, #tpu.memory_space<vmem>>, vector<1x32xf32>
    %c235 = arith.constant 235 : index
    %c0_115 = arith.constant 0 : index
    %262 = vector.load %arg4[%c235, %c0_115] : memref<240x256xf32, #tpu.memory_space<vmem>>, vector<1x64xf32>
    %c136_116 = arith.constant 136 : index
    %c64_117 = arith.constant 64 : index
    %263 = vector.load %arg4[%c136_116, %c64_117] : memref<240x256xf32, #tpu.memory_space<vmem>>, vector<32x64xf32>
    %c168_118 = arith.constant 168 : index
    %c32_119 = arith.constant 32 : index
    %264 = vector.load %arg4[%c168_118, %c32_119] : memref<240x256xf32, #tpu.memory_space<vmem>>, vector<64x32xf32>
    %cst_120 = arith.constant dense<0.000000e+00> : vector<2xf32>
    %265 = vector.multi_reduction <add>, %258, %cst_120 [1] : vector<2x32xf32> to vector<2xf32>
    %266 = vector.shape_cast %265 : vector<2xf32> to vector<2x1xf32>
    %cst_121 = arith.constant 3.200000e+01 : f32
    %267 = vector.broadcast %cst_121 : f32 to vector<2x1xf32>
    %268 = arith.divf %266, %267 : vector<2x1xf32>
    %269 = arith.mulf %258, %258 : vector<2x32xf32>
    %cst_122 = arith.constant dense<0.000000e+00> : vector<2xf32>
    %270 = vector.multi_reduction <add>, %269, %cst_122 [1] : vector<2x32xf32> to vector<2xf32>
    %271 = vector.shape_cast %270 : vector<2xf32> to vector<2x1xf32>
    %cst_123 = arith.constant 3.200000e+01 : f32
    %272 = vector.broadcast %cst_123 : f32 to vector<2x1xf32>
    %273 = arith.divf %271, %272 : vector<2x1xf32>
    %274 = arith.mulf %268, %268 : vector<2x1xf32>
    %275 = arith.subf %273, %274 : vector<2x1xf32>
    %276 = vector.broadcast %268 : vector<2x1xf32> to vector<2x32xf32>
    %277 = arith.subf %258, %276 : vector<2x32xf32>
    %cst_124 = arith.constant 9.99999974E-6 : f32
    %278 = vector.broadcast %cst_124 : f32 to vector<2x1xf32>
    %279 = arith.addf %275, %278 : vector<2x1xf32>
    %280 = math.rsqrt %279 : vector<2x1xf32>
    %281 = vector.broadcast %280 : vector<2x1xf32> to vector<2x32xf32>
    %282 = arith.mulf %277, %281 : vector<2x32xf32>
    %283 = vector.broadcast %259 : vector<1x32xf32> to vector<2x32xf32>
    %284 = arith.mulf %282, %283 : vector<2x32xf32>
    %285 = vector.broadcast %260 : vector<1x32xf32> to vector<2x32xf32>
    %286 = arith.addf %284, %285 : vector<2x32xf32>
    %cst_125 = arith.constant dense<0.000000e+00> : vector<2x64xf32>
    %287 = tpu.matmul %286, %263, %cst_125 {dimension_numbers = #tpu.dot_dimension_numbers<[1], [0], [0], [1], [0, 0, 1, 1], [], []>} : vector<2x32xf32>, vector<32x64xf32>, vector<2x64xf32> -> vector<2x64xf32>
    %288 = vector.broadcast %262 : vector<1x64xf32> to vector<2x64xf32>
    %289 = arith.addf %287, %288 : vector<2x64xf32>
    %cst_126 = arith.constant 0.000000e+00 : f32
    %290 = vector.broadcast %cst_126 : f32 to vector<2x64xf32>
    %291 = arith.maximumf %289, %290 : vector<2x64xf32>
    %cst_127 = arith.constant dense<0.000000e+00> : vector<2x32xf32>
    %292 = tpu.matmul %291, %264, %cst_127 {dimension_numbers = #tpu.dot_dimension_numbers<[1], [0], [0], [1], [0, 0, 1, 1], [], []>} : vector<2x64xf32>, vector<64x32xf32>, vector<2x32xf32> -> vector<2x32xf32>
    %293 = arith.addf %258, %292 : vector<2x32xf32>
    %294 = vector.broadcast %261 : vector<1x32xf32> to vector<2x32xf32>
    %295 = arith.addf %293, %294 : vector<2x32xf32>
    %c236 = arith.constant 236 : index
    %c0_128 = arith.constant 0 : index
    %296 = vector.load %arg4[%c236, %c0_128] : memref<240x256xf32, #tpu.memory_space<vmem>>, vector<1x32xf32>
    %c236_129 = arith.constant 236 : index
    %c32_130 = arith.constant 32 : index
    %297 = vector.load %arg4[%c236_129, %c32_130] : memref<240x256xf32, #tpu.memory_space<vmem>>, vector<1x32xf32>
    %c236_131 = arith.constant 236 : index
    %c64_132 = arith.constant 64 : index
    %298 = vector.load %arg4[%c236_131, %c64_132] : memref<240x256xf32, #tpu.memory_space<vmem>>, vector<1x32xf32>
    %c237 = arith.constant 237 : index
    %c0_133 = arith.constant 0 : index
    %299 = vector.load %arg4[%c237, %c0_133] : memref<240x256xf32, #tpu.memory_space<vmem>>, vector<1x64xf32>
    %c136_134 = arith.constant 136 : index
    %c128 = arith.constant 128 : index
    %300 = vector.load %arg4[%c136_134, %c128] : memref<240x256xf32, #tpu.memory_space<vmem>>, vector<32x64xf32>
    %c168_135 = arith.constant 168 : index
    %c64_136 = arith.constant 64 : index
    %301 = vector.load %arg4[%c168_135, %c64_136] : memref<240x256xf32, #tpu.memory_space<vmem>>, vector<64x32xf32>
    %cst_137 = arith.constant dense<0.000000e+00> : vector<2xf32>
    %302 = vector.multi_reduction <add>, %295, %cst_137 [1] : vector<2x32xf32> to vector<2xf32>
    %303 = vector.shape_cast %302 : vector<2xf32> to vector<2x1xf32>
    %cst_138 = arith.constant 3.200000e+01 : f32
    %304 = vector.broadcast %cst_138 : f32 to vector<2x1xf32>
    %305 = arith.divf %303, %304 : vector<2x1xf32>
    %306 = arith.mulf %295, %295 : vector<2x32xf32>
    %cst_139 = arith.constant dense<0.000000e+00> : vector<2xf32>
    %307 = vector.multi_reduction <add>, %306, %cst_139 [1] : vector<2x32xf32> to vector<2xf32>
    %308 = vector.shape_cast %307 : vector<2xf32> to vector<2x1xf32>
    %cst_140 = arith.constant 3.200000e+01 : f32
    %309 = vector.broadcast %cst_140 : f32 to vector<2x1xf32>
    %310 = arith.divf %308, %309 : vector<2x1xf32>
    %311 = arith.mulf %305, %305 : vector<2x1xf32>
    %312 = arith.subf %310, %311 : vector<2x1xf32>
    %313 = vector.broadcast %305 : vector<2x1xf32> to vector<2x32xf32>
    %314 = arith.subf %295, %313 : vector<2x32xf32>
    %cst_141 = arith.constant 9.99999974E-6 : f32
    %315 = vector.broadcast %cst_141 : f32 to vector<2x1xf32>
    %316 = arith.addf %312, %315 : vector<2x1xf32>
    %317 = math.rsqrt %316 : vector<2x1xf32>
    %318 = vector.broadcast %317 : vector<2x1xf32> to vector<2x32xf32>
    %319 = arith.mulf %314, %318 : vector<2x32xf32>
    %320 = vector.broadcast %296 : vector<1x32xf32> to vector<2x32xf32>
    %321 = arith.mulf %319, %320 : vector<2x32xf32>
    %322 = vector.broadcast %297 : vector<1x32xf32> to vector<2x32xf32>
    %323 = arith.addf %321, %322 : vector<2x32xf32>
    %cst_142 = arith.constant dense<0.000000e+00> : vector<2x64xf32>
    %324 = tpu.matmul %323, %300, %cst_142 {dimension_numbers = #tpu.dot_dimension_numbers<[1], [0], [0], [1], [0, 0, 1, 1], [], []>} : vector<2x32xf32>, vector<32x64xf32>, vector<2x64xf32> -> vector<2x64xf32>
    %325 = vector.broadcast %299 : vector<1x64xf32> to vector<2x64xf32>
    %326 = arith.addf %324, %325 : vector<2x64xf32>
    %cst_143 = arith.constant 0.000000e+00 : f32
    %327 = vector.broadcast %cst_143 : f32 to vector<2x64xf32>
    %328 = arith.maximumf %326, %327 : vector<2x64xf32>
    %cst_144 = arith.constant dense<0.000000e+00> : vector<2x32xf32>
    %329 = tpu.matmul %328, %301, %cst_144 {dimension_numbers = #tpu.dot_dimension_numbers<[1], [0], [0], [1], [0, 0, 1, 1], [], []>} : vector<2x64xf32>, vector<64x32xf32>, vector<2x32xf32> -> vector<2x32xf32>
    %330 = arith.addf %295, %329 : vector<2x32xf32>
    %331 = vector.broadcast %298 : vector<1x32xf32> to vector<2x32xf32>
    %332 = arith.addf %330, %331 : vector<2x32xf32>
    %c238 = arith.constant 238 : index
    %c0_145 = arith.constant 0 : index
    %333 = vector.load %arg4[%c238, %c0_145] : memref<240x256xf32, #tpu.memory_space<vmem>>, vector<1x32xf32>
    %c238_146 = arith.constant 238 : index
    %c32_147 = arith.constant 32 : index
    %334 = vector.load %arg4[%c238_146, %c32_147] : memref<240x256xf32, #tpu.memory_space<vmem>>, vector<1x32xf32>
    %c238_148 = arith.constant 238 : index
    %c64_149 = arith.constant 64 : index
    %335 = vector.load %arg4[%c238_148, %c64_149] : memref<240x256xf32, #tpu.memory_space<vmem>>, vector<1x32xf32>
    %c239 = arith.constant 239 : index
    %c0_150 = arith.constant 0 : index
    %336 = vector.load %arg4[%c239, %c0_150] : memref<240x256xf32, #tpu.memory_space<vmem>>, vector<1x64xf32>
    %c136_151 = arith.constant 136 : index
    %c192 = arith.constant 192 : index
    %337 = vector.load %arg4[%c136_151, %c192] : memref<240x256xf32, #tpu.memory_space<vmem>>, vector<32x64xf32>
    %c168_152 = arith.constant 168 : index
    %c96_153 = arith.constant 96 : index
    %338 = vector.load %arg4[%c168_152, %c96_153] : memref<240x256xf32, #tpu.memory_space<vmem>>, vector<64x32xf32>
    %cst_154 = arith.constant dense<0.000000e+00> : vector<2xf32>
    %339 = vector.multi_reduction <add>, %332, %cst_154 [1] : vector<2x32xf32> to vector<2xf32>
    %340 = vector.shape_cast %339 : vector<2xf32> to vector<2x1xf32>
    %cst_155 = arith.constant 3.200000e+01 : f32
    %341 = vector.broadcast %cst_155 : f32 to vector<2x1xf32>
    %342 = arith.divf %340, %341 : vector<2x1xf32>
    %343 = arith.mulf %332, %332 : vector<2x32xf32>
    %cst_156 = arith.constant dense<0.000000e+00> : vector<2xf32>
    %344 = vector.multi_reduction <add>, %343, %cst_156 [1] : vector<2x32xf32> to vector<2xf32>
    %345 = vector.shape_cast %344 : vector<2xf32> to vector<2x1xf32>
    %cst_157 = arith.constant 3.200000e+01 : f32
    %346 = vector.broadcast %cst_157 : f32 to vector<2x1xf32>
    %347 = arith.divf %345, %346 : vector<2x1xf32>
    %348 = arith.mulf %342, %342 : vector<2x1xf32>
    %349 = arith.subf %347, %348 : vector<2x1xf32>
    %350 = vector.broadcast %342 : vector<2x1xf32> to vector<2x32xf32>
    %351 = arith.subf %332, %350 : vector<2x32xf32>
    %cst_158 = arith.constant 9.99999974E-6 : f32
    %352 = vector.broadcast %cst_158 : f32 to vector<2x1xf32>
    %353 = arith.addf %349, %352 : vector<2x1xf32>
    %354 = math.rsqrt %353 : vector<2x1xf32>
    %355 = vector.broadcast %354 : vector<2x1xf32> to vector<2x32xf32>
    %356 = arith.mulf %351, %355 : vector<2x32xf32>
    %357 = vector.broadcast %333 : vector<1x32xf32> to vector<2x32xf32>
    %358 = arith.mulf %356, %357 : vector<2x32xf32>
    %359 = vector.broadcast %334 : vector<1x32xf32> to vector<2x32xf32>
    %360 = arith.addf %358, %359 : vector<2x32xf32>
    %cst_159 = arith.constant dense<0.000000e+00> : vector<2x64xf32>
    %361 = tpu.matmul %360, %337, %cst_159 {dimension_numbers = #tpu.dot_dimension_numbers<[1], [0], [0], [1], [0, 0, 1, 1], [], []>} : vector<2x32xf32>, vector<32x64xf32>, vector<2x64xf32> -> vector<2x64xf32>
    %362 = vector.broadcast %336 : vector<1x64xf32> to vector<2x64xf32>
    %363 = arith.addf %361, %362 : vector<2x64xf32>
    %cst_160 = arith.constant 0.000000e+00 : f32
    %364 = vector.broadcast %cst_160 : f32 to vector<2x64xf32>
    %365 = arith.maximumf %363, %364 : vector<2x64xf32>
    %cst_161 = arith.constant dense<0.000000e+00> : vector<2x32xf32>
    %366 = tpu.matmul %365, %338, %cst_161 {dimension_numbers = #tpu.dot_dimension_numbers<[1], [0], [0], [1], [0, 0, 1, 1], [], []>} : vector<2x64xf32>, vector<64x32xf32>, vector<2x32xf32> -> vector<2x32xf32>
    %367 = arith.addf %332, %366 : vector<2x32xf32>
    %368 = vector.broadcast %335 : vector<1x32xf32> to vector<2x32xf32>
    %369 = arith.addf %367, %368 : vector<2x32xf32>
    %c0_162 = arith.constant 0 : index
    %c0_163 = arith.constant 0 : index
    %370 = vector.load %arg5[%c0_162, %c0_163] : memref<2x32xf32, #tpu.memory_space<vmem>>, vector<2x32xf32>
    tpu.vector_store %arg5[%c0_162, %c0_163], %369 {strides = array<i32>} : memref<2x32xf32, #tpu.memory_space<vmem>>, vector<2x32xf32>,
    return
  }
}

</mosaic_0001>

<bundles_post_ra>
// kernel: ohenet_forward_pallas.1
= control target key start
LH: loop header
LB: loop body
LE: loop exit
PB: predicated region body
PF: predicated region fallthrough
CT: control target
= control target key end

     0   :  { %10 = vsyncpa [#allocation3], 0  ;;  %s8973_s0 = inlined_call_operand.vmem [shape: f32[12,629], index: 0, kind: input, shape index: {}]   ;;  %s8974_s1 = inlined_call_operand.hbm [shape: bf16[286,256], index: 1, kind: input, shape index: {}]   ;;  %s8975_s2 = inlined_call_operand.vmem [shape: bf16[4,256,128], index: 2, kind: input, shape index: {}]   ;;  %s8976_s3 = inlined_call_operand.hbm [shape: bf16[4,128,256], index: 3, kind: input, shape index: {}]   ;;  %s8977_s4 = inlined_call_operand.hbm [shape: f32[240,256], index: 4, kind: input, shape index: {}]   ;;  %s8978_s5 = inlined_call_operand.hbm [shape: f32[2,32], index: 5, kind: output, shape index: {}]  }
   0x1   :  { %11 = vsyncpa [#allocation6], 0 }
   0x2   :  { %12 = vsyncpa [#allocation4], 0  ;;  %s6960_s18 = smov [#allocation5]   ;;  %s6961_s20 = smov [#allocation2]  }
   0x3   :  { %s34_s19 = sshll.u32 %s6960_s18, 4  ;;  %s20_s21 = sshll.u32 %s6961_s20, 4  ;;  %s35_s19 = int_to_ptr.vmem [resolvable:$true] %s34_s19  ;;  %s21_s21 = int_to_ptr.vmem [resolvable:$true] %s20_s21 }
   0x4   :  { %s6882_s22 = scalar_lea.vmem %s35_s19, 8192  ;;  %p6887_p1 = scmp.lt.s32.totalorder %s35_s19, %s35_s19 }
   0x5   :  { %p6883_p0 = scmp.ne.s32.totalorder %s35_s19, %s6882_s22  ;;  %p6888_p2 = scmp.lt.s32.totalorder %s6882_s22, %s6882_s22 }
   0x7   :  { %p6889_p3 = por %p6888_p2, %p6887_p1 }
   0x9   :  { %p6890_p4 = pnand %p6889_p3, %p6883_p0 }
   0xb   :  { %6893 = shalt.err (!%p6890_p4)
}
   0xc   :  { %s6962_s23 = smov 128   ;;  %s6963_s24 = smov 8  }
   0xd   :  { %40 = dma.hbm_to_vmem [thread:$0]  %s8976_s3, 8192, %s35_s19, [#allocation6], %s6962_s23, %s6962_s23, %s6963_s24  }
   0xe   :  { %s6902_s27 = scalar_lea.vmem %s21_s21, 4608  ;;  %p6907_p6 = scmp.lt.s32.totalorder %s21_s21, %s21_s21 }
   0xf   :  { %p6903_p5 = scmp.ne.s32.totalorder %s21_s21, %s6902_s27  ;;  %p6908_p7 = scmp.lt.s32.totalorder %s6902_s27, %s6902_s27 }
  0x11   :  { %p6909_p8 = por %p6908_p7, %p6907_p6 }
  0x13   :  { %p6910_p9 = pnand %p6909_p8, %p6903_p5 }
  0x15   :  { %6913 = shalt.err (!%p6910_p9)
}
  0x16   :  { %26 = dma.hbm_to_vmem [thread:$0]  %s8974_s1, 4608, %s21_s21, [#allocation3], %s6962_s23, %s6962_s23, %s6963_s24  }
  0x17   :  { %s6964_s30 = smov [#allocation7]  }
  0x18   :  { %s46_s6 = sshll.u32 %s6964_s30, 4  ;;  %s47_s6 = int_to_ptr.vmem [resolvable:$true] %s46_s6 }
  0x19   :  { %s6922_s7 = scalar_lea.vmem %s47_s6, 7680  ;;  %p6927_p11 = scmp.lt.s32.totalorder %s47_s6, %s47_s6 }
  0x1a   :  { %p6923_p10 = scmp.ne.s32.totalorder %s47_s6, %s6922_s7  ;;  %p6928_p12 = scmp.lt.s32.totalorder %s6922_s7, %s6922_s7 }
  0x1c   :  { %p6929_p13 = por %p6928_p12, %p6927_p11 }
  0x1e   :  { %p6930_p0 = pnand %p6929_p13, %p6923_p10 }
  0x20   :  { %6933 = shalt.err (!%p6930_p0)
}
  0x21   :  { %s6965_s3 = smov 256   ;;  %s6966_s8 = smov 16  }
  0x22   :  { %52 = dma.hbm_to_vmem [thread:$0]  %s8977_s4, 7680, %s47_s6, [#allocation6], %s6965_s3, %s6965_s3, %s6966_s8  }
  0x23   :  { %6954 = dma.done.wait [#allocation3], 4608  }
  0x24   :  { %6955 = vsyncadd [#allocation3], 4294962688 }
  0x25   :  { %6956 = dma.done.wait [#allocation6], 15872  }
  0x26   :  { %6957 = vsyncadd [#allocation6], 4294951424  ;;  %v8979_v0 = vmov 0.0   ;;  %v6968_v1 = vmov 12   ;;  %vm98_vm0 = vcmask 1043456   ;;  %v67_v4 = vld [vmem:[%s8973_s0 + $0x8] sm:$0xff] }
  0x27   :  { %178 = vmatprep.mubr.f32.mxu0 %v8979_v0  ;;  %184 = vmatprep.mubr.f32.mxu1 %v8979_v0  ;;  %v72_v2 = vld [vmem:[%s8973_s0 + $0x30] sm:$0xf]  ;;  %v71_v3 = vld [vmem:[%s8973_s0 + $0x28] sm:$0xf]  ;;  %v66_v5 = vld [vmem:[%s8973_s0] sm:$0xff]  ;;  %vm91_vm1 = vcmask 97280  }
  0x28   :  { %6584 = vset.pattern.permute.xlu0 %v6968_v1  ;;  %6585 = vset.pattern.permute.xlu1 %v6968_v1  ;;  %v7041_v6 = vld [vmem:[#allocation7] sm:$0xff]  ;;  %v7043_v7 = vld [vmem:[#allocation7 + $0x10] sm:$0xff]  ;;  %v75_v8 = vld [vmem:[%s8973_s0 + $0x48] sm:$0xf]  ;;  %vm6969_vm2 = vmmov 0   ;;  %s6971_s29 = smov 114  }
  0x29   :  { %5786 = vmatprep.subr.msk.mxu0 %vm98_vm0, %v72_v2  ;;  %6556 = vmatprep.subr.msk.mxu1 %vm98_vm0, %v72_v2  ;;  %v70_v9 = vld [vmem:[%s8973_s0 + $0x20] sm:$0xff]  ;;  %v73_v12 = vld [vmem:[%s8973_s0 + $0x38] sm:$0xf]  ;;  %v68_v14 = vld [vmem:[%s8973_s0 + $0x10] sm:$0xff]  ;;  %s6972_s30 = smov 127   ;;  %s6973_s6 = smov 110  }
  0x2a   :  { %5787 = vmatpush1.msk.msra.mxu0 %vm98_vm0, %v71_v3  ;;  %6558 = vmatpush1.msk.msra.mxu1 %vm98_vm0, %v71_v3  ;;  %v7051_v10 = vld [vmem:[#allocation7 + $0x20] sm:$0xff]  ;;  %v69_v13 = vld [vmem:[%s8973_s0 + $0x18] sm:$0xff]  ;;  %s6974_s7 = smov 66   ;;  %s6975_s3 = smov 109   ;;  %vm426_vm3 = vcmask 1039360   ;;  %vm454_vm4 = vcmask 195584  }
  0x2b   :  { %144 = vmatprep.subr.mxu0 %v67_v4  ;;  %6557 = vmatprep.subr.mxu1 %v67_v4  ;;  %v74_v11 = vld [vmem:[%s8973_s0 + $0x40] sm:$0xf]  ;;  %s6970_s0 = smov 90   ;;  %s6976_s8 = smov 42   ;;  %vm1001_vm5 = vcmask 900096   ;;  %vm1332_vm6 = vcmask 891904  }
  0x2c   :  { %145 = vmatpush1.msra.mxu0 %v66_v5  ;;  %6559 = vmatpush1.msra.mxu1 %v66_v5  ;;  %vm1908_vm7 = vcmask 1046528   ;;  %vm1901_vm8 = vcmask 244736   ;;  %s6979_s9 = smov 60   ;;  %vm2140_vm9 = vcmask 490496   ;;  %vm4905_vm10 = vcmask 261120   ;;  %s6981_s20 = smov 64  }
  0x2d   :  { %5788 = vmatmul.mubr.msk.f32.vlgmr.msra.gmra.mxu0 %vm91_vm1, %v7041_v6  ;;  %5789 = vmatmul.mubr.msk.f32.vlgmr.msra.gmra.mxu1 %vm91_vm1, %v7043_v7  ;;  %vm4936_vm11 = vcmask 1040384   ;;  %vm4952_vm12 = vcmask 254976   ;;  %vm5049_vm13 = vcmask 523264   ;;  %s6982_s21 = smov 32   ;;  %s6983_s22 = smov [#allocation8]  }
  0x2e   :  { %6363 = vmatprep.subr.mxu0 %v8979_v0  ;;  %190 = vmatprep.mubr.f32.mxu1 %v8979_v0  ;;  %s5776_s23 = sshll.u32 %s6983_s22, 4  ;;  %s5777_s23 = int_to_ptr.vmem [resolvable:$true] %s5776_s23 }
  0x2f   :  { %6364 = vmatpush3.msk.msra.mxu0 %vm98_vm0, %v75_v8  ;;  %6367 = vmatprep.mubr.msk.f32.mxu0 %vm6969_vm2, %v8979_v0  ;;  %s6934_s24 = scalar_lea.vmem %s5777_s23, 32  ;;  %p6939_p2 = scmp.lt.s32.totalorder %s5777_s23, %s5777_s23 }
  0x30   :  { %6365 = vmatprep.subr.mxu0 %v8979_v0  ;;  %5791 = vmatprep.subr.msk.mxu1 %vm98_vm0, %v74_v11  ;;  %p6935_p1 = scmp.ne.s32.totalorder %s5777_s23, %s6934_s24  ;;  %p6940_p3 = scmp.lt.s32.totalorder %s6934_s24, %s6934_s24 }
  0x31   :  { %6366 = vmatpush3.msra.mxu0 %v70_v9  ;;  %5790 = vmatmul.mubr.msk.f32.gmra.mxu1 %vm91_vm1, %v7051_v10 }
  0x32   :  { %6368 = vmatmul.mubr.msk.f32.vlgmr.msra.gmra.mxu0 %vm91_vm1, %v7041_v6  ;;  %5792 = vmatpush1.msk.msra.mxu1 %vm98_vm0, %v73_v12  ;;  %v6977_v12 = vmov 13   ;;  %p6941_p4 = por %p6940_p3, %p6939_p2 }
  0x33   :  { %227 = vmatprep.subr.mxu1 %v69_v13  ;;  %261 = vmatprep.mubr.f32.mxu1 %v8979_v0 }
  0x34   :  { %228 = vmatpush1.msra.mxu1 %v68_v14  ;;  %6370 = vmatprep.mubr.msk.f32.mxu0 %vm6969_vm2, %v8979_v0  ;;  %p6942_p5 = pnand %p6941_p4, %p6935_p1 }
  0x35   :  { %5793 = vmatmul.mubr.msk.f32.vlgmr.msra.gmra.mxu1 %vm91_vm1, %v7041_v6  ;;  %88 = vperm.xlu0 %6584, %v7051_v10  }
  0x36   :  { %6371 = vmatmul.mubr.msk.f32.gmra.mxu0 %vm91_vm1, %v7043_v7  ;;  %267 = vmatprep.mubr.f32.mxu1 %v8979_v0 }
  0x37   :  { %6373 = vmatprep.mubr.msk.f32.mxu0 %vm6969_vm2, %v8979_v0  ;;  %78 = vperm.xlu1 %6585, %v7041_v6  }
  0x39   :  { %5794 = vmatmul.mubr.msk.f32.gmra.mxu1 %vm91_vm1, %v7043_v7  ;;  %83 = vperm.xlu0 %6584, %v7043_v7  }
  0x3a   :  { %6374 = vmatmul.mubr.msk.f32.gmra.mxu0 %vm91_vm1, %v7051_v10  ;;  %273 = vmatprep.mubr.f32.mxu1 %v8979_v0 }
  0x3b   :  { %377 = vrot.lane.b32.xlu1 %v7043_v7, %s6970_s0  ;;  %608 = vmatprep.mubr.f32.mxu0 %v8979_v0 }
  0x3c   :  { %6587 = vset.pattern.permute.xlu1 %v6977_v12 }
  0x3d   :  { %5795 = vmatmul.mubr.msk.f32.gmra.mxu1 %vm91_vm1, %v7051_v10  ;;  %375 = vrot.lane.b32.xlu0 %v7041_v6, %s6970_s0 }
  0x3e   :  { %525 = vmatprep.mubr.f32.mxu1 %v8979_v0  ;;  %6586 = vset.pattern.permute.xlu0 %v6977_v12 }
  0x3f   :  { %707 = vrot.lane.b32.xlu1 %v7041_v6, %s6971_s29 }
  0x41   :  { %379 = vrot.lane.b32.xlu0 %v7051_v10, %s6970_s0 }
  0x43   :  { %711 = vrot.lane.b32.xlu1 %v7051_v10, %s6971_s29 }
  0x45   :  { %709 = vrot.lane.b32.xlu0 %v7043_v7, %s6971_s29 }
  0xb0   :  { %v7109_v15 = vpop.permute.xlu0 %88 }
  0xb2   :  { %v79_v17 = vpop.permute.xlu1 %78 }
  0xb4   :  { %v84_v16 = vpop.permute.xlu0 %83 }
  0xb6   :  { %v7228_v4 = vpop.permute.xlu1 %377 }
  0xb8   :  { %v7226_v3 = vpop.permute.xlu0 %375 }
  0xba   :  { %v7233_v8 = vpop.permute.xlu1 %707 }
  0xbc   :  { %v7231_v5 = vpop.permute.xlu0 %379 }
  0xbe   :  { %v7237_v11 = vpop.permute.xlu1 %711 }
  0xc0   :  { %v7235_v9 = vpop.permute.xlu0 %709 }
  0xed   :  { %v186_v18 = vpop.f32.mrf.mxu1  ;;  %v180_v19 = vpop.f32.mrf.mxu0 }
  0xee   :  { %v187_v20 = vadd.f32 %v186_v18, %v84_v16  ;;  %v181_v21 = vadd.f32 %v180_v19, %v79_v17 }
  0xef   :  { %v182_v22 = vpop.f32.mrf.mxu0  ;;  %v188_v23 = vpop.f32.mrf.mxu1 }
  0xf0   :  { %v7111_v24 = vmax.f32 %v187_v20, 0.0  ;;  %v7113_v25 = vmax.f32 %v181_v21, 0.0  ;;  %v183_v26 = vadd.f32 %v182_v22, %v79_v17  ;;  %v189_v27 = vadd.f32 %v188_v23, %v84_v16 }
  0xf1   :  { %v192_v28 = vpop.f32.mrf.mxu1 }
  0xf2   :  { %v346_v29 = vpop.f32.mrf.mxu0  ;;  %406 = vrot.lane.b32.xlu0 %v7111_v24, %s6972_s30  ;;  %396 = vrot.lane.b32.xlu1 %v7113_v25, %s6972_s30  ;;  %v7119_v31 = vmax.f32 %v183_v26, 0.0  ;;  %v7121_v32 = vmax.f32 %v189_v27, 0.0  ;;  %v193_v33 = vadd.f32 %v192_v28, %v7109_v15 }
  0xf3   :  { %v194_v30 = vpop.f32.mrf.mxu1  ;;  %v347_v39 = vadd.f32 %v346_v29, %v79_v17 }
  0xf4   :  { %v195_v34 = vadd.f32 %v194_v30, %v7109_v15  ;;  %v6369_v35 = vpop.f32.mrf.mxu0  ;;  %v7129_v38 = vmax.f32 %v193_v33, 0.0 }
  0xf5   :  { %v263_v36 = vpop.f32.mrf.mxu1  ;;  %v7137_v45 = vmax.f32 %v347_v39, 0.0 }
  0xf6   :  { %v351_v37 = vpop.f32.mrf.mxu0  ;;  %408 = vrot.lane.b32.xlu0 %v7121_v32, %s6972_s30  ;;  %398 = vrot.lane.b32.xlu1 %v7119_v31, %s6972_s30  ;;  %v7131_v40 = vmax.f32 %v195_v34, 0.0  ;;  %v264_v41 = vadd.f32 %v263_v36, %v79_v17 }
  0xf7   :  { %v265_v43 = vpop.f32.mrf.mxu1  ;;  %v352_v50 = vadd.f32 %v351_v37, %v84_v16 }
  0xf8   :  { %v6372_v42 = vpop.f32.mrf.mxu0  ;;  %v7139_v46 = vmax.f32 %v264_v41, 0.0  ;;  %v266_v47 = vadd.f32 %v265_v43, %v79_v17 }
  0xf9   :  { %v269_v49 = vpop.f32.mrf.mxu1  ;;  %v7152_v54 = vmax.f32 %v352_v50, 0.0 }
  0xfa   :  { %v356_v44 = vpop.f32.mrf.mxu0  ;;  %993 = vrot.lane.b32.xlu0 %v7131_v40, %s6973_s6  ;;  %416 = vrot.lane.b32.xlu1 %v7129_v38, %s6972_s30  ;;  %v7145_v51 = vmax.f32 %v266_v47, 0.0  ;;  %v270_v55 = vadd.f32 %v269_v49, %v84_v16 }
  0xfb   :  { %v357_v52 = vadd.f32 %v356_v44, %v7109_v15  ;;  %v271_v53 = vpop.f32.mrf.mxu1 }
  0xfc   :  { %v6375_v48 = vpop.f32.mrf.mxu0  ;;  %v272_v57 = vadd.f32 %v271_v53, %v84_v16  ;;  %v7160_v59 = vmax.f32 %v270_v55, 0.0 }
  0xfd   :  { %v7154_v56 = vmax.f32 %v357_v52, 0.0  ;;  %v275_v58 = vpop.f32.mrf.mxu1 }
  0xfe   :  { %400 = vrot.lane.b32.xlu0 %v7139_v46, %s6972_s30  ;;  %404 = vrot.lane.b32.xlu1 %v7137_v45, %s6972_s30  ;;  %v7162_v60 = vmax.f32 %v272_v57, 0.0  ;;  %v276_v61 = vadd.f32 %v275_v58, %v7109_v15 }
  0xff   :  { %v277_v63 = vpop.f32.mrf.mxu1 }
 0x100   :  { %v7169_v62 = vmax.f32 %v276_v61, 0.0  ;;  %v278_v1 = vadd.f32 %v277_v63, %v7109_v15 }
 0x102   :  { %402 = vrot.lane.b32.xlu0 %v7145_v51, %s6972_s30  ;;  %418 = vrot.lane.b32.xlu1 %v7131_v40, %s6972_s30  ;;  %v7184_v2 = vmax.f32 %v278_v1, 0.0 }
 0x106   :  { %424 = vrot.lane.b32.xlu0 %v7154_v56, %s6972_s30  ;;  %414 = vrot.lane.b32.xlu1 %v7152_v54, %s6972_s30 }
 0x10a   :  { %412 = vrot.lane.b32.xlu0 %v7162_v60, %s6972_s30  ;;  %410 = vrot.lane.b32.xlu1 %v7160_v59, %s6972_s30 }
 0x10e   :  { %420 = vrot.lane.b32.xlu0 %v7169_v62, %s6972_s30  ;;  %983 = vrot.lane.b32.xlu1 %v7121_v32, %s6973_s6 }
 0x112   :  { %991 = vrot.lane.b32.xlu0 %v7129_v38, %s6973_s6  ;;  %981 = vrot.lane.b32.xlu1 %v7111_v24, %s6973_s6 }
 0x116   :  { %985 = vrot.lane.b32.xlu0 %v7160_v59, %s6973_s6  ;;  %995 = vrot.lane.b32.xlu1 %v7169_v62, %s6973_s6 }
 0x11a   :  { %973 = vrot.lane.b32.xlu0 %v7119_v31, %s6973_s6  ;;  %422 = vrot.lane.b32.xlu1 %v7184_v2, %s6972_s30 }
 0x11e   :  { %971 = vrot.lane.b32.xlu0 %v7113_v25, %s6973_s6  ;;  %975 = vrot.lane.b32.xlu1 %v7139_v46, %s6973_s6 }
 0x122   :  { %967 = vrot.lane.b32.xlu0 %v7043_v7, %s6974_s7  ;;  %965 = vrot.lane.b32.xlu1 %v7041_v6, %s6974_s7 }
 0x126   :  { %989 = vrot.lane.b32.xlu0 %v7152_v54, %s6973_s6  ;;  %999 = vrot.lane.b32.xlu1 %v7154_v56, %s6973_s6 }
 0x12a   :  { %979 = vrot.lane.b32.xlu0 %v7137_v45, %s6973_s6  ;;  %987 = vrot.lane.b32.xlu1 %v7162_v60, %s6973_s6 }
 0x12e   :  { %1324 = vrot.lane.b32.xlu0 %v7131_v40, %s6975_s3  ;;  %977 = vrot.lane.b32.xlu1 %v7145_v51, %s6973_s6 }
 0x132   :  { %1322 = vrot.lane.b32.xlu0 %v7129_v38, %s6975_s3  ;;  %969 = vrot.lane.b32.xlu1 %v7051_v10, %s6974_s7 }
 0x136   :  { %1316 = vrot.lane.b32.xlu0 %v7160_v59, %s6975_s3  ;;  %1326 = vrot.lane.b32.xlu1 %v7169_v62, %s6975_s3 }
 0x13a   :  { %997 = vrot.lane.b32.xlu0 %v7184_v2, %s6973_s6  ;;  %1314 = vrot.lane.b32.xlu1 %v7121_v32, %s6975_s3 }
 0x13e   :  { %1304 = vrot.lane.b32.xlu0 %v7119_v31, %s6975_s3  ;;  %1312 = vrot.lane.b32.xlu1 %v7111_v24, %s6975_s3 }
 0x142   :  { %1302 = vrot.lane.b32.xlu0 %v7113_v25, %s6975_s3  ;;  %1330 = vrot.lane.b32.xlu1 %v7154_v56, %s6975_s3 }
 0x146   :  { %1320 = vrot.lane.b32.xlu0 %v7152_v54, %s6975_s3  ;;  %1306 = vrot.lane.b32.xlu1 %v7139_v46, %s6975_s3 }
 0x14a   :  { %1328 = vrot.lane.b32.xlu0 %v7184_v2, %s6975_s3  ;;  %1318 = vrot.lane.b32.xlu1 %v7162_v60, %s6975_s3 }
 0x14e   :  { %1308 = vrot.lane.b32.xlu0 %v7145_v51, %s6975_s3  ;;  %1296 = vrot.lane.b32.xlu1 %v7041_v6, %s6976_s8 }
 0x152   :  { %1310 = vrot.lane.b32.xlu1 %v7137_v45, %s6975_s3  ;;  %1298 = vrot.lane.b32.xlu0 %v7043_v7, %s6976_s8 }
 0x156   :  { %1300 = vrot.lane.b32.xlu1 %v7051_v10, %s6976_s8  ;;  %1628 = vperm.xlu0 %6586, %v7041_v6  }
 0x15a   :  { %1632 = vperm.xlu1 %6587, %v7043_v7  }
 0x15e   :  { %1636 = vperm.xlu1 %6587, %v7051_v10  }
 0x164   :  { %v407_v13 = vpop.permute.xlu0 %406  ;;  %v397_v14 = vpop.permute.xlu1 %396 }
 0x168   :  { %v409_v15 = vpop.permute.xlu0 %408  ;;  %v399_v16 = vpop.permute.xlu1 %398 }
 0x169   :  { %v431_v35 = vsel %vm426_vm3, %v407_v13, %v409_v15  ;;  %v427_v37 = vsel %vm426_vm3, %v397_v14, %v399_v16 }
 0x16c   :  { %v7242_v17 = vpop.permute.xlu0 %993  ;;  %v417_v18 = vpop.permute.xlu1 %416 }
 0x170   :  { %v401_v19 = vpop.permute.xlu0 %400  ;;  %v405_v20 = vpop.permute.xlu1 %404 }
 0x171   :  { %v428_v36 = vsel %vm426_vm3, %v399_v16, %v401_v19 }
 0x174   :  { %v403_v21 = vpop.permute.xlu0 %402  ;;  %v419_v22 = vpop.permute.xlu1 %418 }
 0x175   :  { %v435_v10 = vsel %vm426_vm3, %v417_v18, %v419_v22  ;;  %v430_v53 = vsel %vm426_vm3, %v403_v21, %v405_v20  ;;  %v429_v55 = vsel %vm426_vm3, %v401_v19, %v403_v21 }
 0x178   :  { %v425_v23 = vpop.permute.xlu0 %424  ;;  %v415_v26 = vpop.permute.xlu1 %414 }
 0x17c   :  { %v413_v27 = vpop.permute.xlu0 %412  ;;  %v411_v28 = vpop.permute.xlu1 %410 }
 0x17d   :  { %v432_v30 = vsel %vm426_vm3, %v409_v15, %v411_v28  ;;  %v434_v48 = vsel %vm426_vm3, %v413_v27, %v415_v26  ;;  %v433_v52 = vsel %vm426_vm3, %v411_v28, %v413_v27 }
 0x180   :  { %v421_v6 = vpop.permute.xlu0 %420  ;;  %v7244_v29 = vpop.permute.xlu1 %983 }
 0x181   :  { %v436_v7 = vsel %vm426_vm3, %v419_v22, %v421_v6 }
 0x182   :  { %487 = vmatprep.subr.mxu1 %v436_v7 }
 0x183   :  { %488 = vmatpush1.msra.mxu1 %v435_v10 }
 0x184   :  { %v7249_v33 = vpop.permute.xlu0 %991  ;;  %489 = vmatprep.subr.mxu1 %v432_v30  ;;  %v7251_v34 = vpop.permute.xlu1 %981 }
 0x185   :  { %490 = vmatpush1.msra.mxu1 %v431_v35 }
 0x186   :  { %491 = vmatprep.subr.mxu1 %v428_v36 }
 0x187   :  { %492 = vmatpush1.msra.mxu1 %v427_v37 }
 0x188   :  { %v7256_v39 = vpop.permute.xlu0 %985  ;;  %5800 = vmatmul.mubr.msk.f32.vlgmr.msra.gmra.mxu1 %vm454_vm4, %v7226_v3  ;;  %6376 = vmatprep.subr.mxu1 %v8979_v0  ;;  %v7261_v41 = vpop.permute.xlu1 %995 }
 0x189   :  { %6377 = vmatpush3.msra.mxu1 %v425_v23  ;;  %531 = vmatprep.mubr.f32.mxu1 %v8979_v0 }
 0x18a   :  { %6378 = vmatprep.subr.mxu1 %v8979_v0 }
 0x18b   :  { %6379 = vmatpush3.msra.mxu1 %v415_v26 }
 0x18c   :  { %v7265_v42 = vpop.permute.xlu0 %973  ;;  %5801 = vmatmul.mubr.msk.f32.gmra.mxu1 %vm454_vm4, %v7228_v4  ;;  %6380 = vmatprep.subr.mxu1 %v8979_v0  ;;  %v423_v43 = vpop.permute.xlu1 %422 }
 0x18d   :  { %6381 = vmatpush3.msra.mxu1 %v405_v20  ;;  %v438_v44 = vsel %vm426_vm3, %v423_v43, %v425_v23  ;;  %537 = vmatprep.mubr.f32.mxu1 %v8979_v0  ;;  %v437_v47 = vsel %vm426_vm3, %v421_v6, %v423_v43  ;;  %v7487_v43 = vld [vmem:[#allocation2 + $0x64] ss:$8 sps:$4 sm:$0xff]  }
 0x18e   :  { %570 = vmatprep.subr.mxu0 %v438_v44  ;;  %828 = vmatprep.subr.mxu1 %v7184_v2  ;;  %9020 = vst [vmem:[#allocation15_spill] sm:$0xff] %v7487_v43  ;;  %v7492_v44 = vld [vmem:[#allocation2 + $0x50] ss:$8 sps:$4 sm:$0xff]  }
 0x18f   :  { %571 = vmatpush1.msra.mxu0 %v437_v47  ;;  %9021 = vst [vmem:[#allocation16_spill] sm:$0xff] %v7492_v44  ;;  %v7494_v47 = vld [vmem:[#allocation2 + $0x54] ss:$8 sps:$4 sm:$0xff]  }
 0x190   :  { %v7275_v49 = vpop.permute.xlu0 %971  ;;  %5802 = vmatmul.mubr.msk.f32.gmra.mxu1 %vm454_vm4, %v7231_v5  ;;  %572 = vmatprep.subr.mxu0 %v434_v48  ;;  %v7279_v50 = vpop.permute.xlu1 %975  ;;  %9022 = vst [vmem:[#allocation17_spill] sm:$0xff] %v7494_v47  ;;  %v7498_v48 = vld [vmem:[#allocation2 + $0x40] ss:$8 sps:$4 sm:$0xff]  }
 0x191   :  { %573 = vmatpush1.msra.mxu0 %v433_v52  ;;  %6382 = vmatprep.mubr.msk.f32.mxu1 %vm6969_vm2, %v8979_v0  ;;  %9023 = vst [vmem:[#allocation18_spill] sm:$0xff] %v7498_v48  ;;  %v7506_v52 = vld [vmem:[#allocation2 + $0x30] ss:$8 sps:$4 sm:$0xff]  }
 0x192   :  { %574 = vmatprep.subr.mxu0 %v430_v53  ;;  %9026 = vst [vmem:[#allocation21_spill] sm:$0xff] %v7506_v52  ;;  %v7510_v53 = vld [vmem:[#allocation2 + $0x24] ss:$8 sps:$4 sm:$0xff]  }
 0x193   :  { %575 = vmatpush1.msra.mxu0 %v429_v55  ;;  %9027 = vst [vmem:[#allocation22_spill] sm:$0xff] %v7510_v53  ;;  %v7512_v55 = vld [vmem:[#allocation2 + $0x20] ss:$8 sps:$4 sm:$0xff]  }
 0x194   :  { %v7286_v57 = vpop.permute.xlu0 %967  ;;  %5803 = vmatmul.mubr.msk.f32.vlgmr.msra.gmra.mxu0 %vm454_vm4, %v7226_v3  ;;  %6383 = vmatmul.mubr.msk.f32.vlgmr.msra.gmra.mxu1 %vm454_vm4, %v7226_v3  ;;  %v7292_v58 = vpop.permute.xlu1 %965  ;;  %9028 = vst [vmem:[#allocation23_spill] sm:$0xff] %v7512_v55 }
 0x195   :  { %745 = vmatprep.subr.mxu0 %v7131_v40  ;;  %829 = vmatpush1.msra.mxu1 %v7169_v62  ;;  %v1010_v40 = vsel %vm1001_vm5, %v7249_v33, %v7242_v17  ;;  %v1002_v62 = vsel %vm1001_vm5, %v7275_v49, %v7265_v42  ;;  %v7500_v49 = vld [vmem:[#allocation2 + $0x44] ss:$8 sps:$4 sm:$0xff]  }
 0x196   :  { %746 = vmatpush1.msra.mxu0 %v7129_v38  ;;  %830 = vmatprep.subr.mxu1 %v7162_v60  ;;  %9024 = vst [vmem:[#allocation19_spill] sm:$0xff] %v7500_v49 }
 0x197   :  { %747 = vmatprep.subr.mxu0 %v7121_v32  ;;  %831 = vmatpush1.msra.mxu1 %v7160_v59  ;;  %v1011_v32 = vsel %vm1001_vm5, %v7242_v17, %v7261_v41 }
 0x198   :  { %614 = vmatprep.mubr.f32.mxu0 %v8979_v0  ;;  %6385 = vmatprep.mubr.msk.f32.mxu1 %vm6969_vm2, %v8979_v0  ;;  %v7303_v61 = vpop.permute.xlu0 %989  ;;  %v1000_v63 = vpop.permute.xlu1 %999 }
 0x199   :  { %748 = vmatpush1.msra.mxu0 %v7111_v24  ;;  %832 = vmatprep.subr.mxu1 %v7145_v51  ;;  %v1006_v51 = vsel %vm1001_vm5, %v7251_v34, %v7244_v29 }
 0x19a   :  { %5804 = vmatmul.mubr.msk.f32.gmra.mxu0 %vm454_vm4, %v7228_v4  ;;  %6386 = vmatmul.mubr.msk.f32.gmra.mxu1 %vm454_vm4, %v7228_v4 }
 0x19b   :  { %749 = vmatprep.subr.mxu0 %v7119_v31  ;;  %833 = vmatpush1.msra.mxu1 %v7139_v46  ;;  %v1007_v46 = vsel %vm1001_vm5, %v7244_v29, %v7256_v39 }
 0x19c   :  { %750 = vmatpush1.msra.mxu0 %v7113_v25  ;;  %1061 = vmatprep.subr.mxu1 %v1011_v32  ;;  %v7317_v24 = vpop.permute.xlu0 %979  ;;  %v7319_v38 = vpop.permute.xlu1 %987  ;;  %v7528_v32 = vld [vmem:[#allocation2 + $0xf4] ss:$8 sps:$4 sm:$0xff]  }
 0x19d   :  { %620 = vmatprep.mubr.f32.mxu0 %v8979_v0  ;;  %6388 = vmatprep.mubr.msk.f32.mxu1 %vm6969_vm2, %v8979_v0  ;;  %v1008_v15 = vsel %vm1001_vm5, %v7256_v39, %v7319_v38  ;;  %v7473_v39 = vld [vmem:[#allocation2 + $0x70] ss:$8 sps:$4 sm:$0xff]   ;;  %9033 = vst [vmem:[#allocation28_spill] sm:$0xff] %v7528_v32 }
 0x19e   :  { %5805 = vmatmul.mubr.msk.f32.gmra.mxu0 %vm454_vm4, %v7231_v5  ;;  %6389 = vmatmul.mubr.msk.f32.gmra.mxu1 %vm454_vm4, %v7231_v5  ;;  %9017 = vst [vmem:[#allocation12_spill] sm:$0xff] %v7473_v39 }
 0x19f   :  { %783 = vmatprep.mubr.f32.mxu0 %v8979_v0  ;;  %866 = vmatprep.mubr.f32.mxu1 %v8979_v0 }
 0x1a0   :  { %6391 = vmatprep.subr.mxu0 %v8979_v0  ;;  %v7331_v25 = vpop.permute.xlu0 %1324  ;;  %v978_v31 = vpop.permute.xlu1 %977 }
 0x1a1   :  { %v1004_v16 = vsel %vm1001_vm5, %v7279_v50, %v978_v31 }
 0x1a2   :  { %5809 = vmatmul.mubr.msk.f32.vlgmr.msra.gmra.mxu0 %vm454_vm4, %v7233_v8  ;;  %5812 = vmatmul.mubr.msk.f32.vlgmr.msra.gmra.mxu1 %vm454_vm4, %v7233_v8 }
 0x1a3   :  { %6392 = vmatpush3.msra.mxu0 %v7154_v56  ;;  %1062 = vmatpush1.msra.mxu1 %v1010_v40  ;;  %v1003_v56 = vsel %vm1001_vm5, %v7265_v42, %v7279_v50  ;;  %v7485_v42 = vld [vmem:[#allocation2 + $0x60] ss:$8 sps:$4 sm:$0xff]   ;;  %v7504_v50 = vld [vmem:[#allocation2 + $0x34] ss:$8 sps:$4 sm:$0xff]   ;;  %v7542_v40 = vld [vmem:[#allocation2 + $0xd0] ss:$8 sps:$4 sm:$0xff]  }
 0x1a4   :  { %6393 = vmatprep.subr.mxu0 %v8979_v0  ;;  %1063 = vmatprep.subr.mxu1 %v1007_v46  ;;  %v7348_v59 = vpop.permute.xlu0 %1322  ;;  %v7350_v60 = vpop.permute.xlu1 %969  ;;  %9019 = vst [vmem:[#allocation14_spill] sm:$0xff] %v7485_v42  ;;  %9025 = vst [vmem:[#allocation20_spill] sm:$0xff] %v7504_v50  ;;  %v7546_v46 = vld [vmem:[#allocation2 + $0xc4] ss:$8 sps:$4 sm:$0xff]  }
 0x1a5   :  { %6394 = vmatpush3.msra.mxu0 %v7152_v54  ;;  %1064 = vmatpush1.msra.mxu1 %v1006_v51  ;;  %v1341_v22 = vsel %vm1332_vm6, %v7348_v59, %v7331_v25  ;;  %9038 = vst [vmem:[#allocation33_spill] sm:$0xff] %v7542_v40  ;;  %9039 = vst [vmem:[#allocation34_spill] sm:$0xff] %v7546_v46  ;;  %v7548_v51 = vld [vmem:[#allocation2 + $0xc0] ss:$8 sps:$4 sm:$0xff]   ;;  %v7552_v59 = vld [vmem:[#allocation2 + $0xb4] ss:$8 sps:$4 sm:$0xff]  }
 0x1a6   :  { %789 = vmatprep.mubr.f32.mxu0 %v8979_v0  ;;  %872 = vmatprep.mubr.f32.mxu1 %v8979_v0  ;;  %9040 = vst [vmem:[#allocation35_spill] sm:$0xff] %v7548_v51  ;;  %9041 = vst [vmem:[#allocation36_spill] sm:$0xff] %v7552_v59 }
 0x1a7   :  { %6395 = vmatprep.subr.mxu0 %v8979_v0  ;;  %1065 = vmatprep.subr.mxu1 %v1003_v56  ;;  %v7558_v56 = vld [vmem:[#allocation2 + $0xa4] ss:$8 sps:$4 sm:$0xff]  }
 0x1a8   :  { %5810 = vmatmul.mubr.msk.f32.gmra.mxu0 %vm454_vm4, %v7235_v9  ;;  %5813 = vmatmul.mubr.msk.f32.gmra.mxu1 %vm454_vm4, %v7235_v9  ;;  %v7366_v54 = vpop.permute.xlu0 %1316  ;;  %v7368_v1 = vpop.permute.xlu1 %1326  ;;  %9043 = vst [vmem:[#allocation38_spill] sm:$0xff] %v7558_v56 }
 0x1a9   :  { %6396 = vmatpush3.msra.mxu0 %v7137_v45  ;;  %1066 = vmatpush1.msra.mxu1 %v1002_v62  ;;  %v1342_v19 = vsel %vm1332_vm6, %v7331_v25, %v7368_v1  ;;  %v7536_v25 = vld [vmem:[#allocation2 + $0xe0] ss:$8 sps:$4 sm:$0xff]  }
 0x1aa   :  { %795 = vmatprep.mubr.f32.mxu0 %v8979_v0  ;;  %878 = vmatprep.mubr.f32.mxu1 %v8979_v0  ;;  %9036 = vst [vmem:[#allocation31_spill] sm:$0xff] %v7536_v25  ;;  %v7560_v62 = vld [vmem:[#allocation2 + $0xa0] ss:$8 sps:$4 sm:$0xff]  }
 0x1ab   :  { %6406 = vmatprep.subr.mxu1 %v8979_v0  ;;  %9044 = vst [vmem:[#allocation39_spill] sm:$0xff] %v7560_v62 }
 0x1ac   :  { %5811 = vmatmul.mubr.msk.f32.gmra.mxu0 %vm454_vm4, %v7237_v11  ;;  %5814 = vmatmul.mubr.msk.f32.gmra.mxu1 %vm454_vm4, %v7237_v11  ;;  %v998_v2 = vpop.permute.xlu0 %997  ;;  %v1315_v3 = vpop.permute.xlu1 %1314 }
 0x1ad   :  { %6397 = vmatprep.mubr.msk.f32.mxu0 %vm6969_vm2, %v8979_v0  ;;  %1099 = vmatprep.mubr.f32.mxu1 %v8979_v0  ;;  %v1013_v45 = vsel %vm1001_vm5, %v998_v2, %v1000_v63  ;;  %v1012_v4 = vsel %vm1001_vm5, %v7261_v41, %v998_v2  ;;  %v1338_v23 = vsel %vm1332_vm6, %v1315_v3, %v7366_v54  ;;  %v7475_v41 = vld [vmem:[#allocation2 + $0x74] ss:$8 sps:$4 sm:$0xff]  }
 0x1ae   :  { %1144 = vmatprep.subr.mxu0 %v1013_v45  ;;  %9018 = vst [vmem:[#allocation13_spill] sm:$0xff] %v7475_v41  ;;  %v6633_v2 = vld [vmem:[#allocation2 + $0x114] ss:$8 sps:$4 sm:$0x7f]  }
 0x1b0   :  { %6398 = vmatmul.mubr.msk.f32.vlgmr.msra.gmra.mxu0 %vm454_vm4, %v7233_v8  ;;  %5818 = vmatmul.mubr.msk.f32.vlgmr.msra.gmra.mxu1 %vm454_vm4, %v7292_v58  ;;  %v1305_v5 = vpop.permute.xlu0 %1304  ;;  %v1313_v12 = vpop.permute.xlu1 %1312  ;;  %v1009_v8 = vsel %vm1001_vm5, %v7319_v38, %v7303_v61  ;;  %v7534_v38 = vld [vmem:[#allocation2 + $0xe4] ss:$8 sps:$4 sm:$0xff]  }
 0x1b1   :  { %6407 = vmatpush3.msra.mxu1 %v1000_v63  ;;  %6400 = vmatprep.mubr.msk.f32.mxu0 %vm6969_vm2, %v8979_v0  ;;  %v1337_v27 = vsel %vm1332_vm6, %v1313_v12, %v1315_v3  ;;  %v7524_v63 = vld [vmem:[#allocation2] ss:$8 sps:$4 sm:$0xff]   ;;  %9035 = vst [vmem:[#allocation30_spill] sm:$0xff] %v7534_v38  ;;  %v6635_v3 = vld [vmem:[#allocation2 + $0x110] ss:$8 sps:$4 sm:$0x7f]  }
 0x1b2   :  { %6408 = vmatprep.subr.mxu1 %v8979_v0  ;;  %1105 = vmatprep.mubr.f32.mxu1 %v8979_v0  ;;  %9032 = vst [vmem:[#allocation27_spill] sm:$0xff] %v7524_v63  ;;  %v7570_v45 = vsel %vm1908_vm7, %v6635_v3, 0  ;;  %v7577_v12 = vld [vmem:[#allocation2 + $0x104] ss:$8 sps:$4 sm:$0xff]  }
 0x1b3   :  { %6409 = vmatpush3.msra.mxu1 %v7303_v61  ;;  %1145 = vmatpush1.msra.mxu0 %v1012_v4  ;;  %v7522_v61 = vld [vmem:[#allocation2 + $0x4] ss:$8 sps:$4 sm:$0xff]   ;;  %9049 = vst [vmem:[#allocation44_spill] sm:$0xff] %v7577_v12 }
 0x1b4   :  { %6410 = vmatprep.subr.mxu1 %v8979_v0  ;;  %6401 = vmatmul.mubr.msk.f32.gmra.mxu0 %vm454_vm4, %v7235_v9  ;;  %v1303_v13 = vpop.permute.xlu0 %1302  ;;  %v1331_v14 = vpop.permute.xlu1 %1330  ;;  %v1005_v9 = vsel %vm1001_vm5, %v978_v31, %v7317_v24  ;;  %9031 = vst [vmem:[#allocation26_spill] sm:$0xff] %v7522_v61  ;;  %v7540_v31 = vld [vmem:[#allocation2 + $0xd4] ss:$8 sps:$4 sm:$0xff]   ;;  %v7572_v4 = vld [vmem:[#allocation2 + $0x84] ss:$8 sps:$4 sm:$0xff]  }
 0x1b5   :  { %5819 = vmatmul.mubr.msk.f32.gmra.mxu1 %vm454_vm4, %v7286_v57  ;;  %1146 = vmatprep.subr.mxu0 %v1009_v8  ;;  %v1333_v6 = vsel %vm1332_vm6, %v1303_v13, %v1305_v5  ;;  %9037 = vst [vmem:[#allocation32_spill] sm:$0xff] %v7540_v31  ;;  %9047 = vst [vmem:[#allocation42_spill] sm:$0xff] %v7572_v4  ;;  %v7580_v8 = vld [vmem:[#allocation2 + $0x100] ss:$8 sps:$4 sm:$0xff]   ;;  %v8981_v13 = vmov 0  }
 0x1b6   :  { %6411 = vmatpush3.msra.mxu1 %v7317_v24  ;;  %1147 = vmatpush1.msra.mxu0 %v1008_v15  ;;  %v7530_v24 = vld [vmem:[#allocation2 + $0xf0] ss:$8 sps:$4 sm:$0xff]   ;;  %9050 = vst [vmem:[#allocation45_spill] sm:$0xff] %v7580_v8 }
 0x1b7   :  { %1148 = vmatprep.subr.mxu0 %v1005_v9  ;;  %6403 = vmatprep.mubr.msk.f32.mxu0 %vm6969_vm2, %v8979_v0  ;;  %9034 = vst [vmem:[#allocation29_spill] sm:$0xff] %v7530_v24 }
 0x1b8   :  { %1111 = vmatprep.mubr.f32.mxu1 %v8979_v0  ;;  %1149 = vmatpush1.msra.mxu0 %v1004_v16  ;;  %v1321_v17 = vpop.permute.xlu0 %1320  ;;  %v1307_v18 = vpop.permute.xlu1 %1306 }
 0x1b9   :  { %6404 = vmatmul.mubr.msk.f32.gmra.mxu0 %vm454_vm4, %v7237_v11  ;;  %5820 = vmatmul.mubr.msk.f32.gmra.mxu1 %vm454_vm4, %v7350_v60  ;;  %v1334_v26 = vsel %vm1332_vm6, %v1305_v5, %v1307_v18  ;;  %v7575_v5 = vld [vmem:[#allocation2 + $0x80] ss:$8 sps:$4 sm:$0xff]  }
 0x1ba   :  { %1392 = vmatprep.subr.mxu0 %v1342_v19  ;;  %1182 = vmatprep.mubr.f32.mxu0 %v8979_v0  ;;  %9048 = vst [vmem:[#allocation43_spill] sm:$0xff] %v7575_v5 }
 0x1bb   :  { %6412 = vmatprep.mubr.msk.f32.mxu1 %vm6969_vm2, %v8979_v0 }
 0x1bc   :  { %v1329_v20 = vpop.permute.xlu0 %1328  ;;  %v1319_v21 = vpop.permute.xlu1 %1318 }
 0x1bd   :  { %5821 = vmatmul.mubr.msk.f32.vlgmr.msra.gmra.mxu0 %vm454_vm4, %v7292_v58  ;;  %6413 = vmatmul.mubr.msk.f32.vlgmr.msra.gmra.mxu1 %vm454_vm4, %v7292_v58  ;;  %v1344_v11 = vsel %vm1332_vm6, %v1329_v20, %v1331_v14  ;;  %v1343_v29 = vsel %vm1332_vm6, %v7368_v1, %v1329_v20  ;;  %v1340_v10 = vsel %vm1332_vm6, %v1319_v21, %v1321_v17  ;;  %v7518_v58 = vld [vmem:[#allocation2 + $0x10] ss:$8 sps:$4 sm:$0xff]  }
 0x1be   :  { %1393 = vmatpush1.msra.mxu0 %v1341_v22  ;;  %1188 = vmatprep.mubr.f32.mxu0 %v8979_v0  ;;  %v1339_v34 = vsel %vm1332_vm6, %v7366_v54, %v1319_v21  ;;  %9030 = vst [vmem:[#allocation25_spill] sm:$0xff] %v7518_v58  ;;  %v7564_v54 = vld [vmem:[#allocation2 + $0x94] ss:$8 sps:$4 sm:$0xff]   ;;  %v7566_v1 = vld [vmem:[#allocation2 + $0x90] ss:$8 sps:$4 sm:$0xff]  }
 0x1bf   :  { %1394 = vmatprep.subr.mxu0 %v1338_v23  ;;  %6415 = vmatprep.mubr.msk.f32.mxu1 %vm6969_vm2, %v8979_v0  ;;  %9045 = vst [vmem:[#allocation40_spill] sm:$0xff] %v7564_v54  ;;  %9046 = vst [vmem:[#allocation41_spill] sm:$0xff] %v7566_v1 }
 0x1c0   :  { %1395 = vmatpush1.msra.mxu0 %v1337_v27  ;;  %1475 = vmatprep.subr.mxu1 %v1344_v11  ;;  %v1297_v28 = vpop.permute.xlu1 %1296  ;;  %v1309_v7 = vpop.permute.xlu0 %1308 }
 0x1c1   :  { %1396 = vmatprep.subr.mxu0 %v1334_v26  ;;  %5822 = vmatmul.mubr.msk.f32.gmra.mxu0 %vm454_vm4, %v7286_v57  ;;  %v1335_v35 = vsel %vm1332_vm6, %v1307_v18, %v1309_v7 }
 0x1c2   :  { %6416 = vmatmul.mubr.msk.f32.gmra.mxu1 %vm454_vm4, %v7286_v57  ;;  %1397 = vmatpush1.msra.mxu0 %v1333_v6  ;;  %v7516_v57 = vld [vmem:[#allocation2 + $0x14] ss:$8 sps:$4 sm:$0xff]  }
 0x1c3   :  { %1194 = vmatprep.mubr.f32.mxu0 %v8979_v0  ;;  %6418 = vmatprep.mubr.msk.f32.mxu1 %vm6969_vm2, %v8979_v0  ;;  %9029 = vst [vmem:[#allocation24_spill] sm:$0xff] %v7516_v57 }
 0x1c4   :  { %1476 = vmatpush1.msra.mxu1 %v1343_v29  ;;  %6421 = vmatprep.subr.mxu0 %v8979_v0  ;;  %v1311_v30 = vpop.permute.xlu1 %1310  ;;  %v1299_v36 = vpop.permute.xlu0 %1298 }
 0x1c5   :  { %5823 = vmatmul.mubr.msk.f32.gmra.mxu0 %vm454_vm4, %v7350_v60  ;;  %1477 = vmatprep.subr.mxu1 %v1340_v10  ;;  %v1336_v33 = vsel %vm1332_vm6, %v1309_v7, %v1311_v30 }
 0x1c6   :  { %6419 = vmatmul.mubr.msk.f32.gmra.mxu1 %vm454_vm4, %v7350_v60  ;;  %1430 = vmatprep.mubr.f32.mxu0 %v8979_v0  ;;  %v7554_v60 = vld [vmem:[#allocation2 + $0xb0] ss:$8 sps:$4 sm:$0xff]  }
 0x1c7   :  { %1478 = vmatpush1.msra.mxu1 %v1339_v34  ;;  %1513 = vmatprep.mubr.f32.mxu1 %v8979_v0  ;;  %9042 = vst [vmem:[#allocation37_spill] sm:$0xff] %v7554_v60 }
 0x1c8   :  { %1479 = vmatprep.subr.mxu1 %v1336_v33  ;;  %v1301_v37 = vpop.permute.xlu1 %1300 }
 0x1c9   :  { %5827 = vmatmul.mubr.msk.f32.vlgmr.msra.gmra.mxu0 %vm454_vm4, %v1297_v28  ;;  %1480 = vmatpush1.msra.mxu1 %v1335_v35 }
 0x1ca   :  { %6422 = vmatpush3.msra.mxu0 %v1331_v14  ;;  %1436 = vmatprep.mubr.f32.mxu0 %v8979_v0 }
 0x1cb   :  { %6423 = vmatprep.subr.mxu0 %v8979_v0  ;;  %5830 = vmatmul.mubr.msk.f32.vlgmr.msra.gmra.mxu1 %vm454_vm4, %v1297_v28 }
 0x1cc   :  { %6424 = vmatpush3.msra.mxu0 %v1321_v17  ;;  %1519 = vmatprep.mubr.f32.mxu1 %v8979_v0 }
 0x1cd   :  { %6425 = vmatprep.subr.mxu0 %v8979_v0  ;;  %5828 = vmatmul.mubr.msk.f32.gmra.mxu0 %vm454_vm4, %v1299_v36 }
 0x1ce   :  { %6426 = vmatpush3.msra.mxu0 %v1311_v30  ;;  %1442 = vmatprep.mubr.f32.mxu0 %v8979_v0 }
 0x1cf   :  { %5831 = vmatmul.mubr.msk.f32.gmra.mxu1 %vm454_vm4, %v1299_v36  ;;  %1915 = vmatprep.subr.bf16.mxu1 %v7475_v41 }
 0x1d0   :  { %1525 = vmatprep.mubr.f32.mxu1 %v8979_v0  ;;  %1916 = vmatpush1.bf16.msra.mxu1 %v7473_v39 }
 0x1d1   :  { %5829 = vmatmul.mubr.msk.f32.gmra.mxu0 %vm454_vm4, %v1301_v37  ;;  %1917 = vmatprep.subr.bf16.mxu1 %v7487_v43 }
 0x1d2   :  { %6427 = vmatprep.mubr.msk.f32.mxu0 %vm6969_vm2, %v8979_v0  ;;  %5872 = vmatprep.subr.msk.bf16.mxu0 %vm1908_vm7, %v6633_v2 }
 0x1d3   :  { %5832 = vmatmul.mubr.msk.f32.gmra.mxu1 %vm454_vm4, %v1301_v37 }
 0x1d4   :  { %1918 = vmatpush1.bf16.msra.mxu1 %v7485_v42 }
 0x1d5   :  { %6428 = vmatmul.mubr.msk.f32.vlgmr.msra.gmra.mxu0 %vm454_vm4, %v1297_v28  ;;  %1919 = vmatprep.subr.bf16.mxu1 %v7494_v47 }
 0x1d6   :  { %6430 = vmatprep.mubr.msk.f32.mxu0 %vm6969_vm2, %v8979_v0  ;;  %1979 = vmatpush1.bf16.msra.mxu0 %v7570_v45 }
 0x1d7   :  { %1980 = vmatprep.subr.bf16.mxu0 %v7577_v12 }
 0x1d8   :  { %1920 = vmatpush1.bf16.msra.mxu1 %v7492_v44 }
 0x1d9   :  { %6431 = vmatmul.mubr.msk.f32.gmra.mxu0 %vm454_vm4, %v1299_v36  ;;  %1921 = vmatprep.subr.bf16.mxu1 %v7500_v49 }
 0x1da   :  { %6433 = vmatprep.mubr.msk.f32.mxu0 %vm6969_vm2, %v8979_v0  ;;  %1981 = vmatpush1.bf16.msra.mxu0 %v7580_v8 }
 0x1dc   :  { %1922 = vmatpush1.bf16.msra.mxu1 %v7498_v48 }
 0x1dd   :  { %6434 = vmatmul.mubr.msk.f32.gmra.mxu0 %vm454_vm4, %v1301_v37  ;;  %1923 = vmatprep.subr.bf16.mxu1 %v7504_v50 }
 0x1de   :  { %1998 = vmatprep.mubr.bf16.mxu0 %v8981_v13 }
 0x1e0   :  { %1924 = vmatpush1.bf16.msra.mxu1 %v7506_v52 }
 0x1e1   :  { %1925 = vmatprep.subr.bf16.mxu1 %v7510_v53 }
 0x1e4   :  { %1926 = vmatpush1.bf16.msra.mxu1 %v7512_v55 }
 0x1e5   :  { %1927 = vmatprep.subr.bf16.mxu1 %v7516_v57 }
 0x1e8   :  { %1928 = vmatpush1.bf16.msra.mxu1 %v7518_v58 }
 0x1e9   :  { %1929 = vmatprep.subr.bf16.mxu1 %v7522_v61 }
 0x1ec   :  { %1930 = vmatpush1.bf16.msra.mxu1 %v7524_v63 }
 0x1ed   :  { %1931 = vmatprep.subr.bf16.mxu1 %v7528_v32 }
 0x1f0   :  { %1932 = vmatpush2.bf16.msra.mxu1 %v7530_v24 }
 0x1f1   :  { %1933 = vmatprep.subr.bf16.mxu1 %v7534_v38 }
 0x1f4   :  { %1934 = vmatpush2.bf16.msra.mxu1 %v7536_v25 }
 0x1f5   :  { %1935 = vmatprep.subr.bf16.mxu1 %v7540_v31 }
 0x1f8   :  { %1936 = vmatpush2.bf16.msra.mxu1 %v7542_v40 }
 0x1f9   :  { %1937 = vmatprep.subr.bf16.mxu1 %v7546_v46 }
 0x1fc   :  { %1938 = vmatpush2.bf16.msra.mxu1 %v7548_v51 }
 0x1fd   :  { %1939 = vmatprep.subr.bf16.mxu1 %v7552_v59 }
 0x200   :  { %1940 = vmatpush2.bf16.msra.mxu1 %v7554_v60 }
 0x201   :  { %1941 = vmatprep.subr.bf16.mxu1 %v7558_v56 }
 0x204   :  { %1942 = vmatpush2.bf16.msra.mxu1 %v7560_v62 }
 0x205   :  { %1943 = vmatprep.subr.bf16.mxu1 %v7564_v54 }
 0x208   :  { %1944 = vmatpush2.bf16.msra.mxu1 %v7566_v1 }
 0x209   :  { %1945 = vmatprep.subr.bf16.mxu1 %v7572_v4 }
 0x20c   :  { %1946 = vmatpush2.bf16.msra.mxu1 %v7575_v5 }
 0x20d   :  { %5879 = vmatprep.subr.msk.bf16.mxu1 %vm1908_vm7, %v6633_v2 }
 0x248   :  { %v527_v14 = vpop.f32.mrf.mxu1 }
 0x24a   :  { %v529_v15 = vpop.f32.mrf.mxu1 }
 0x24c   :  { %v533_v9 = vpop.f32.mrf.mxu1 }
 0x24e   :  { %v535_v16 = vpop.f32.mrf.mxu1 }
 0x250   :  { %v539_v17 = vpop.f32.mrf.mxu1 }
 0x252   :  { %v7586_v18 = vpop.f32.mrf.mxu1 }
 0x254   :  { %v610_v19 = vpop.f32.mrf.mxu0  ;;  %v7588_v20 = vpop.f32.mrf.mxu1 }
 0x256   :  { %v612_v21 = vpop.f32.mrf.mxu0  ;;  %v6384_v22 = vpop.f32.mrf.mxu1 }
 0x25a   :  { %v616_v11 = vpop.f32.mrf.mxu0  ;;  %v7590_v23 = vpop.f32.mrf.mxu1 }
 0x25c   :  { %v618_v26 = vpop.f32.mrf.mxu0  ;;  %v6387_v27 = vpop.f32.mrf.mxu1 }
 0x25e   :  { %v622_v28 = vpop.f32.mrf.mxu0  ;;  %v7592_v6 = vpop.f32.mrf.mxu1 }
 0x260   :  { %v624_v29 = vpop.f32.mrf.mxu0  ;;  %v6390_v7 = vpop.f32.mrf.mxu1 }
 0x262   :  { %v785_v10 = vpop.f32.mrf.mxu0  ;;  %v868_v30 = vpop.f32.mrf.mxu1 }
 0x263   :  { %v786_v57 = vadd.f32 %v785_v10, %v527_v14  ;;  %v869_v53 = vadd.f32 %v868_v30, %v610_v19  ;;  %v7601_v19 = vpop.permute.xlu0 %1628 }
 0x264   :  { %v787_v33 = vpop.f32.mrf.mxu0  ;;  %v870_v34 = vpop.f32.mrf.mxu1 }
 0x265   :  { %v788_v52 = vadd.f32 %v787_v33, %v529_v15  ;;  %v871_v50 = vadd.f32 %v870_v34, %v612_v21  ;;  %v7603_v15 = vpop.permute.xlu1 %1632 }
 0x268   :  { %v791_v35 = vpop.f32.mrf.mxu0  ;;  %v874_v36 = vpop.f32.mrf.mxu1 }
 0x269   :  { %v792_v49 = vadd.f32 %v791_v35, %v533_v9  ;;  %v875_v44 = vadd.f32 %v874_v36, %v616_v11 }
 0x26a   :  { %v793_v37 = vpop.f32.mrf.mxu0  ;;  %v876_v2 = vpop.f32.mrf.mxu1 }
 0x26b   :  { %v794_v47 = vadd.f32 %v793_v37, %v535_v16 }
 0x26c   :  { %v797_v3 = vpop.f32.mrf.mxu0  ;;  %v880_v22 = vpop.f32.mrf.mxu1 }
 0x26d   :  { %v798_v42 = vadd.f32 %v797_v3, %v539_v17  ;;  %v881_v12 = vadd.f32 %v880_v22, %v622_v28  ;;  %v1637_v28 = vpop.permute.xlu1 %1636 }
 0x26e   :  { %v799_v0 = vpop.f32.mrf.mxu0  ;;  %v882_v13 = vpop.f32.mrf.mxu1 }
 0x26f   :  { %v800_v14 = vadd.f32 %v799_v0, %v7586_v18  ;;  %v883_v10 = vadd.f32 %v882_v13, %v624_v29 }
 0x270   :  { %v951_v5 = vpop.f32.mrf.mxu0  ;;  %v1101_v4 = vpop.f32.mrf.mxu1 }
 0x272   :  { %v6399_v27 = vpop.f32.mrf.mxu0  ;;  %v1103_v1 = vpop.f32.mrf.mxu1 }
 0x273   :  { %v1282_v43 = vadd.f32 %v1103_v1, %v788_v52 }
 0x274   :  { %v956_v54 = vpop.f32.mrf.mxu0 }
 0x275   :  { %v1107_v62 = vpop.f32.mrf.mxu1 }
 0x276   :  { %v6402_v56 = vpop.f32.mrf.mxu0 }
 0x277   :  { %v1109_v7 = vpop.f32.mrf.mxu1 }
 0x279   :  { %v7594_v60 = vpop.f32.mrf.mxu0  ;;  %v1113_v59 = vpop.f32.mrf.mxu1 }
 0x27b   :  { %v6405_v51 = vpop.f32.mrf.mxu0  ;;  %v1115_v46 = vpop.f32.mrf.mxu1 }
 0x27c   :  { %v1281_v51 = vadd.f32 %v1101_v4, %v786_v57  ;;  %v952_v57 = vadd.f32 %v951_v5, %v7588_v20  ;;  %v1292_v0 = vadd.f32 %v1115_v46, %v800_v14 }
 0x27d   :  { %v1184_v40 = vpop.f32.mrf.mxu0  ;;  %v1267_v31 = vpop.f32.mrf.mxu1 }
 0x27e   :  { %v1283_v39 = vadd.f32 %v1184_v40, %v869_v53  ;;  %v1287_v53 = vadd.f32 %v1109_v7, %v794_v47  ;;  %v1291_v40 = vadd.f32 %v1113_v59, %v798_v42  ;;  %v1285_v11 = vadd.f32 %v1267_v31, %v952_v57 }
 0x27f   :  { %v1186_v25 = vpop.f32.mrf.mxu0  ;;  %v6414_v38 = vpop.f32.mrf.mxu1 }
 0x280   :  { %v877_v38 = vadd.f32 %v876_v2, %v618_v26  ;;  %v1284_v4 = vadd.f32 %v1186_v25, %v871_v50 }
 0x281   :  { %v1190_v24 = vpop.f32.mrf.mxu0 }
 0x282   :  { %v7596_v32 = vpop.f32.mrf.mxu1  ;;  %v1288_v13 = vadd.f32 %v1190_v24, %v875_v44 }
 0x283   :  { %v1192_v63 = vpop.f32.mrf.mxu0 }
 0x284   :  { %v6417_v61 = vpop.f32.mrf.mxu1  ;;  %v1289_v5 = vadd.f32 %v1192_v63, %v877_v38 }
 0x285   :  { %v1196_v27 = vpop.f32.mrf.mxu0 }
 0x286   :  { %v7598_v58 = vpop.f32.mrf.mxu1 }
 0x287   :  { %v1198_v56 = vpop.f32.mrf.mxu0 }
 0x288   :  { %v6420_v55 = vpop.f32.mrf.mxu1 }
 0x289   :  { %v1432_v48 = vpop.f32.mrf.mxu0  ;;  %v1286_v55 = vadd.f32 %v1107_v62, %v792_v49 }
 0x28a   :  { %v1612_v41 = vadd.f32 %v1432_v48, %v1281_v51  ;;  %v957_v48 = vadd.f32 %v956_v54, %v7590_v23 }
 0x28b   :  { %v1434_v61 = vpop.f32.mrf.mxu0  ;;  %v1515_v8 = vpop.f32.mrf.mxu1 }
 0x28c   :  { %v1613_v9 = vadd.f32 %v1434_v61, %v1282_v43  ;;  %v1614_v17 = vadd.f32 %v1515_v8, %v1283_v39  ;;  %v1639_v49 = vadd.f32 %v7601_v19, %v1612_v41  ;;  %v1293_v39 = vadd.f32 %v1196_v27, %v881_v12 }
 0x28d   :  { %v1438_v16 = vpop.f32.mrf.mxu0  ;;  %v1517_v52 = vpop.f32.mrf.mxu1  ;;  %v1294_v8 = vadd.f32 %v1198_v56, %v883_v10  ;;  %v1290_v51 = vadd.f32 %v7596_v32, %v957_v48 }
 0x28e   :  { %v1617_v1 = vadd.f32 %v1438_v16, %v1286_v55  ;;  %v1615_v18 = vadd.f32 %v1517_v52, %v1284_v4  ;;  %v1640_v25 = vadd.f32 %v7601_v19, %v1613_v9  ;;  %v1641_v47 = vadd.f32 %v7601_v19, %v1614_v17 }
 0x28f   :  { %v1440_v62 = vpop.f32.mrf.mxu0  ;;  %v1521_v21 = vpop.f32.mrf.mxu1  ;;  %v1654_v31 = vmax.f32 %v1639_v49, 0.0  ;;  %v962_v16 = vadd.f32 %v7594_v60, %v7592_v6  ;;  %v9052_v49 = vld [vmem:[#allocation44_spill] sm:$0xff] }
 0x290   :  { %v1644_v43 = vadd.f32 %v7603_v15, %v1617_v1  ;;  %v1618_v50 = vadd.f32 %v1440_v62, %v1287_v53  ;;  %v1619_v59 = vadd.f32 %v1521_v21, %v1288_v13  ;;  %v1642_v41 = vadd.f32 %v7601_v19, %v1615_v18 }
 0x291   :  { %v1444_v42 = vpop.f32.mrf.mxu0  ;;  %v1523_v54 = vpop.f32.mrf.mxu1  ;;  %v1655_v34 = vmax.f32 %v1640_v25, 0.0  ;;  %v1656_v35 = vmax.f32 %v1641_v47, 0.0  ;;  %v9051_v1 = vmov 0   ;;  %v1295_v60 = vadd.f32 %v7598_v58, %v962_v16  ;;  %v9061_v16 = vld [vmem:[#allocation19_spill] sm:$0xff] }
 0x292   :  { %v1659_v46 = vmax.f32 %v1644_v43, 0.0  ;;  %v1645_v44 = vadd.f32 %v7603_v15, %v1618_v50  ;;  %v1620_v24 = vadd.f32 %v1523_v54, %v1289_v5  ;;  %v1622_v63 = vadd.f32 %v1444_v42, %v1291_v40  ;;  %v9053_v43 = vld [vmem:[#allocation45_spill] sm:$0xff] }
 0x293   :  { %v1646_v20 = vadd.f32 %v7603_v15, %v1619_v59  ;;  %v1446_v23 = vpop.f32.mrf.mxu0  ;;  %v1527_v12 = vpop.f32.mrf.mxu1  ;;  %v1657_v22 = vmax.f32 %v1642_v41, 0.0  ;;  %v9054_v25 = vmov 0.0  }
 0x294   :  { %v1660_v26 = vmax.f32 %v1645_v44, 0.0  ;;  %v1623_v29 = vadd.f32 %v1446_v23, %v1292_v0  ;;  %v1647_v30 = vadd.f32 %v7603_v15, %v1620_v24  ;;  %v1624_v33 = vadd.f32 %v1527_v12, %v1293_v39 }
 0x295   :  { %v1661_v36 = vmax.f32 %v1646_v20, 0.0  ;;  %v1598_v37 = vpop.f32.mrf.mxu0  ;;  %v1529_v2 = vpop.f32.mrf.mxu1  ;;  %v1717_v3 = vpack.c.bf16 %v1659_v46, %v1654_v31  ;;  %v1649_v9 = vadd.f32 %v1637_v28, %v1622_v63 }
 0x296   :  { %v1650_v7 = vadd.f32 %v1637_v28, %v1623_v29  ;;  %v1662_v27 = vmax.f32 %v1647_v30, 0.0  ;;  %v1616_v56 = vadd.f32 %v1598_v37, %v1285_v11  ;;  %v1651_v61 = vadd.f32 %v1637_v28, %v1624_v33 }
 0x297   :  { %v1719_v38 = vpack.c.bf16 %v1661_v36, %v1656_v35  ;;  %v6429_v14 = vpop.f32.mrf.mxu0  ;;  %v1718_v10 = vpack.c.bf16 %v1660_v26, %v1655_v34  ;;  %v1625_v57 = vadd.f32 %v1529_v2, %v1294_v8  ;;  %v1664_v13 = vmax.f32 %v1649_v9, 0.0  ;;  %v7667_v9 = vld [vmem:[#allocation7 + $0x60] sm:$0xff] }
 0x298   :  { %v1665_v55 = vmax.f32 %v1650_v7, 0.0  ;;  %v2118_v4 = vpack.c.bf16 %v1662_v27, %v1657_v22  ;;  %v1643_v53 = vadd.f32 %v7601_v19, %v1616_v56  ;;  %v1666_v32 = vmax.f32 %v1651_v61, 0.0  ;;  %v7646_v56 = vld [vmem:[#allocation7 + $0x30] sm:$0xff]  ;;  %v7653_v61 = vld [vmem:[#allocation7 + $0x40] sm:$0xff] }
 0x299   :  { %1947 = vmatprep.mubr.bf16.mxu1 %v1718_v10  ;;  %v1603_v17 = vpop.f32.mrf.mxu0  ;;  %5873 = vmatmul.mubr.msk.bf16.vlgmr.msra.gmra.mxu0 %vm1901_vm8, %v1719_v38  ;;  %v1652_v6 = vadd.f32 %v1637_v28, %v1625_v57  ;;  %v1720_v58 = vpack.c.bf16 %v1664_v13, %v1664_v13  ;;  %v9057_v14 = vld [vmem:[#allocation15_spill] sm:$0xff]  ;;  %v9058_v10 = vld [vmem:[#allocation14_spill] sm:$0xff]  ;;  %v9059_v57 = vld [vmem:[#allocation17_spill] sm:$0xff] }
 0x29a   :  { %v1721_v52 = vpack.c.bf16 %v1665_v55, %v1665_v55  ;;  %v1621_v40 = vadd.f32 %v1603_v17, %v1290_v51  ;;  %1948 = vmatmul.mubr.bf16.vlgmr.msra.gmra.mxu1 %v1717_v3  ;;  %2130 = vrot.lane.b32.xlu0 %v2118_v4, %s6979_s9  ;;  %v1658_v62 = vmax.f32 %v1643_v53, 0.0  ;;  %v1722_v11 = vpack.c.bf16 %v1666_v32, %v1666_v32  ;;  %v9055_v51 = vld [vmem:[#allocation13_spill] sm:$0xff]  ;;  %v9060_v4 = vld [vmem:[#allocation16_spill] sm:$0xff]  ;;  %v9065_v32 = vld [vmem:[#allocation22_spill] sm:$0xff] }
 0x29b   :  { %v6432_v48 = vpop.f32.mrf.mxu0  ;;  %2008 = vmatprep.mubr.bf16.mxu0 %v9051_v1  ;;  %2219 = vmatpush1.bf16.msra.mxu1 %v7570_v45  ;;  %v1667_v45 = vmax.f32 %v1652_v6, 0.0  ;;  %v7660_v55 = vld [vmem:[#allocation7 + $0x50] sm:$0xff]  ;;  %v9063_v53 = vld [vmem:[#allocation20_spill] sm:$0xff]  ;;  %v9070_v13 = vld [vmem:[#allocation27_spill] sm:$0xff] }
 0x29c   :  { %v1648_v0 = vadd.f32 %v7603_v15, %v1621_v40  ;;  %1957 = vmatprep.mubr.bf16.mxu1 %v1721_v52  ;;  %2220 = vmatprep.subr.bf16.mxu1 %v9052_v49  ;;  %v9062_v52 = vld [vmem:[#allocation18_spill] sm:$0xff]  ;;  %v9064_v40 = vld [vmem:[#allocation21_spill] sm:$0xff]  ;;  %v9066_v48 = vld [vmem:[#allocation23_spill] sm:$0xff] }
 0x29d   :  { %v1608_v19 = vpop.f32.mrf.mxu0  ;;  %v2120_v47 = vpack.c.bf16 %v1667_v45, %v1667_v45  ;;  %v9068_v6 = vld [vmem:[#allocation25_spill] sm:$0xff]  ;;  %v9071_v49 = vld [vmem:[#allocation28_spill] sm:$0xff] }
 0x29e   :  { %v1663_v18 = vmax.f32 %v1648_v0, 0.0  ;;  %v1626_v21 = vadd.f32 %v1608_v19, %v1295_v60  ;;  %2128 = vrot.lane.b32.xlu0 %v1719_v38, %s6979_s9  ;;  %v9056_v38 = vld [vmem:[#allocation12_spill] sm:$0xff]  ;;  %v9069_v0 = vld [vmem:[#allocation26_spill] sm:$0xff]  ;;  %v9072_v19 = vld [vmem:[#allocation29_spill] sm:$0xff] }
 0x29f   :  { %v6435_v5 = vpop.f32.mrf.mxu0  ;;  %2221 = vmatpush1.bf16.msra.mxu1 %v9053_v43  ;;  %v9067_v60 = vld [vmem:[#allocation24_spill] sm:$0xff]  ;;  %v9078_v43 = vld [vmem:[#allocation35_spill] sm:$0xff] }
 0x2a0   :  { %v1653_v50 = vadd.f32 %v1637_v28, %v1626_v21  ;;  %v2119_v39 = vpack.c.bf16 %v1663_v18, %v1658_v62  ;;  %v9073_v62 = vld [vmem:[#allocation30_spill] sm:$0xff]  ;;  %v9074_v18 = vld [vmem:[#allocation31_spill] sm:$0xff]  ;;  %v9075_v21 = vld [vmem:[#allocation32_spill] sm:$0xff] }
 0x2a1   :  { %5874 = vmatmul.mubr.msk.bf16.gmra.mxu0 %vm1901_vm8, %v1722_v11  ;;  %v9077_v5 = vld [vmem:[#allocation34_spill] sm:$0xff]  ;;  %v9079_v45 = vld [vmem:[#allocation36_spill] sm:$0xff] }
 0x2a2   :  { %v1668_v15 = vmax.f32 %v1653_v50, 0.0  ;;  %1958 = vmatmul.mubr.bf16.gmra.mxu1 %v1720_v58  ;;  %2132 = vrot.lane.b32.xlu1 %v2119_v39, %s6979_s9  ;;  %v9080_v50 = vld [vmem:[#allocation37_spill] sm:$0xff]  ;;  %v9081_v58 = vld [vmem:[#allocation38_spill] sm:$0xff]  ;;  %v9082_v39 = vld [vmem:[#allocation39_spill] sm:$0xff] }
 0x2a3   :  { %2238 = vmatprep.mubr.bf16.mxu1 %v9051_v1  ;;  %2093 = vmatprep.mubr.f32.mxu0 %v9054_v25 }
 0x2a4   :  { %v2121_v42 = vpack.c.bf16 %v1668_v15, %v1668_v15  ;;  %v9083_v15 = vld [vmem:[#allocation40_spill] sm:$0xff] }
 0x2a6   :  { %2138 = vrot.lane.b32.xlu0 %v2121_v42, %s6979_s9  ;;  %2136 = vrot.lane.b32.xlu1 %v2120_v47, %s6979_s9  ;;  %v9084_v47 = vld [vmem:[#allocation41_spill] sm:$0xff]  ;;  %v9085_v42 = vld [vmem:[#allocation42_spill] sm:$0xff] }
 0x2aa   :  { %2134 = vrot.lane.b32.xlu1 %v1722_v11, %s6979_s9  ;;  %v9076_v11 = vld [vmem:[#allocation33_spill] sm:$0xff] }
 0x30c   :  { %v7635_v59 = vpop.permute.xlu0 %2130 }
 0x310   :  { %v7639_v46 = vpop.permute.xlu0 %2128 }
 0x314   :  { %v2133_v54 = vpop.permute.xlu1 %2132 }
 0x315   :  { %5880 = vmatmul.mubr.msk.bf16.vlgmr.msra.gmra.mxu1 %vm1901_vm8, %v2133_v54  ;;  %v2142_v17 = vsel %vm2140_vm9, %v7635_v59, %v2133_v54 }
 0x316   :  { %2248 = vmatprep.mubr.bf16.mxu1 %v9051_v1 }
 0x318   :  { %v7641_v44 = vpop.permute.xlu0 %2138  ;;  %v2137_v54 = vpop.permute.xlu1 %2136 }
 0x31d   :  { %5881 = vmatmul.mubr.msk.bf16.gmra.mxu1 %vm1901_vm8, %v7641_v44 }
 0x31e   :  { %2321 = vmatprep.mubr.f32.mxu1 %v9054_v25 }
 0x359   :  { %v2000_v41 = vpop.f32.mrf.mxu0 }
 0x35a   :  { %v1949_v24 = vpop.f32.mrf.mxu1 }
 0x35b   :  { %v2002_v8 = vpop.f32.mrf.mxu0  ;;  %v2001_v27 = vadd.f32 %v2000_v41, %v1949_v24  ;;  %v9086_v41 = vld [vmem:[#allocation43_spill] sm:$0xff]  ;;  %v2141_v24 = vsel %vm2140_vm9, %v7639_v46, %v7635_v59 }
 0x35c   :  { %v1951_v31 = vpop.f32.mrf.mxu1 }
 0x35d   :  { %v2004_v63 = vpop.f32.mrf.mxu0  ;;  %v2003_v7 = vadd.f32 %v2002_v8, %v1951_v31  ;;  %v2144_v8 = vsel %vm2140_vm9, %v2137_v54, %v7641_v44  ;;  %v2135_v31 = vpop.permute.xlu1 %2134 }
 0x35e   :  { %v1953_v20 = vpop.f32.mrf.mxu1 }
 0x35f   :  { %v2006_v23 = vpop.f32.mrf.mxu0  ;;  %v2005_v3 = vadd.f32 %v2004_v63, %v1953_v20  ;;  %v2143_v63 = vsel %vm2140_vm9, %v2135_v31, %v2137_v54 }
 0x360   :  { %v1955_v12 = vpop.f32.mrf.mxu1 }
 0x361   :  { %v2010_v26 = vpop.f32.mrf.mxu0  ;;  %v2007_v37 = vadd.f32 %v2006_v23, %v1955_v12 }
 0x362   :  { %v1959_v28 = vpop.f32.mrf.mxu1 }
 0x363   :  { %v2012_v29 = vpop.f32.mrf.mxu0  ;;  %v2011_v35 = vadd.f32 %v2010_v26, %v1959_v28 }
 0x364   :  { %v1961_v30 = vpop.f32.mrf.mxu1 }
 0x365   :  { %v2013_v33 = vadd.f32 %v2012_v29, %v1961_v30  ;;  %v2014_v34 = vpop.f32.mrf.mxu0  ;;  %v7712_v30 = vld [vmem:[#allocation7 + $0x70] sm:$0xff] }
 0x366   :  { %v1963_v36 = vpop.f32.mrf.mxu1 }
 0x367   :  { %2055 = vmatprep.subr.mxu0 %v2013_v33  ;;  %v2015_v2 = vpop.f32.mrf.mxu0  ;;  %v7714_v33 = vld [vmem:[#allocation7 + $0x78] sm:$0xff]  ;;  %v7719_v36 = vld [vmem:[#allocation7 + $0x80] sm:$0xff] }
 0x368   :  { %v1964_v22 = vpop.f32.mrf.mxu1  ;;  %2056 = vmatpush1.msra.mxu0 %v2011_v35 }
 0x369   :  { %2057 = vmatprep.subr.mxu0 %v2007_v37 }
 0x36a   :  { %2058 = vmatpush1.msra.mxu0 %v2005_v3  ;;  %v7724_v3 = vld [vmem:[#allocation7 + $0x88] sm:$0xff] }
 0x36b   :  { %2059 = vmatprep.subr.mxu0 %v2003_v7 }
 0x36c   :  { %2060 = vmatpush1.msra.mxu0 %v2001_v27 }
 0x36d   :  { %5875 = vmatmul.mubr.msk.f32.vlgmr.msra.gmra.mxu0 %vm454_vm4, %v7646_v56  ;;  %2155 = vmatprep.subr.bf16.mxu0 %v9055_v51 }
 0x36e   :  { %2156 = vmatpush1.bf16.msra.mxu0 %v9056_v38  ;;  %2099 = vmatprep.mubr.f32.mxu0 %v9054_v25 }
 0x36f   :  { %2157 = vmatprep.subr.bf16.mxu0 %v9057_v14  ;;  %v7735_v14 = vld [vmem:[#allocation7 + $0x90] sm:$0xff] }
 0x371   :  { %5876 = vmatmul.mubr.msk.f32.gmra.mxu0 %vm454_vm4, %v7653_v61 }
 0x372   :  { %2158 = vmatpush1.bf16.msra.mxu0 %v9058_v10  ;;  %2105 = vmatprep.mubr.f32.mxu0 %v9054_v25 }
 0x373   :  { %2159 = vmatprep.subr.bf16.mxu0 %v9059_v57 }
 0x375   :  { %5877 = vmatmul.mubr.msk.f32.gmra.mxu0 %vm454_vm4, %v7660_v55 }
 0x376   :  { %2160 = vmatpush1.bf16.msra.mxu0 %v9060_v4  ;;  %2111 = vmatprep.mubr.f32.mxu0 %v9054_v25 }
 0x377   :  { %2161 = vmatprep.subr.bf16.mxu0 %v9061_v16  ;;  %v7742_v16 = vld [vmem:[#allocation7 + $0x98] sm:$0xff] }
 0x379   :  { %5878 = vmatmul.mubr.msk.f32.gmra.mxu0 %vm454_vm4, %v7667_v9 }
 0x37a   :  { %2162 = vmatpush1.bf16.msra.mxu0 %v9062_v52  ;;  %2187 = vmatprep.mubr.bf16.mxu0 %v2142_v17 }
 0x37b   :  { %2163 = vmatprep.subr.bf16.mxu0 %v9063_v53 }
 0x37e   :  { %2164 = vmatpush1.bf16.msra.mxu0 %v9064_v40 }
 0x37f   :  { %2165 = vmatprep.subr.bf16.mxu0 %v9065_v32 }
 0x382   :  { %2166 = vmatpush1.bf16.msra.mxu0 %v9066_v48  ;;  %v7751_v48 = vld [vmem:[#allocation7 + $0xa0] sm:$0xff] }
 0x383   :  { %2167 = vmatprep.subr.bf16.mxu0 %v9067_v60 }
 0x386   :  { %2168 = vmatpush1.bf16.msra.mxu0 %v9068_v6 }
 0x387   :  { %2169 = vmatprep.subr.bf16.mxu0 %v9069_v0 }
 0x38a   :  { %2170 = vmatpush1.bf16.msra.mxu0 %v9070_v13 }
 0x38b   :  { %2171 = vmatprep.subr.bf16.mxu0 %v9071_v49  ;;  %v7758_v49 = vld [vmem:[#allocation7 + $0xa8] sm:$0xff] }
 0x38e   :  { %2172 = vmatpush2.bf16.msra.mxu0 %v9072_v19 }
 0x38f   :  { %2173 = vmatprep.subr.bf16.mxu0 %v9073_v62 }
 0x392   :  { %2174 = vmatpush2.bf16.msra.mxu0 %v9074_v18 }
 0x393   :  { %2175 = vmatprep.subr.bf16.mxu0 %v9075_v21 }
 0x396   :  { %2176 = vmatpush2.bf16.msra.mxu0 %v9076_v11 }
 0x397   :  { %2177 = vmatprep.subr.bf16.mxu0 %v9077_v5 }
 0x39a   :  { %2178 = vmatpush2.bf16.msra.mxu0 %v9078_v43 }
 0x39b   :  { %2179 = vmatprep.subr.bf16.mxu0 %v9079_v45 }
 0x39e   :  { %2180 = vmatpush2.bf16.msra.mxu0 %v9080_v50 }
 0x39f   :  { %2181 = vmatprep.subr.bf16.mxu0 %v9081_v58 }
 0x3a2   :  { %2182 = vmatpush2.bf16.msra.mxu0 %v9082_v39 }
 0x3a3   :  { %2183 = vmatprep.subr.bf16.mxu0 %v9083_v15 }
 0x3a6   :  { %2184 = vmatpush2.bf16.msra.mxu0 %v9084_v47 }
 0x3a7   :  { %2185 = vmatprep.subr.bf16.mxu0 %v9085_v42 }
 0x3aa   :  { %2186 = vmatpush2.bf16.msra.mxu0 %v9086_v41 }
 0x3ad   :  { %2188 = vmatmul.mubr.bf16.vlgmr.msra.gmra.mxu0 %v2141_v24 }
 0x3ae   :  { %2197 = vmatprep.mubr.bf16.mxu0 %v2144_v8 }
 0x3b5   :  { %2198 = vmatmul.mubr.bf16.gmra.mxu0 %v2143_v63 }
 0x3b6   :  { %2893 = vmatprep.mubr.bf16.mxu0 %v9051_v1 }
 0x3d5   :  { %v7706_v20 = vpop.f32.mrf.mxu1 }
 0x3d7   :  { %v7708_v23 = vpop.f32.mrf.mxu1 }
 0x3d9   :  { %v7710_v12 = vpop.f32.mrf.mxu1 }
 0x3db   :  { %v2246_v26 = vpop.f32.mrf.mxu1 }
 0x3dd   :  { %v2250_v28 = vpop.f32.mrf.mxu1 }
 0x3df   :  { %v2252_v59 = vpop.f32.mrf.mxu1 }
 0x3e1   :  { %v2254_v46 = vpop.f32.mrf.mxu1 }
 0x3e3   :  { %v2255_v29 = vpop.f32.mrf.mxu1 }
 0x42d   :  { %v2095_v44 = vpop.f32.mrf.mxu0 }
 0x42e   :  { %v7717_v34 = vadd.f32 %v2095_v44, %v7712_v30 }
 0x42f   :  { %v2097_v35 = vpop.f32.mrf.mxu0 }
 0x430   :  { %v7722_v37 = vadd.f32 %v2097_v35, %v7714_v33  ;;  %v2386_v27 = vmul.f32 %v7717_v34, %v7717_v34  ;;  %v6642_v35 = vld [vmem:[%s8975_s2 + $0x78] sm:$0xff]  }
 0x431   :  { %v2101_v2 = vpop.f32.mrf.mxu0 }
 0x432   :  { %v7727_v22 = vadd.f32 %v2101_v2, %v7719_v36  ;;  %v2353_v7 = vadd.f32 %v7722_v37, %v7717_v34  ;;  %v2387_v51 = vmul.f32 %v7722_v37, %v7722_v37 }
 0x433   :  { %v2103_v38 = vpop.f32.mrf.mxu0 }
 0x434   :  { %v7738_v10 = vadd.f32 %v2103_v38, %v7724_v3  ;;  %2354 = vadd.xlane.f32.xlu0 %v2353_v7  ;;  %v2388_v57 = vmul.f32 %v7727_v22, %v7727_v22  ;;  %v2402_v53 = vadd.f32 %v2387_v51, %v2386_v27  ;;  %v6652_v7 = vld [vmem:[%s8975_s2 + $0x50] sm:$0xff]   ;;  %v6655_v51 = vld [vmem:[%s8975_s2 + $0x8] sm:$0xff]   ;;  %v6656_v38 = vld [vmem:[%s8975_s2 + $0x40] sm:$0xff]  }
 0x435   :  { %v2107_v4 = vpop.f32.mrf.mxu0  ;;  %v6653_v27 = vld [vmem:[%s8975_s2 + $0x10] sm:$0xff]  }
 0x436   :  { %v7745_v17 = vadd.f32 %v2107_v4, %v7735_v14  ;;  %v2356_v52 = vadd.f32 %v7738_v10, %v7727_v22  ;;  %v2389_v40 = vmul.f32 %v7738_v10, %v7738_v10 }
 0x437   :  { %v2109_v32 = vpop.f32.mrf.mxu0 }
 0x438   :  { %v7754_v60 = vadd.f32 %v2109_v32, %v7742_v16  ;;  %2357 = vadd.xlane.f32.xlu1 %v2356_v52  ;;  %2403 = vadd.xlane.f32.xlu0 %v2402_v53  ;;  %v2405_v6 = vadd.f32 %v2389_v40, %v2388_v57  ;;  %v2390_v0 = vmul.f32 %v7745_v17, %v7745_v17  ;;  %v6657_v57 = vld [vmem:[%s8975_s2] sm:$0xff]  }
 0x439   :  { %v2113_v13 = vpop.f32.mrf.mxu0 }
 0x43a   :  { %v7761_v19 = vadd.f32 %v2113_v13, %v7751_v48  ;;  %v2359_v62 = vadd.f32 %v7754_v60, %v7745_v17  ;;  %v2391_v18 = vmul.f32 %v7754_v60, %v7754_v60 }
 0x43b   :  { %v2115_v21 = vpop.f32.mrf.mxu0 }
 0x43c   :  { %v7768_v11 = vadd.f32 %v2115_v21, %v7758_v49  ;;  %2360 = vadd.xlane.f32.xlu1 %v2359_v62  ;;  %2406 = vadd.xlane.f32.xlu0 %v2405_v6  ;;  %v2408_v5 = vadd.f32 %v2391_v18, %v2390_v0  ;;  %v2392_v43 = vmul.f32 %v7761_v19, %v7761_v19 }
 0x43e   :  { %v2362_v45 = vadd.f32 %v7768_v11, %v7761_v19  ;;  %v2393_v50 = vmul.f32 %v7768_v11, %v7768_v11 }
 0x440   :  { %2409 = vadd.xlane.f32.xlu1 %v2408_v5  ;;  %2363 = vadd.xlane.f32.xlu0 %v2362_v45  ;;  %v2411_v58 = vadd.f32 %v2393_v50, %v2392_v43 }
 0x444   :  { %2412 = vadd.xlane.f32.xlu0 %v2411_v58 }
 0x46d   :  { %v2189_v39 = vpop.f32.mrf.mxu0 }
 0x46e   :  { %v2241_v2 = vadd.f32 %v7706_v20, %v2189_v39  ;;  %v6645_v20 = vld [vmem:[%s8975_s2 + $0x30] sm:$0xff]  }
 0x46f   :  { %v2191_v15 = vpop.f32.mrf.mxu0 }
 0x470   :  { %v2243_v44 = vadd.f32 %v7708_v23, %v2191_v15  ;;  %v6646_v23 = vld [vmem:[%s8975_s2 + $0x68] sm:$0xff]  }
 0x471   :  { %v2193_v47 = vpop.f32.mrf.mxu0 }
 0x472   :  { %v2245_v46 = vadd.f32 %v7710_v12, %v2193_v47  ;;  %v6644_v12 = vld [vmem:[%s8975_s2 + $0x70] sm:$0xff]   ;;  %v2499_v47 = vlaneseq }
 0x473   :  { %v2195_v42 = vpop.f32.mrf.mxu0 }
 0x474   :  { %v2247_v63 = vadd.f32 %v2246_v26, %v2195_v42  ;;  %v6648_v26 = vld [vmem:[%s8975_s2 + $0x60] sm:$0xff]  }
 0x475   :  { %v2199_v54 = vpop.f32.mrf.mxu0 }
 0x476   :  { %v2251_v8 = vadd.f32 %v2250_v28, %v2199_v54  ;;  %v6643_v28 = vld [vmem:[%s8975_s2 + $0x38] sm:$0xff]  }
 0x477   :  { %v2201_v41 = vpop.f32.mrf.mxu0 }
 0x478   :  { %v2253_v24 = vadd.f32 %v2252_v59, %v2201_v41  ;;  %v6650_v59 = vld [vmem:[%s8975_s2 + $0x58] sm:$0xff]  }
 0x479   :  { %v2203_v31 = vpop.f32.mrf.mxu0 }
 0x47a   :  { %2283 = vmatprep.subr.mxu1 %v2253_v24 }
 0x47b   :  { %v2204_v29 = vpop.f32.mrf.mxu0  ;;  %2284 = vmatpush1.msra.mxu1 %v2251_v8 }
 0x47c   :  { %2285 = vmatprep.subr.mxu1 %v2247_v63  ;;  %v2500_v63 = vshrl.u32 %v2499_v47, 7 }
 0x47d   :  { %2286 = vmatpush1.msra.mxu1 %v2245_v46 }
 0x47e   :  { %2287 = vmatprep.subr.mxu1 %v2243_v44 }
 0x47f   :  { %2288 = vmatpush1.msra.mxu1 %v2241_v2  ;;  %v7844_v2 = vsub.s32 1, %v2500_v63 }
 0x480   :  { %5882 = vmatmul.mubr.msk.f32.vlgmr.msra.gmra.mxu1 %vm454_vm4, %v7646_v56  ;;  %6147 = vmatprep.subr.bf16.mxu1 %v6642_v35  ;;  %v6647_v56 = vld [vmem:[%s8975_s2 + $0x28] sm:$0xff]   ;;  %v7842_v35 = vsub.s32 0, %v2500_v63 }
 0x481   :  { %2327 = vmatprep.mubr.f32.mxu1 %v9054_v25  ;;  %6148 = vmatpush3.bf16.msra.mxu1 %v6643_v28 }
 0x482   :  { %6149 = vmatprep.subr.bf16.mxu1 %v6644_v12  ;;  %v2347_v12 = vld [vmem:[#allocation7 + $0xb0] ss:$8 sm:$0x3] }
 0x484   :  { %5883 = vmatmul.mubr.msk.f32.gmra.mxu1 %vm454_vm4, %v7653_v61  ;;  %v6649_v61 = vld [vmem:[%s8975_s2 + $0x20] sm:$0xff]  }
 0x485   :  { %2333 = vmatprep.mubr.f32.mxu1 %v9054_v25  ;;  %6150 = vmatpush3.bf16.msra.mxu1 %v6645_v20 }
 0x486   :  { %6151 = vmatprep.subr.bf16.mxu1 %v6646_v23 }
 0x488   :  { %5884 = vmatmul.mubr.msk.f32.gmra.mxu1 %vm454_vm4, %v7660_v55  ;;  %v6651_v55 = vld [vmem:[%s8975_s2 + $0x18] sm:$0xff]  }
 0x489   :  { %2339 = vmatprep.mubr.f32.mxu1 %v9054_v25  ;;  %6152 = vmatpush3.bf16.msra.mxu1 %v6647_v56 }
 0x48a   :  { %6153 = vmatprep.subr.bf16.mxu1 %v6648_v26  ;;  %v7849_v26 = vrot.slane %v2347_v12, %v7842_v35 }
 0x48c   :  { %5885 = vmatmul.mubr.msk.f32.gmra.mxu1 %vm454_vm4, %v7667_v9  ;;  %v6654_v9 = vld [vmem:[%s8975_s2 + $0x48] sm:$0xff]  }
 0x48d   :  { %6154 = vmatpush3.bf16.msra.mxu1 %v6649_v61  ;;  %v7852_v61 = vrot.slane %v2347_v12, %v7844_v2 }
 0x48e   :  { %6155 = vmatprep.subr.bf16.mxu1 %v6650_v59  ;;  %v2349_v59 = vld [vmem:[#allocation7 + $0xb4] ss:$8 sm:$0x3] }
 0x491   :  { %6156 = vmatpush3.bf16.msra.mxu1 %v6651_v55 }
 0x492   :  { %6157 = vmatprep.subr.bf16.mxu1 %v6652_v7 }
 0x495   :  { %6158 = vmatpush3.bf16.msra.mxu1 %v6653_v27  ;;  %v6658_v27 = vld [vmem:[#allocation5 + $0x70] ss:$8 sps:$4 sm:$0xff]  }
 0x496   :  { %6159 = vmatprep.subr.bf16.mxu1 %v6654_v9  ;;  %v6660_v9 = vld [vmem:[#allocation5 + $0x74] ss:$8 sps:$4 sm:$0xff]  }
 0x497   :  { %2861 = vmatprep.subr.bf16.mxu0 %v6660_v9 }
 0x498   :  { %2862 = vmatpush1.bf16.msra.mxu0 %v6658_v27 }
 0x499   :  { %6160 = vmatpush3.bf16.msra.mxu1 %v6655_v51 }
 0x49a   :  { %6161 = vmatprep.subr.bf16.mxu1 %v6656_v38 }
 0x49d   :  { %6162 = vmatpush3.bf16.msra.mxu1 %v6657_v57  ;;  %v6663_v57 = vld [vmem:[#allocation5 + $0x64] ss:$8 sps:$4 sm:$0xff]  }
 0x49e   :  { %2863 = vmatprep.subr.bf16.mxu0 %v6663_v57 }
 0x4bd   :  { %v2355_v4 = vpop.xlane.xlu0 %2354 }
 0x4be   :  { %v2378_v52 = vmul.f32 0.00390625, %v2355_v4 }
 0x4c0   :  { %v2434_v32 = vmul.f32 %v2378_v52, %v2378_v52  ;;  %v2450_v20 = vsub.f32 %v7717_v34, %v2378_v52  ;;  %v2451_v23 = vsub.f32 %v7722_v37, %v2378_v52 }
 0x4c1   :  { %v2404_v53 = vpop.xlane.xlu0 %2403  ;;  %v2358_v40 = vpop.xlane.xlu1 %2357 }
 0x4c2   :  { %v2426_v6 = vmul.f32 0.00390625, %v2404_v53  ;;  %v2379_v0 = vmul.f32 0.00390625, %v2358_v40  ;;  %v7858_v53 = vrot.slane %v2349_v59, %v7842_v35  ;;  %v7861_v40 = vrot.slane %v2349_v59, %v7844_v2 }
 0x4c4   :  { %v2442_v13 = vsub.f32 %v2426_v6, %v2434_v32  ;;  %v2435_v62 = vmul.f32 %v2379_v0, %v2379_v0  ;;  %v2452_v51 = vsub.f32 %v7727_v22, %v2379_v0  ;;  %v2453_v38 = vsub.f32 %v7738_v10, %v2379_v0 }
 0x4c5   :  { %v2407_v18 = vpop.xlane.xlu0 %2406  ;;  %v2361_v21 = vpop.xlane.xlu1 %2360 }
 0x4c6   :  { %v2466_v5 = vadd.f32 1e-05, %v2442_v13  ;;  %v2427_v43 = vmul.f32 0.00390625, %v2407_v18  ;;  %v2380_v45 = vmul.f32 0.00390625, %v2361_v21  ;;  %v6666_v18 = vld [vmem:[#allocation5 + $0x54] ss:$8 sps:$4 sm:$0xff]  }
 0x4c8   :  { %6802 = vrsqrt.f32 %v2466_v5  ;;  %v2443_v50 = vsub.f32 %v2427_v43, %v2435_v62  ;;  %v2436_v39 = vmul.f32 %v2380_v45, %v2380_v45  ;;  %v6661_v62 = vld [vmem:[#allocation5 + $0x60] ss:$8 sps:$4 sm:$0xff]   ;;  %v2454_v0 = vsub.f32 %v7745_v17, %v2380_v45 }
 0x4c9   :  { %v2364_v58 = vpop.xlane.xlu0 %2363  ;;  %v2410_v15 = vpop.xlane.xlu1 %2409  ;;  %v2455_v21 = vsub.f32 %v7754_v60, %v2380_v45  ;;  %2864 = vmatpush1.bf16.msra.mxu0 %v6661_v62  ;;  %v6679_v62 = vld [vmem:[#allocation5] ss:$8 sps:$4 sm:$0xff]  }
 0x4ca   :  { %v2467_v42 = vadd.f32 1e-05, %v2443_v50  ;;  %v2428_v54 = vmul.f32 0.00390625, %v2410_v15  ;;  %v7838_v41 = vmul.f32 0.00390625, %v2364_v58  ;;  %2865 = vmatprep.subr.bf16.mxu0 %v6666_v18 }
 0x4cc   :  { %6804 = vrsqrt.f32 %v2467_v42  ;;  %v2444_v24 = vsub.f32 %v2428_v54, %v2436_v39  ;;  %v2437_v8 = vmul.f32 %v7838_v41, %v7838_v41  ;;  %v2456_v45 = vsub.f32 %v7761_v19, %v7838_v41 }
 0x4cd   :  { %v2413_v31 = vpop.xlane.xlu0 %2412 }
 0x4ce   :  { %v2468_v46 = vadd.f32 1e-05, %v2444_v24  ;;  %v2429_v29 = vmul.f32 0.00390625, %v2413_v31  ;;  %v6664_v24 = vld [vmem:[#allocation5 + $0x50] ss:$8 sps:$4 sm:$0xff]  }
 0x4cf   :  { %2866 = vmatpush1.bf16.msra.mxu0 %v6664_v24 }
 0x4d0   :  { %6806 = vrsqrt.f32 %v2468_v46  ;;  %v2445_v44 = vsub.f32 %v2429_v29, %v2437_v8  ;;  %v2457_v8 = vsub.f32 %v7768_v11, %v7838_v41  ;;  %v6669_v46 = vld [vmem:[#allocation5 + $0x44] ss:$8 sps:$4 sm:$0xff]   ;;  %v6672_v41 = vld [vmem:[#allocation5 + $0x34] ss:$8 sps:$4 sm:$0xff]  }
 0x4d1   :  { %2867 = vmatprep.subr.bf16.mxu0 %v6669_v46 }
 0x4d2   :  { %v2469_v28 = vadd.f32 1e-05, %v2445_v44 }
 0x4d4   :  { %6808 = vrsqrt.f32 %v2469_v28 }
 0x4d5   :  { %v6803_v56 = vpop.eup %6802 }
 0x4d6   :  { %v2483_v55 = vmul.f32 %v6803_v56, %v2451_v23  ;;  %v2482_v7 = vmul.f32 %v6803_v56, %v2450_v20  ;;  %v6667_v23 = vld [vmem:[#allocation5 + $0x40] ss:$8 sps:$4 sm:$0xff]  }
 0x4d7   :  { %2868 = vmatpush1.bf16.msra.mxu0 %v6667_v23 }
 0x4d8   :  { %v2510_v52 = vmul.f32 %v7852_v61, %v2483_v55  ;;  %v2509_v32 = vmul.f32 %v7849_v26, %v2482_v7  ;;  %2869 = vmatprep.subr.bf16.mxu0 %v6672_v41 }
 0x4d9   :  { %v6805_v4 = vpop.eup %6804 }
 0x4da   :  { %v2485_v6 = vmul.f32 %v6805_v4, %v2453_v38  ;;  %v2484_v13 = vmul.f32 %v6805_v4, %v2452_v51  ;;  %v2537_v58 = vadd.f32 %v7861_v40, %v2510_v52  ;;  %v2536_v39 = vadd.f32 %v7858_v53, %v2509_v32  ;;  %v6670_v51 = vld [vmem:[#allocation5 + $0x30] ss:$8 sps:$4 sm:$0xff]   ;;  %v6675_v4 = vld [vmem:[#allocation5 + $0x24] ss:$8 sps:$4 sm:$0xff]   ;;  %v6673_v52 = vld [vmem:[#allocation5 + $0x20] ss:$8 sps:$4 sm:$0xff]  }
 0x4db   :  { %2870 = vmatpush1.bf16.msra.mxu0 %v6670_v51  ;;  %v6678_v32 = vld [vmem:[#allocation5 + $0x14] ss:$8 sps:$4 sm:$0xff]  }
 0x4dc   :  { %v2512_v5 = vmul.f32 %v7852_v61, %v2485_v6  ;;  %v2511_v43 = vmul.f32 %v7849_v26, %v2484_v13  ;;  %2871 = vmatprep.subr.bf16.mxu0 %v6675_v4  ;;  %v6676_v6 = vld [vmem:[#allocation5 + $0x10] ss:$8 sps:$4 sm:$0xff]   ;;  %v6681_v13 = vld [vmem:[#allocation5 + $0x4] ss:$8 sps:$4 sm:$0xff]  }
 0x4dd   :  { %v6807_v50 = vpop.eup %6806 }
 0x4de   :  { %v2539_v15 = vadd.f32 %v7861_v40, %v2512_v5  ;;  %v2538_v47 = vadd.f32 %v7858_v53, %v2511_v43  ;;  %v2487_v42 = vmul.f32 %v6807_v50, %v2455_v21  ;;  %v2486_v54 = vmul.f32 %v6807_v50, %v2454_v0 }
 0x4df   :  { %2872 = vmatpush1.bf16.msra.mxu0 %v6673_v52 }
 0x4e0   :  { %v2553_v31 = vpack.c.bf16 %v2539_v15, %v2537_v58  ;;  %v2552_v63 = vpack.c.bf16 %v2538_v47, %v2536_v39  ;;  %v2514_v28 = vmul.f32 %v7852_v61, %v2487_v42  ;;  %v2513_v20 = vmul.f32 %v7849_v26, %v2486_v54  ;;  %2873 = vmatprep.subr.bf16.mxu0 %v6678_v32 }
 0x4e1   :  { %v6809_v29 = vpop.eup %6808 }
 0x4e2   :  { %2720 = vmatprep.mubr.bf16.mxu1 %v2553_v31  ;;  %v2489_v44 = vmul.f32 %v6809_v29, %v2457_v8  ;;  %v2488_v12 = vmul.f32 %v6809_v29, %v2456_v45  ;;  %v2541_v55 = vadd.f32 %v7861_v40, %v2514_v28  ;;  %v2540_v27 = vadd.f32 %v7858_v53, %v2513_v20 }
 0x4e3   :  { %2721 = vmatmul.mubr.bf16.vlgmr.msra.gmra.mxu1 %v2552_v63  ;;  %2874 = vmatpush1.bf16.msra.mxu0 %v6676_v6 }
 0x4e4   :  { %v2516_v56 = vmul.f32 %v7852_v61, %v2489_v44  ;;  %v2515_v59 = vmul.f32 %v7849_v26, %v2488_v12  ;;  %2875 = vmatprep.subr.bf16.mxu0 %v6681_v13 }
 0x4e6   :  { %v2543_v7 = vadd.f32 %v7861_v40, %v2516_v56  ;;  %v2542_v9 = vadd.f32 %v7858_v53, %v2515_v59 }
 0x4e7   :  { %2876 = vmatpush1.bf16.msra.mxu0 %v6679_v62 }
 0x4e8   :  { %v2555_v38 = vpack.c.bf16 %v2543_v7, %v2541_v55  ;;  %v2554_v57 = vpack.c.bf16 %v2542_v9, %v2540_v27  ;;  %v7932_v55 = vld [vmem:[#allocation7 + $0xc0] ss:$0 sm:$0xff] }
 0x4ea   :  { %2728 = vmatprep.mubr.bf16.mxu1 %v2555_v38 }
 0x4eb   :  { %2729 = vmatmul.mubr.bf16.gmra.mxu1 %v2554_v57 }
 0x540   :  { %v2323_v18 = vpop.f32.mrf.mxu1 }
 0x541   :  { %v7885_v21 = vadd.f32 %v2323_v18, %v7712_v30 }
 0x542   :  { %v2325_v0 = vpop.f32.mrf.mxu1 }
 0x543   :  { %v7888_v5 = vadd.f32 %v2325_v0, %v7714_v33  ;;  %v2394_v30 = vmul.f32 %v7885_v21, %v7885_v21 }
 0x544   :  { %v2329_v43 = vpop.f32.mrf.mxu1 }
 0x545   :  { %v2365_v50 = vadd.f32 %v7888_v5, %v7885_v21  ;;  %v2395_v58 = vmul.f32 %v7888_v5, %v7888_v5  ;;  %v7895_v15 = vadd.f32 %v2329_v43, %v7719_v36 }
 0x546   :  { %v2331_v39 = vpop.f32.mrf.mxu1 }
 0x547   :  { %v7898_v47 = vadd.f32 %v2331_v39, %v7724_v3  ;;  %2366 = vadd.xlane.f32.xlu1 %v2365_v50  ;;  %v2414_v54 = vadd.f32 %v2395_v58, %v2394_v30  ;;  %v2396_v3 = vmul.f32 %v7895_v15, %v7895_v15 }
 0x548   :  { %v2335_v33 = vpop.f32.mrf.mxu1 }
 0x549   :  { %v2368_v42 = vadd.f32 %v7898_v47, %v7895_v15  ;;  %v2397_v24 = vmul.f32 %v7898_v47, %v7898_v47  ;;  %v7907_v8 = vadd.f32 %v2335_v33, %v7735_v14 }
 0x54a   :  { %v2337_v45 = vpop.f32.mrf.mxu1 }
 0x54b   :  { %v7910_v36 = vadd.f32 %v2337_v45, %v7742_v16  ;;  %2369 = vadd.xlane.f32.xlu0 %v2368_v42  ;;  %2415 = vadd.xlane.f32.xlu1 %v2414_v54  ;;  %v2417_v63 = vadd.f32 %v2397_v24, %v2396_v3  ;;  %v2398_v28 = vmul.f32 %v7907_v8, %v7907_v8 }
 0x54c   :  { %v2341_v31 = vpop.f32.mrf.mxu1 }
 0x54d   :  { %v2371_v46 = vadd.f32 %v7910_v36, %v7907_v8  ;;  %v2399_v29 = vmul.f32 %v7910_v36, %v7910_v36  ;;  %v7919_v14 = vadd.f32 %v2341_v31, %v7751_v48 }
 0x54e   :  { %v2343_v44 = vpop.f32.mrf.mxu1 }
 0x54f   :  { %v7922_v16 = vadd.f32 %v2343_v44, %v7758_v49  ;;  %2418 = vadd.xlane.f32.xlu0 %v2417_v63  ;;  %2372 = vadd.xlane.f32.xlu1 %v2371_v46  ;;  %v2420_v20 = vadd.f32 %v2399_v29, %v2398_v28  ;;  %v2400_v48 = vmul.f32 %v7919_v14, %v7919_v14 }
 0x551   :  { %v2374_v12 = vadd.f32 %v7922_v16, %v7919_v14  ;;  %v2401_v23 = vmul.f32 %v7922_v16, %v7922_v16 }
 0x553   :  { %2375 = vadd.xlane.f32.xlu0 %v2374_v12  ;;  %2421 = vadd.xlane.f32.xlu1 %v2420_v20  ;;  %v2423_v56 = vadd.f32 %v2401_v23, %v2400_v48 }
 0x557   :  { %2424 = vadd.xlane.f32.xlu0 %v2423_v56 }
 0x5a3   :  { %v6163_v49 = vpop.f32.mrf.mxu1 }
 0x5a5   :  { %v6164_v59 = vpop.f32.mrf.mxu1 }
 0x5a6   :  { %v6165_v41 = vadd.f32 %v6164_v59, %v6163_v49 }
 0x5a7   :  { %v6166_v7 = vpop.f32.mrf.mxu1 }
 0x5a8   :  { %v2723_v9 = vadd.f32 %v6165_v41, %v7932_v55 }
 0x5a9   :  { %v6167_v27 = vpop.f32.mrf.mxu1 }
 0x5aa   :  { %v6168_v51 = vadd.f32 %v6167_v27, %v6166_v7  ;;  %v2753_v52 = vmax.f32 %v2723_v9, 0.0 }
 0x5ab   :  { %v6169_v38 = vpop.f32.mrf.mxu1 }
 0x5ac   :  { %v2726_v57 = vadd.f32 %v6168_v51, %v7932_v55 }
 0x5ad   :  { %v6170_v4 = vpop.f32.mrf.mxu1 }
 0x5ae   :  { %v2754_v32 = vmax.f32 %v2726_v57, 0.0  ;;  %v6171_v6 = vadd.f32 %v6170_v4, %v6169_v38 }
 0x5af   :  { %v6172_v13 = vpop.f32.mrf.mxu1 }
 0x5b0   :  { %v2761_v62 = vpack.c.bf16 %v2754_v32, %v2753_v52  ;;  %v2731_v0 = vadd.f32 %v6171_v6, %v7932_v55 }
 0x5b1   :  { %v6173_v18 = vpop.f32.mrf.mxu1 }
 0x5b2   :  { %v6174_v43 = vadd.f32 %v6173_v18, %v6172_v13  ;;  %2894 = vmatmul.mubr.bf16.vlgmr.msra.gmra.mxu0 %v2761_v62  ;;  %v2755_v58 = vmax.f32 %v2731_v0, 0.0 }
 0x5b3   :  { %2903 = vmatprep.mubr.bf16.mxu0 %v9051_v1 }
 0x5b4   :  { %v2734_v50 = vadd.f32 %v6174_v43, %v7932_v55 }
 0x5b6   :  { %v2756_v39 = vmax.f32 %v2734_v50, 0.0 }
 0x5b8   :  { %v2762_v30 = vpack.c.bf16 %v2756_v39, %v2755_v58 }
 0x5ba   :  { %2904 = vmatmul.mubr.bf16.gmra.mxu0 %v2762_v30 }
 0x5bb   :  { %2913 = vmatprep.mubr.bf16.mxu0 %v9051_v1 }
 0x5d0   :  { %v2367_v33 = vpop.xlane.xlu1 %2366 }
 0x5d1   :  { %v2382_v42 = vmul.f32 0.00390625, %v2367_v33 }
 0x5d3   :  { %v2438_v3 = vmul.f32 %v2382_v42, %v2382_v42  ;;  %v2458_v32 = vsub.f32 %v7885_v21, %v2382_v42  ;;  %v2459_v6 = vsub.f32 %v7888_v5, %v2382_v42 }
 0x5d4   :  { %v2370_v54 = vpop.xlane.xlu0 %2369  ;;  %v2416_v24 = vpop.xlane.xlu1 %2415 }
 0x5d5   :  { %v2383_v45 = vmul.f32 0.00390625, %v2370_v54  ;;  %v2430_v31 = vmul.f32 0.00390625, %v2416_v24 }
 0x5d7   :  { %v2446_v63 = vsub.f32 %v2430_v31, %v2438_v3  ;;  %v2439_v28 = vmul.f32 %v2383_v45, %v2383_v45  ;;  %v2460_v0 = vsub.f32 %v7895_v15, %v2383_v45  ;;  %v2461_v43 = vsub.f32 %v7898_v47, %v2383_v45 }
 0x5d8   :  { %v2419_v46 = vpop.xlane.xlu0 %2418  ;;  %v2373_v29 = vpop.xlane.xlu1 %2372 }
 0x5d9   :  { %v2470_v44 = vadd.f32 1e-05, %v2446_v63  ;;  %v2431_v12 = vmul.f32 0.00390625, %v2419_v46  ;;  %v2384_v20 = vmul.f32 0.00390625, %v2373_v29 }
 0x5db   :  { %6810 = vrsqrt.f32 %v2470_v44  ;;  %v2447_v23 = vsub.f32 %v2431_v12, %v2439_v28  ;;  %v2440_v41 = vmul.f32 %v2384_v20, %v2384_v20  ;;  %v2462_v54 = vsub.f32 %v7907_v8, %v2384_v20 }
 0x5dc   :  { %v2376_v48 = vpop.xlane.xlu0 %2375  ;;  %v2422_v56 = vpop.xlane.xlu1 %2421  ;;  %v2463_v24 = vsub.f32 %v7910_v36, %v2384_v20 }
 0x5dd   :  { %v2471_v49 = vadd.f32 1e-05, %v2447_v23  ;;  %v2385_v59 = vmul.f32 0.00390625, %v2376_v48  ;;  %v2432_v7 = vmul.f32 0.00390625, %v2422_v56 }
 0x5df   :  { %6812 = vrsqrt.f32 %v2471_v49  ;;  %v2448_v27 = vsub.f32 %v2432_v7, %v2440_v41  ;;  %v2441_v38 = vmul.f32 %v2385_v59, %v2385_v59  ;;  %v2464_v12 = vsub.f32 %v7919_v14, %v2385_v59 }
 0x5e0   :  { %v2425_v9 = vpop.xlane.xlu0 %2424  ;;  %v2465_v23 = vsub.f32 %v7922_v16, %v2385_v59 }
 0x5e1   :  { %v2472_v51 = vadd.f32 1e-05, %v2448_v27  ;;  %v2433_v57 = vmul.f32 0.00390625, %v2425_v9 }
 0x5e3   :  { %6814 = vrsqrt.f32 %v2472_v51  ;;  %v2449_v4 = vsub.f32 %v2433_v57, %v2441_v38 }
 0x5e5   :  { %v2473_v52 = vadd.f32 1e-05, %v2449_v4 }
 0x5e7   :  { %6816 = vrsqrt.f32 %v2473_v52 }
 0x5e8   :  { %v6811_v13 = vpop.eup %6810 }
 0x5e9   :  { %v2491_v62 = vmul.f32 %v6811_v13, %v2459_v6  ;;  %v2490_v18 = vmul.f32 %v6811_v13, %v2458_v32  ;;  %v2352_v6 = vld [vmem:[#allocation7 + $0xc4] ss:$8 sm:$0x3] }
 0x5eb   :  { %v2518_v58 = vmul.f32 %v7852_v61, %v2491_v62  ;;  %v2517_v39 = vmul.f32 %v7849_v26, %v2490_v18 }
 0x5ec   :  { %v6813_v50 = vpop.eup %6812 }
 0x5ed   :  { %v2493_v30 = vmul.f32 %v6813_v50, %v2461_v43  ;;  %v2492_v33 = vmul.f32 %v6813_v50, %v2460_v0  ;;  %v2545_v63 = vadd.f32 %v7861_v40, %v2518_v58  ;;  %v2544_v45 = vadd.f32 %v7858_v53, %v2517_v39 }
 0x5ef   :  { %v2520_v42 = vmul.f32 %v7852_v61, %v2493_v30  ;;  %v2519_v3 = vmul.f32 %v7849_v26, %v2492_v33 }
 0x5f0   :  { %v6815_v31 = vpop.eup %6814 }
 0x5f1   :  { %v2547_v46 = vadd.f32 %v7861_v40, %v2520_v42  ;;  %v2546_v29 = vadd.f32 %v7858_v53, %v2519_v3  ;;  %v2495_v44 = vmul.f32 %v6815_v31, %v2463_v24  ;;  %v2494_v28 = vmul.f32 %v6815_v31, %v2462_v54 }
 0x5f3   :  { %v2557_v20 = vpack.c.bf16 %v2547_v46, %v2545_v63  ;;  %v2556_v48 = vpack.c.bf16 %v2546_v29, %v2544_v45  ;;  %v2522_v41 = vmul.f32 %v7852_v61, %v2495_v44  ;;  %v2521_v27 = vmul.f32 %v7849_v26, %v2494_v28 }
 0x5f4   :  { %v6817_v56 = vpop.eup %6816 }
 0x5f5   :  { %2736 = vmatprep.mubr.bf16.mxu1 %v2557_v20  ;;  %v2497_v49 = vmul.f32 %v6817_v56, %v2465_v23  ;;  %v2496_v7 = vmul.f32 %v6817_v56, %v2464_v12  ;;  %v2549_v38 = vadd.f32 %v7861_v40, %v2522_v41  ;;  %v2548_v59 = vadd.f32 %v7858_v53, %v2521_v27 }
 0x5f6   :  { %2737 = vmatmul.mubr.bf16.gmra.mxu1 %v2556_v48 }
 0x5f7   :  { %v2524_v9 = vmul.f32 %v7852_v61, %v2497_v49  ;;  %v2523_v51 = vmul.f32 %v7849_v26, %v2496_v7  ;;  %v7966_v61 = vrot.slane %v2352_v6, %v7842_v35  ;;  %v7969_v26 = vrot.slane %v2352_v6, %v7844_v2  ;;  %v6690_v6 = vld [vmem:[%s8975_s2 + $0xd8] sm:$0xff]  }
 0x5f9   :  { %v2551_v57 = vadd.f32 %v7861_v40, %v2524_v9  ;;  %v2550_v4 = vadd.f32 %v7858_v53, %v2523_v51  ;;  %v6682_v9 = vld [vmem:[%s8975_s2 + $0xf8] sm:$0xff]  }
 0x5fa   :  { %v6683_v51 = vld [vmem:[%s8975_s2 + $0xb8] sm:$0xff]   ;;  %6187 = vmatprep.subr.bf16.mxu1 %v6682_v9 }
 0x5fb   :  { %v2559_v52 = vpack.c.bf16 %v2551_v57, %v2549_v38  ;;  %v2558_v32 = vpack.c.bf16 %v2550_v4, %v2548_v59  ;;  %6188 = vmatpush3.bf16.msra.mxu1 %v6683_v51  ;;  %v6684_v38 = vld [vmem:[%s8975_s2 + $0xf0] sm:$0xff]   ;;  %v6686_v59 = vld [vmem:[%s8975_s2 + $0xe8] sm:$0xff]  }
 0x5fc   :  { %v6685_v57 = vld [vmem:[%s8975_s2 + $0xb0] sm:$0xff]   ;;  %6189 = vmatprep.subr.bf16.mxu1 %v6684_v38  ;;  %v6687_v4 = vld [vmem:[%s8975_s2 + $0xa8] sm:$0xff]  }
 0x5fd   :  { %2744 = vmatprep.mubr.bf16.mxu1 %v2559_v52  ;;  %v6688_v52 = vld [vmem:[%s8975_s2 + $0xe0] sm:$0xff]  }
 0x5fe   :  { %2745 = vmatmul.mubr.bf16.gmra.mxu1 %v2558_v32  ;;  %v6689_v32 = vld [vmem:[%s8975_s2 + $0xa0] sm:$0xff]  }
 0x5ff   :  { %6190 = vmatpush3.bf16.msra.mxu1 %v6685_v57 }
 0x600   :  { %6191 = vmatprep.subr.bf16.mxu1 %v6686_v59 }
 0x603   :  { %6192 = vmatpush3.bf16.msra.mxu1 %v6687_v4 }
 0x604   :  { %6193 = vmatprep.subr.bf16.mxu1 %v6688_v52 }
 0x607   :  { %6194 = vmatpush3.bf16.msra.mxu1 %v6689_v32 }
 0x608   :  { %6195 = vmatprep.subr.bf16.mxu1 %v6690_v6 }
 0x672   :  { %v2895_v13 = vpop.f32.mrf.mxu0 }
 0x673   :  { %v2934_v62 = vadd.f32 %v2895_v13, %v7717_v34  ;;  %v6691_v13 = vld [vmem:[%s8975_s2 + $0x98] sm:$0xff]  }
 0x674   :  { %v2897_v18 = vpop.f32.mrf.mxu0  ;;  %6196 = vmatpush3.bf16.msra.mxu1 %v6691_v13 }
 0x675   :  { %v2935_v40 = vadd.f32 %v2897_v18, %v7722_v37  ;;  %v7973_v53 = vadd.f32 %v7966_v61, %v2934_v62  ;;  %v6692_v62 = vld [vmem:[%s8975_s2 + $0xd0] sm:$0xff]  }
 0x676   :  { %v2899_v0 = vpop.f32.mrf.mxu0  ;;  %v6693_v18 = vld [vmem:[%s8975_s2 + $0x90] sm:$0xff]   ;;  %6197 = vmatprep.subr.bf16.mxu1 %v6692_v62 }
 0x677   :  { %v7976_v43 = vadd.f32 %v7969_v26, %v2935_v40  ;;  %v2936_v50 = vadd.f32 %v2899_v0, %v7727_v22  ;;  %v3016_v22 = vmul.f32 %v7973_v53, %v7973_v53  ;;  %v6694_v40 = vld [vmem:[%s8975_s2 + $0xc8] sm:$0xff]  }
 0x678   :  { %v2901_v58 = vpop.f32.mrf.mxu0  ;;  %6198 = vmatpush3.bf16.msra.mxu1 %v6693_v18  ;;  %v6695_v0 = vld [vmem:[%s8975_s2 + $0x88] sm:$0xff]  }
 0x679   :  { %v2937_v34 = vadd.f32 %v2901_v58, %v7738_v10  ;;  %v2984_v39 = vadd.f32 %v7976_v43, %v7973_v53  ;;  %v3017_v30 = vmul.f32 %v7976_v43, %v7976_v43  ;;  %v7985_v37 = vadd.f32 %v7966_v61, %v2936_v50  ;;  %6199 = vmatprep.subr.bf16.mxu1 %v6694_v40  ;;  %v6696_v50 = vld [vmem:[%s8975_s2 + $0xc0] sm:$0xff]  }
 0x67a   :  { %v2905_v33 = vpop.f32.mrf.mxu0  ;;  %v6697_v58 = vld [vmem:[%s8975_s2 + $0x80] sm:$0xff]  }
 0x67b   :  { %v7988_v54 = vadd.f32 %v7969_v26, %v2937_v34  ;;  %v2938_v24 = vadd.f32 %v2905_v33, %v7745_v17  ;;  %2985 = vadd.xlane.f32.xlu1 %v2984_v39  ;;  %v3032_v3 = vadd.f32 %v3017_v30, %v3016_v22  ;;  %v3018_v46 = vmul.f32 %v7985_v37, %v7985_v37 }
 0x67c   :  { %v2907_v10 = vpop.f32.mrf.mxu0  ;;  %6200 = vmatpush3.bf16.msra.mxu1 %v6695_v0 }
 0x67d   :  { %v2939_v42 = vadd.f32 %v2907_v10, %v7754_v60  ;;  %v2987_v31 = vadd.f32 %v7988_v54, %v7985_v37  ;;  %v3019_v63 = vmul.f32 %v7988_v54, %v7988_v54  ;;  %v8001_v17 = vadd.f32 %v7966_v61, %v2938_v24  ;;  %6201 = vmatprep.subr.bf16.mxu1 %v6696_v50 }
 0x67e   :  { %v2909_v45 = vpop.f32.mrf.mxu0 }
 0x67f   :  { %v8004_v29 = vadd.f32 %v7969_v26, %v2939_v42  ;;  %v2940_v44 = vadd.f32 %v2909_v45, %v7761_v19  ;;  %3033 = vadd.xlane.f32.xlu1 %v3032_v3  ;;  %2988 = vadd.xlane.f32.xlu0 %v2987_v31  ;;  %v3035_v12 = vadd.f32 %v3019_v63, %v3018_v46 }
 0x680   :  { %v2911_v60 = vpop.f32.mrf.mxu0  ;;  %v3020_v19 = vmul.f32 %v8001_v17, %v8001_v17  ;;  %6202 = vmatpush3.bf16.msra.mxu1 %v6697_v58 }
 0x681   :  { %v2941_v28 = vadd.f32 %v2911_v60, %v7768_v11  ;;  %v2990_v23 = vadd.f32 %v8004_v29, %v8001_v17  ;;  %v3021_v20 = vmul.f32 %v8004_v29, %v8004_v29  ;;  %v8013_v48 = vadd.f32 %v7966_v61, %v2940_v44 }
 0x683   :  { %v8016_v56 = vadd.f32 %v7969_v26, %v2941_v28  ;;  %3036 = vadd.xlane.f32.xlu0 %v3035_v12  ;;  %2991 = vadd.xlane.f32.xlu1 %v2990_v23  ;;  %v3038_v49 = vadd.f32 %v3021_v20, %v3020_v19  ;;  %v3022_v7 = vmul.f32 %v8013_v48, %v8013_v48 }
 0x685   :  { %v2993_v11 = vadd.f32 %v8016_v56, %v8013_v48  ;;  %v3023_v41 = vmul.f32 %v8016_v56, %v8016_v56 }
 0x687   :  { %3039 = vadd.xlane.f32.xlu1 %v3038_v49  ;;  %2994 = vadd.xlane.f32.xlu0 %v2993_v11  ;;  %v3041_v27 = vadd.f32 %v3023_v41, %v3022_v7 }
 0x68b   :  { %3042 = vadd.xlane.f32.xlu0 %v3041_v27 }
 0x6b6   :  { %v6175_v34 = vpop.f32.mrf.mxu1 }
 0x6b8   :  { %v6176_v39 = vpop.f32.mrf.mxu1 }
 0x6b9   :  { %v6177_v30 = vadd.f32 %v6176_v39, %v6175_v34 }
 0x6ba   :  { %v6178_v33 = vpop.f32.mrf.mxu1 }
 0x6bb   :  { %v2739_v22 = vadd.f32 %v6177_v30, %v7932_v55 }
 0x6bc   :  { %v6179_v24 = vpop.f32.mrf.mxu1 }
 0x6bd   :  { %v6180_v10 = vadd.f32 %v6179_v24, %v6178_v33  ;;  %v2757_v63 = vmax.f32 %v2739_v22, 0.0 }
 0x6be   :  { %v6181_v42 = vpop.f32.mrf.mxu1 }
 0x6bf   :  { %v2742_v3 = vadd.f32 %v6180_v10, %v7932_v55 }
 0x6c0   :  { %v6182_v31 = vpop.f32.mrf.mxu1 }
 0x6c1   :  { %v2758_v45 = vmax.f32 %v2742_v3, 0.0  ;;  %v6183_v46 = vadd.f32 %v6182_v31, %v6181_v42  ;;  %v2978_v3 = vld [vmem:[#allocation7 + $0xb1] ss:$8 sm:$0x3] }
 0x6c2   :  { %v6184_v44 = vpop.f32.mrf.mxu1 }
 0x6c3   :  { %v2763_v60 = vpack.c.bf16 %v2758_v45, %v2757_v63  ;;  %v2747_v12 = vadd.f32 %v6183_v46, %v7932_v55  ;;  %v8087_v46 = vrot.slane %v2978_v3, %v7842_v35 }
 0x6c4   :  { %v6185_v28 = vpop.f32.mrf.mxu1 }
 0x6c5   :  { %v6186_v23 = vadd.f32 %v6185_v28, %v6184_v44  ;;  %2914 = vmatmul.mubr.bf16.gmra.mxu0 %v2763_v60  ;;  %v2759_v19 = vmax.f32 %v2747_v12, 0.0  ;;  %v8090_v44 = vrot.slane %v2978_v3, %v7844_v2  ;;  %v2980_v60 = vld [vmem:[#allocation7 + $0xb5] ss:$8 sm:$0x3] }
 0x6c6   :  { %2923 = vmatprep.mubr.bf16.mxu0 %v9051_v1 }
 0x6c7   :  { %v2750_v20 = vadd.f32 %v6186_v23, %v7932_v55  ;;  %v6698_v23 = vld [vmem:[#allocation5 + $0xf0] ss:$8 sps:$4 sm:$0xff]  }
 0x6c9   :  { %v2760_v49 = vmax.f32 %v2750_v20, 0.0  ;;  %v6700_v20 = vld [vmem:[#allocation5 + $0xf4] ss:$8 sps:$4 sm:$0xff]  }
 0x6ca   :  { %3493 = vmatprep.subr.bf16.mxu0 %v6700_v20 }
 0x6cb   :  { %v2764_v11 = vpack.c.bf16 %v2760_v49, %v2759_v19  ;;  %3494 = vmatpush1.bf16.msra.mxu0 %v6698_v23 }
 0x6cd   :  { %2924 = vmatmul.mubr.bf16.gmra.mxu0 %v2764_v11  ;;  %v6703_v11 = vld [vmem:[#allocation5 + $0xe4] ss:$8 sps:$4 sm:$0xff]  }
 0x6ce   :  { %3525 = vmatprep.mubr.bf16.mxu0 %v9051_v1  ;;  %3495 = vmatprep.subr.bf16.mxu0 %v6703_v11  ;;  %v6710_v11 = vld [vmem:[#allocation5 + $0xb0] ss:$8 sps:$4 sm:$0xff]  }
 0x704   :  { %v2986_v41 = vpop.xlane.xlu1 %2985 }
 0x705   :  { %v3008_v7 = vmul.f32 0.00390625, %v2986_v41 }
 0x707   :  { %v3064_v38 = vmul.f32 %v3008_v7, %v3008_v7  ;;  %v3080_v31 = vsub.f32 %v7973_v53, %v3008_v7  ;;  %v3081_v63 = vsub.f32 %v7976_v43, %v3008_v7 }
 0x708   :  { %v2989_v27 = vpop.xlane.xlu0 %2988  ;;  %v3034_v9 = vpop.xlane.xlu1 %3033 }
 0x709   :  { %v3009_v51 = vmul.f32 0.00390625, %v2989_v27  ;;  %v3056_v57 = vmul.f32 0.00390625, %v3034_v9  ;;  %v8096_v27 = vrot.slane %v2980_v60, %v7842_v35  ;;  %v8099_v9 = vrot.slane %v2980_v60, %v7844_v2  ;;  %v6707_v60 = vld [vmem:[#allocation5 + $0xc0] ss:$8 sps:$4 sm:$0xff]  }
 0x70b   :  { %v3072_v59 = vsub.f32 %v3056_v57, %v3064_v38  ;;  %v3065_v6 = vmul.f32 %v3009_v51, %v3009_v51  ;;  %v3082_v19 = vsub.f32 %v7985_v37, %v3009_v51  ;;  %v3083_v49 = vsub.f32 %v7988_v54, %v3009_v51 }
 0x70c   :  { %v3037_v4 = vpop.xlane.xlu0 %3036  ;;  %v2992_v52 = vpop.xlane.xlu1 %2991 }
 0x70d   :  { %v3096_v32 = vadd.f32 1e-05, %v3072_v59  ;;  %v3057_v13 = vmul.f32 0.00390625, %v3037_v4  ;;  %v3010_v55 = vmul.f32 0.00390625, %v2992_v52  ;;  %v6701_v4 = vld [vmem:[#allocation5 + $0xe0] ss:$8 sps:$4 sm:$0xff]  }
 0x70e   :  { %v6706_v52 = vld [vmem:[#allocation5 + $0xd4] ss:$8 sps:$4 sm:$0xff]   ;;  %3496 = vmatpush1.bf16.msra.mxu0 %v6701_v4  ;;  %v6716_v4 = vld [vmem:[#allocation5 + $0x90] ss:$8 sps:$4 sm:$0xff]  }
 0x70f   :  { %6818 = vrsqrt.f32 %v3096_v32  ;;  %v3073_v62 = vsub.f32 %v3057_v13, %v3065_v6  ;;  %v3066_v58 = vmul.f32 %v3010_v55, %v3010_v55  ;;  %v3084_v51 = vsub.f32 %v8001_v17, %v3010_v55  ;;  %3497 = vmatprep.subr.bf16.mxu0 %v6706_v52  ;;  %v6721_v52 = vld [vmem:[#allocation5 + $0x84] ss:$8 sps:$4 sm:$0xff]  }
 0x710   :  { %v2995_v18 = vpop.xlane.xlu0 %2994  ;;  %v3040_v40 = vpop.xlane.xlu1 %3039  ;;  %v3085_v32 = vsub.f32 %v8004_v29, %v3010_v55 }
 0x711   :  { %v3097_v0 = vadd.f32 1e-05, %v3073_v62  ;;  %v8080_v50 = vmul.f32 0.00390625, %v2995_v18  ;;  %v3058_v34 = vmul.f32 0.00390625, %v3040_v40 }
 0x713   :  { %6820 = vrsqrt.f32 %v3097_v0  ;;  %v3074_v39 = vsub.f32 %v3058_v34, %v3066_v58  ;;  %v3067_v24 = vmul.f32 %v8080_v50, %v8080_v50  ;;  %v3086_v55 = vsub.f32 %v8013_v48, %v8080_v50 }
 0x714   :  { %v3043_v30 = vpop.xlane.xlu0 %3042 }
 0x715   :  { %v3098_v33 = vadd.f32 1e-05, %v3074_v39  ;;  %v3059_v22 = vmul.f32 0.00390625, %v3043_v30  ;;  %v6704_v30 = vld [vmem:[#allocation5 + $0xd0] ss:$8 sps:$4 sm:$0xff]  }
 0x716   :  { %3498 = vmatpush1.bf16.msra.mxu0 %v6704_v30 }
 0x717   :  { %6822 = vrsqrt.f32 %v3098_v33  ;;  %v3075_v10 = vsub.f32 %v3059_v22, %v3067_v24  ;;  %v3087_v33 = vsub.f32 %v8016_v56, %v8080_v50  ;;  %v6712_v50 = vld [vmem:[#allocation5 + $0xb4] ss:$8 sps:$4 sm:$0xff]  }
 0x719   :  { %v3099_v42 = vadd.f32 1e-05, %v3075_v10  ;;  %v6709_v10 = vld [vmem:[#allocation5 + $0xc4] ss:$8 sps:$4 sm:$0xff]  }
 0x71a   :  { %3499 = vmatprep.subr.bf16.mxu0 %v6709_v10 }
 0x71b   :  { %6824 = vrsqrt.f32 %v3099_v42  ;;  %3500 = vmatpush1.bf16.msra.mxu0 %v6707_v60 }
 0x71c   :  { %v6819_v45 = vpop.eup %6818  ;;  %3501 = vmatprep.subr.bf16.mxu0 %v6712_v50 }
 0x71d   :  { %v3113_v28 = vmul.f32 %v6819_v45, %v3081_v63  ;;  %v3112_v12 = vmul.f32 %v6819_v45, %v3080_v31 }
 0x71f   :  { %v3140_v7 = vmul.f32 %v8090_v44, %v3113_v28  ;;  %v3139_v38 = vmul.f32 %v8087_v46, %v3112_v12  ;;  %3502 = vmatpush1.bf16.msra.mxu0 %v6710_v11 }
 0x720   :  { %v6821_v41 = vpop.eup %6820 }
 0x721   :  { %v3115_v57 = vmul.f32 %v6821_v41, %v3083_v49  ;;  %v3114_v59 = vmul.f32 %v6821_v41, %v3082_v19  ;;  %v3167_v18 = vadd.f32 %v8099_v9, %v3140_v7  ;;  %v3166_v40 = vadd.f32 %v8096_v27, %v3139_v38  ;;  %v6715_v38 = vld [vmem:[#allocation5 + $0xa4] ss:$8 sps:$4 sm:$0xff]  }
 0x722   :  { %3503 = vmatprep.subr.bf16.mxu0 %v6715_v38 }
 0x723   :  { %v3142_v6 = vmul.f32 %v8090_v44, %v3115_v57  ;;  %v3141_v13 = vmul.f32 %v8087_v46, %v3114_v59  ;;  %v6713_v57 = vld [vmem:[#allocation5 + $0xa0] ss:$8 sps:$4 sm:$0xff]   ;;  %v6718_v59 = vld [vmem:[#allocation5 + $0x94] ss:$8 sps:$4 sm:$0xff]  }
 0x724   :  { %v6823_v62 = vpop.eup %6822  ;;  %3504 = vmatpush1.bf16.msra.mxu0 %v6713_v57  ;;  %v8178_v57 = vld [vmem:[#allocation7 + $0xc1] ss:$0 sm:$0xff] }
 0x725   :  { %v3169_v0 = vadd.f32 %v8099_v9, %v3142_v6  ;;  %v3168_v58 = vadd.f32 %v8096_v27, %v3141_v13  ;;  %v3117_v34 = vmul.f32 %v6823_v62, %v3085_v32  ;;  %v3116_v39 = vmul.f32 %v6823_v62, %v3084_v51  ;;  %3505 = vmatprep.subr.bf16.mxu0 %v6718_v59  ;;  %v6719_v51 = vld [vmem:[#allocation5 + $0x80] ss:$8 sps:$4 sm:$0xff]  }
 0x727   :  { %v3183_v24 = vpack.c.bf16 %v3169_v0, %v3167_v18  ;;  %v3182_v22 = vpack.c.bf16 %v3168_v58, %v3166_v40  ;;  %v3144_v31 = vmul.f32 %v8090_v44, %v3117_v34  ;;  %v3143_v45 = vmul.f32 %v8087_v46, %v3116_v39 }
 0x728   :  { %v6825_v42 = vpop.eup %6824  ;;  %3506 = vmatpush1.bf16.msra.mxu0 %v6716_v4 }
 0x729   :  { %3351 = vmatprep.mubr.bf16.mxu1 %v3183_v24  ;;  %v3119_v3 = vmul.f32 %v6825_v42, %v3087_v33  ;;  %v3118_v63 = vmul.f32 %v6825_v42, %v3086_v55  ;;  %v3171_v23 = vadd.f32 %v8099_v9, %v3144_v31  ;;  %v3170_v19 = vadd.f32 %v8096_v27, %v3143_v45 }
 0x72a   :  { %3352 = vmatmul.mubr.bf16.vlgmr.msra.gmra.mxu1 %v3182_v22  ;;  %3507 = vmatprep.subr.bf16.mxu0 %v6721_v52 }
 0x72b   :  { %v3146_v28 = vmul.f32 %v8090_v44, %v3119_v3  ;;  %v3145_v12 = vmul.f32 %v8087_v46, %v3118_v63 }
 0x72c   :  { %3508 = vmatpush1.bf16.msra.mxu0 %v6719_v51 }
 0x72d   :  { %v3173_v20 = vadd.f32 %v8099_v9, %v3146_v28  ;;  %v3172_v49 = vadd.f32 %v8096_v27, %v3145_v12 }
 0x72f   :  { %v3185_v41 = vpack.c.bf16 %v3173_v20, %v3171_v23  ;;  %v3184_v7 = vpack.c.bf16 %v3172_v49, %v3170_v19 }
 0x731   :  { %3359 = vmatprep.mubr.bf16.mxu1 %v3185_v41 }
 0x732   :  { %3360 = vmatmul.mubr.bf16.gmra.mxu1 %v3184_v7 }
 0x785   :  { %v2915_v32 = vpop.f32.mrf.mxu0 }
 0x786   :  { %v2942_v6 = vadd.f32 %v2915_v32, %v7885_v21 }
 0x787   :  { %v2917_v13 = vpop.f32.mrf.mxu0 }
 0x788   :  { %v2943_v62 = vadd.f32 %v2917_v13, %v7888_v5  ;;  %v8125_v40 = vadd.f32 %v7966_v61, %v2942_v6 }
 0x789   :  { %v2919_v18 = vpop.f32.mrf.mxu0 }
 0x78a   :  { %v8128_v0 = vadd.f32 %v7969_v26, %v2943_v62  ;;  %v2944_v58 = vadd.f32 %v2919_v18, %v7895_v15  ;;  %v3024_v15 = vmul.f32 %v8125_v40, %v8125_v40 }
 0x78b   :  { %v2921_v34 = vpop.f32.mrf.mxu0 }
 0x78c   :  { %v2945_v39 = vadd.f32 %v2921_v34, %v7898_v47  ;;  %v2996_v30 = vadd.f32 %v8128_v0, %v8125_v40  ;;  %v3025_v21 = vmul.f32 %v8128_v0, %v8128_v0  ;;  %v8137_v5 = vadd.f32 %v7966_v61, %v2944_v58 }
 0x78d   :  { %v2925_v55 = vpop.f32.mrf.mxu0 }
 0x78e   :  { %v8140_v33 = vadd.f32 %v7969_v26, %v2945_v39  ;;  %v2946_v24 = vadd.f32 %v2925_v55, %v7907_v8  ;;  %2997 = vadd.xlane.f32.xlu1 %v2996_v30  ;;  %v3044_v10 = vadd.f32 %v3025_v21, %v3024_v15  ;;  %v3026_v63 = vmul.f32 %v8137_v5, %v8137_v5 }
 0x78f   :  { %v2927_v47 = vpop.f32.mrf.mxu0 }
 0x790   :  { %v2947_v22 = vadd.f32 %v2927_v47, %v7910_v36  ;;  %v2999_v42 = vadd.f32 %v8140_v33, %v8137_v5  ;;  %v3027_v3 = vmul.f32 %v8140_v33, %v8140_v33  ;;  %v8153_v8 = vadd.f32 %v7966_v61, %v2946_v24 }
 0x791   :  { %v2929_v31 = vpop.f32.mrf.mxu0 }
 0x792   :  { %v8156_v45 = vadd.f32 %v7969_v26, %v2947_v22  ;;  %v2948_v60 = vadd.f32 %v2929_v31, %v7919_v14  ;;  %3045 = vadd.xlane.f32.xlu1 %v3044_v10  ;;  %3000 = vadd.xlane.f32.xlu0 %v2999_v42  ;;  %v3047_v12 = vadd.f32 %v3027_v3, %v3026_v63 }
 0x793   :  { %v2931_v36 = vpop.f32.mrf.mxu0  ;;  %v3028_v14 = vmul.f32 %v8153_v8, %v8153_v8 }
 0x794   :  { %v2949_v28 = vadd.f32 %v2931_v36, %v7922_v16  ;;  %v3002_v50 = vadd.f32 %v8156_v45, %v8153_v8  ;;  %v3029_v23 = vmul.f32 %v8156_v45, %v8156_v45  ;;  %v8165_v20 = vadd.f32 %v7966_v61, %v2948_v60 }
 0x796   :  { %v8168_v19 = vadd.f32 %v7969_v26, %v2949_v28  ;;  %3048 = vadd.xlane.f32.xlu0 %v3047_v12  ;;  %3003 = vadd.xlane.f32.xlu1 %v3002_v50  ;;  %v3050_v49 = vadd.f32 %v3029_v23, %v3028_v14  ;;  %v3030_v61 = vmul.f32 %v8165_v20, %v8165_v20 }
 0x798   :  { %v3005_v16 = vadd.f32 %v8168_v19, %v8165_v20  ;;  %v3031_v11 = vmul.f32 %v8168_v19, %v8168_v19 }
 0x79a   :  { %3051 = vadd.xlane.f32.xlu1 %v3050_v49  ;;  %3006 = vadd.xlane.f32.xlu0 %v3005_v16  ;;  %v3053_v41 = vadd.f32 %v3031_v11, %v3030_v61 }
 0x79e   :  { %3054 = vadd.xlane.f32.xlu0 %v3053_v41 }
 0x7ea   :  { %v6203_v26 = vpop.f32.mrf.mxu1 }
 0x7ec   :  { %v6204_v7 = vpop.f32.mrf.mxu1 }
 0x7ed   :  { %v6205_v38 = vadd.f32 %v6204_v7, %v6203_v26 }
 0x7ee   :  { %v6206_v59 = vpop.f32.mrf.mxu1 }
 0x7ef   :  { %v3354_v52 = vadd.f32 %v6205_v38, %v8178_v57 }
 0x7f0   :  { %v6207_v4 = vpop.f32.mrf.mxu1 }
 0x7f1   :  { %v6208_v51 = vadd.f32 %v6207_v4, %v6206_v59  ;;  %v3384_v62 = vmax.f32 %v3354_v52, 0.0 }
 0x7f2   :  { %v6209_v32 = vpop.f32.mrf.mxu1 }
 0x7f3   :  { %v3357_v6 = vadd.f32 %v6208_v51, %v8178_v57 }
 0x7f4   :  { %v6210_v13 = vpop.f32.mrf.mxu1 }
 0x7f5   :  { %v3385_v18 = vmax.f32 %v3357_v6, 0.0  ;;  %v6211_v58 = vadd.f32 %v6210_v13, %v6209_v32 }
 0x7f6   :  { %v6212_v34 = vpop.f32.mrf.mxu1 }
 0x7f7   :  { %v3392_v39 = vpack.c.bf16 %v3385_v18, %v3384_v62  ;;  %v3362_v21 = vadd.f32 %v6211_v58, %v8178_v57 }
 0x7f8   :  { %v6213_v30 = vpop.f32.mrf.mxu1 }
 0x7f9   :  { %v6214_v55 = vadd.f32 %v6213_v30, %v6212_v34  ;;  %3526 = vmatmul.mubr.bf16.vlgmr.msra.gmra.mxu0 %v3392_v39  ;;  %v3386_v15 = vmax.f32 %v3362_v21, 0.0 }
 0x7fa   :  { %3535 = vmatprep.mubr.bf16.mxu0 %v9051_v1 }
 0x7fb   :  { %v3365_v24 = vadd.f32 %v6214_v55, %v8178_v57 }
 0x7fd   :  { %v3387_v47 = vmax.f32 %v3365_v24, 0.0 }
 0x7ff   :  { %v3393_v22 = vpack.c.bf16 %v3387_v47, %v3386_v15 }
 0x801   :  { %3536 = vmatmul.mubr.bf16.gmra.mxu0 %v3393_v22 }
 0x802   :  { %3545 = vmatprep.mubr.bf16.mxu0 %v9051_v1 }
 0x817   :  { %v2998_v10 = vpop.xlane.xlu1 %2997 }
 0x818   :  { %v3012_v42 = vmul.f32 0.00390625, %v2998_v10 }
 0x81a   :  { %v3068_v60 = vmul.f32 %v3012_v42, %v3012_v42  ;;  %v3088_v18 = vsub.f32 %v8125_v40, %v3012_v42  ;;  %v3089_v58 = vsub.f32 %v8128_v0, %v3012_v42 }
 0x81b   :  { %v3001_v3 = vpop.xlane.xlu0 %3000  ;;  %v3046_v31 = vpop.xlane.xlu1 %3045 }
 0x81c   :  { %v3013_v63 = vmul.f32 0.00390625, %v3001_v3  ;;  %v3060_v36 = vmul.f32 0.00390625, %v3046_v31 }
 0x81e   :  { %v3076_v28 = vsub.f32 %v3060_v36, %v3068_v60  ;;  %v3069_v14 = vmul.f32 %v3013_v63, %v3013_v63  ;;  %v3090_v21 = vsub.f32 %v8137_v5, %v3013_v63  ;;  %v3091_v55 = vsub.f32 %v8140_v33, %v3013_v63 }
 0x81f   :  { %v3049_v12 = vpop.xlane.xlu0 %3048  ;;  %v3004_v50 = vpop.xlane.xlu1 %3003 }
 0x820   :  { %v3100_v23 = vadd.f32 1e-05, %v3076_v28  ;;  %v3061_v49 = vmul.f32 0.00390625, %v3049_v12  ;;  %v3014_v16 = vmul.f32 0.00390625, %v3004_v50 }
 0x822   :  { %6826 = vrsqrt.f32 %v3100_v23  ;;  %v3077_v11 = vsub.f32 %v3061_v49, %v3069_v14  ;;  %v3070_v38 = vmul.f32 %v3014_v16, %v3014_v16  ;;  %v3092_v3 = vsub.f32 %v8153_v8, %v3014_v16 }
 0x823   :  { %v3007_v61 = vpop.xlane.xlu0 %3006  ;;  %v3052_v41 = vpop.xlane.xlu1 %3051  ;;  %v3093_v31 = vsub.f32 %v8156_v45, %v3014_v16 }
 0x824   :  { %v3101_v26 = vadd.f32 1e-05, %v3077_v11  ;;  %v3015_v7 = vmul.f32 0.00390625, %v3007_v61  ;;  %v3062_v59 = vmul.f32 0.00390625, %v3052_v41 }
 0x826   :  { %6828 = vrsqrt.f32 %v3101_v26  ;;  %v3078_v4 = vsub.f32 %v3062_v59, %v3070_v38  ;;  %v3071_v32 = vmul.f32 %v3015_v7, %v3015_v7  ;;  %v3094_v49 = vsub.f32 %v8165_v20, %v3015_v7 }
 0x827   :  { %v3055_v52 = vpop.xlane.xlu0 %3054  ;;  %v3095_v11 = vsub.f32 %v8168_v19, %v3015_v7 }
 0x828   :  { %v3102_v51 = vadd.f32 1e-05, %v3078_v4  ;;  %v3063_v6 = vmul.f32 0.00390625, %v3055_v52 }
 0x82a   :  { %6830 = vrsqrt.f32 %v3102_v51  ;;  %v3079_v13 = vsub.f32 %v3063_v6, %v3071_v32 }
 0x82c   :  { %v3103_v62 = vadd.f32 1e-05, %v3079_v13 }
 0x82e   :  { %6832 = vrsqrt.f32 %v3103_v62 }
 0x82f   :  { %v6827_v34 = vpop.eup %6826 }
 0x830   :  { %v3121_v39 = vmul.f32 %v6827_v34, %v3089_v58  ;;  %v3120_v30 = vmul.f32 %v6827_v34, %v3088_v18  ;;  %v2983_v58 = vld [vmem:[#allocation7 + $0xc5] ss:$8 sm:$0x3] }
 0x832   :  { %v3148_v15 = vmul.f32 %v8090_v44, %v3121_v39  ;;  %v3147_v47 = vmul.f32 %v8087_v46, %v3120_v30 }
 0x833   :  { %v6829_v24 = vpop.eup %6828 }
 0x834   :  { %v3123_v22 = vmul.f32 %v6829_v24, %v3091_v55  ;;  %v3122_v10 = vmul.f32 %v6829_v24, %v3090_v21  ;;  %v3175_v28 = vadd.f32 %v8099_v9, %v3148_v15  ;;  %v3174_v63 = vadd.f32 %v8096_v27, %v3147_v47 }
 0x836   :  { %v3150_v42 = vmul.f32 %v8090_v44, %v3123_v22  ;;  %v3149_v60 = vmul.f32 %v8087_v46, %v3122_v10 }
 0x837   :  { %v6831_v36 = vpop.eup %6830 }
 0x838   :  { %v3177_v12 = vadd.f32 %v8099_v9, %v3150_v42  ;;  %v3176_v50 = vadd.f32 %v8096_v27, %v3149_v60  ;;  %v3125_v23 = vmul.f32 %v6831_v36, %v3093_v31  ;;  %v3124_v14 = vmul.f32 %v6831_v36, %v3092_v3 }
 0x83a   :  { %v3187_v16 = vpack.c.bf16 %v3177_v12, %v3175_v28  ;;  %v3186_v61 = vpack.c.bf16 %v3176_v50, %v3174_v63  ;;  %v3152_v38 = vmul.f32 %v8090_v44, %v3125_v23  ;;  %v3151_v4 = vmul.f32 %v8087_v46, %v3124_v14 }
 0x83b   :  { %v6833_v41 = vpop.eup %6832 }
 0x83c   :  { %3367 = vmatprep.mubr.bf16.mxu1 %v3187_v16  ;;  %v3127_v26 = vmul.f32 %v6833_v41, %v3095_v11  ;;  %v3126_v59 = vmul.f32 %v6833_v41, %v3094_v49  ;;  %v3179_v32 = vadd.f32 %v8099_v9, %v3152_v38  ;;  %v3178_v7 = vadd.f32 %v8096_v27, %v3151_v4 }
 0x83d   :  { %3368 = vmatmul.mubr.bf16.gmra.mxu1 %v3186_v61 }
 0x83e   :  { %v3154_v52 = vmul.f32 %v8090_v44, %v3127_v26  ;;  %v3153_v51 = vmul.f32 %v8087_v46, %v3126_v59  ;;  %v8212_v44 = vrot.slane %v2983_v58, %v7842_v35  ;;  %v8215_v46 = vrot.slane %v2983_v58, %v7844_v2  ;;  %v6730_v58 = vld [vmem:[%s8975_s2 + $0x158] sm:$0xff]  }
 0x840   :  { %v3181_v6 = vadd.f32 %v8099_v9, %v3154_v52  ;;  %v3180_v13 = vadd.f32 %v8096_v27, %v3153_v51  ;;  %v6722_v52 = vld [vmem:[%s8975_s2 + $0x178] sm:$0xff]  }
 0x841   :  { %v6723_v51 = vld [vmem:[%s8975_s2 + $0x138] sm:$0xff]   ;;  %6227 = vmatprep.subr.bf16.mxu1 %v6722_v52 }
 0x842   :  { %v3189_v62 = vpack.c.bf16 %v3181_v6, %v3179_v32  ;;  %v3188_v18 = vpack.c.bf16 %v3180_v13, %v3178_v7  ;;  %6228 = vmatpush3.bf16.msra.mxu1 %v6723_v51  ;;  %v6724_v32 = vld [vmem:[%s8975_s2 + $0x170] sm:$0xff]   ;;  %v6726_v7 = vld [vmem:[%s8975_s2 + $0x168] sm:$0xff]  }
 0x843   :  { %v6725_v6 = vld [vmem:[%s8975_s2 + $0x130] sm:$0xff]   ;;  %6229 = vmatprep.subr.bf16.mxu1 %v6724_v32  ;;  %v6727_v13 = vld [vmem:[%s8975_s2 + $0x128] sm:$0xff]  }
 0x844   :  { %3375 = vmatprep.mubr.bf16.mxu1 %v3189_v62  ;;  %v6728_v62 = vld [vmem:[%s8975_s2 + $0x160] sm:$0xff]  }
 0x845   :  { %3376 = vmatmul.mubr.bf16.gmra.mxu1 %v3188_v18  ;;  %v6729_v18 = vld [vmem:[%s8975_s2 + $0x120] sm:$0xff]  }
 0x846   :  { %6230 = vmatpush3.bf16.msra.mxu1 %v6725_v6 }
 0x847   :  { %6231 = vmatprep.subr.bf16.mxu1 %v6726_v7 }
 0x84a   :  { %6232 = vmatpush3.bf16.msra.mxu1 %v6727_v13 }
 0x84b   :  { %6233 = vmatprep.subr.bf16.mxu1 %v6728_v62 }
 0x84e   :  { %6234 = vmatpush3.bf16.msra.mxu1 %v6729_v18 }
 0x84f   :  { %6235 = vmatprep.subr.bf16.mxu1 %v6730_v58 }
 0x8b9   :  { %v3527_v34 = vpop.f32.mrf.mxu0 }
 0x8ba   :  { %v3566_v39 = vadd.f32 %v3527_v34, %v7973_v53  ;;  %v6731_v34 = vld [vmem:[%s8975_s2 + $0x118] sm:$0xff]  }
 0x8bb   :  { %v3529_v30 = vpop.f32.mrf.mxu0  ;;  %6236 = vmatpush3.bf16.msra.mxu1 %v6731_v34 }
 0x8bc   :  { %v3567_v9 = vadd.f32 %v3529_v30, %v7976_v43  ;;  %v8219_v27 = vadd.f32 %v8212_v44, %v3566_v39  ;;  %v6732_v39 = vld [vmem:[%s8975_s2 + $0x150] sm:$0xff]  }
 0x8bd   :  { %v3531_v21 = vpop.f32.mrf.mxu0  ;;  %v6733_v30 = vld [vmem:[%s8975_s2 + $0x110] sm:$0xff]   ;;  %6237 = vmatprep.subr.bf16.mxu1 %v6732_v39 }
 0x8be   :  { %v8222_v55 = vadd.f32 %v8215_v46, %v3567_v9  ;;  %v3568_v24 = vadd.f32 %v3531_v21, %v7985_v37  ;;  %v3648_v37 = vmul.f32 %v8219_v27, %v8219_v27  ;;  %v6734_v9 = vld [vmem:[%s8975_s2 + $0x148] sm:$0xff]  }
 0x8bf   :  { %v3533_v15 = vpop.f32.mrf.mxu0  ;;  %6238 = vmatpush3.bf16.msra.mxu1 %v6733_v30  ;;  %v6735_v21 = vld [vmem:[%s8975_s2 + $0x108] sm:$0xff]  }
 0x8c0   :  { %v3569_v53 = vadd.f32 %v3533_v15, %v7988_v54  ;;  %v3616_v47 = vadd.f32 %v8222_v55, %v8219_v27  ;;  %v3649_v22 = vmul.f32 %v8222_v55, %v8222_v55  ;;  %v8231_v43 = vadd.f32 %v8212_v44, %v3568_v24  ;;  %v6736_v24 = vld [vmem:[%s8975_s2 + $0x140] sm:$0xff]   ;;  %6239 = vmatprep.subr.bf16.mxu1 %v6734_v9 }
 0x8c1   :  { %v3537_v10 = vpop.f32.mrf.mxu0  ;;  %v6737_v15 = vld [vmem:[%s8975_s2 + $0x100] sm:$0xff]  }
 0x8c2   :  { %v8234_v3 = vadd.f32 %v8215_v46, %v3569_v53  ;;  %v3570_v31 = vadd.f32 %v3537_v10, %v8001_v17  ;;  %3617 = vadd.xlane.f32.xlu1 %v3616_v47  ;;  %v3664_v60 = vadd.f32 %v3649_v22, %v3648_v37  ;;  %v3650_v12 = vmul.f32 %v8231_v43, %v8231_v43 }
 0x8c3   :  { %v3539_v54 = vpop.f32.mrf.mxu0  ;;  %6240 = vmatpush3.bf16.msra.mxu1 %v6735_v21 }
 0x8c4   :  { %v3571_v42 = vadd.f32 %v3539_v54, %v8004_v29  ;;  %v3619_v36 = vadd.f32 %v8234_v3, %v8231_v43  ;;  %v3651_v28 = vmul.f32 %v8234_v3, %v8234_v3  ;;  %v8247_v17 = vadd.f32 %v8212_v44, %v3570_v31  ;;  %6241 = vmatprep.subr.bf16.mxu1 %v6736_v24 }
 0x8c5   :  { %v3541_v63 = vpop.f32.mrf.mxu0 }
 0x8c6   :  { %v8250_v50 = vadd.f32 %v8215_v46, %v3571_v42  ;;  %v3572_v23 = vadd.f32 %v3541_v63, %v8013_v48  ;;  %3665 = vadd.xlane.f32.xlu1 %v3664_v60  ;;  %3620 = vadd.xlane.f32.xlu0 %v3619_v36  ;;  %v3667_v49 = vadd.f32 %v3651_v28, %v3650_v12 }
 0x8c7   :  { %v3543_v29 = vpop.f32.mrf.mxu0  ;;  %v3652_v48 = vmul.f32 %v8247_v17, %v8247_v17  ;;  %6242 = vmatpush3.bf16.msra.mxu1 %v6737_v15 }
 0x8c8   :  { %v3573_v14 = vadd.f32 %v3543_v29, %v8016_v56  ;;  %v3622_v11 = vadd.f32 %v8250_v50, %v8247_v17  ;;  %v3653_v16 = vmul.f32 %v8250_v50, %v8250_v50  ;;  %v8259_v61 = vadd.f32 %v8212_v44, %v3572_v23 }
 0x8ca   :  { %v8262_v41 = vadd.f32 %v8215_v46, %v3573_v14  ;;  %3668 = vadd.xlane.f32.xlu0 %v3667_v49  ;;  %3623 = vadd.xlane.f32.xlu1 %v3622_v11  ;;  %v3670_v26 = vadd.f32 %v3653_v16, %v3652_v48  ;;  %v3654_v59 = vmul.f32 %v8259_v61, %v8259_v61 }
 0x8cc   :  { %v3625_v56 = vadd.f32 %v8262_v41, %v8259_v61  ;;  %v3655_v38 = vmul.f32 %v8262_v41, %v8262_v41 }
 0x8ce   :  { %3671 = vadd.xlane.f32.xlu1 %v3670_v26  ;;  %3626 = vadd.xlane.f32.xlu0 %v3625_v56  ;;  %v3673_v4 = vadd.f32 %v3655_v38, %v3654_v59 }
 0x8d2   :  { %3674 = vadd.xlane.f32.xlu0 %v3673_v4 }
 0x8fd   :  { %v6215_v53 = vpop.f32.mrf.mxu1 }
 0x8ff   :  { %v6216_v47 = vpop.f32.mrf.mxu1 }
 0x900   :  { %v6217_v22 = vadd.f32 %v6216_v47, %v6215_v53 }
 0x901   :  { %v6218_v10 = vpop.f32.mrf.mxu1 }
 0x902   :  { %v3370_v37 = vadd.f32 %v6217_v22, %v8178_v57 }
 0x903   :  { %v6219_v31 = vpop.f32.mrf.mxu1 }
 0x904   :  { %v6220_v54 = vadd.f32 %v6219_v31, %v6218_v10  ;;  %v3388_v28 = vmax.f32 %v3370_v37, 0.0 }
 0x905   :  { %v6221_v42 = vpop.f32.mrf.mxu1 }
 0x906   :  { %v3373_v60 = vadd.f32 %v6220_v54, %v8178_v57 }
 0x907   :  { %v6222_v36 = vpop.f32.mrf.mxu1 }
 0x908   :  { %v3389_v63 = vmax.f32 %v3373_v60, 0.0  ;;  %v6223_v12 = vadd.f32 %v6222_v36, %v6221_v42  ;;  %v3610_v60 = vld [vmem:[#allocation7 + $0xb2] ss:$8 sm:$0x3] }
 0x909   :  { %v6224_v23 = vpop.f32.mrf.mxu1 }
 0x90a   :  { %v3394_v29 = vpack.c.bf16 %v3389_v63, %v3388_v28  ;;  %v3378_v49 = vadd.f32 %v6223_v12, %v8178_v57  ;;  %v8333_v12 = vrot.slane %v3610_v60, %v7842_v35 }
 0x90b   :  { %v6225_v14 = vpop.f32.mrf.mxu1 }
 0x90c   :  { %v6226_v11 = vadd.f32 %v6225_v14, %v6224_v23  ;;  %3546 = vmatmul.mubr.bf16.gmra.mxu0 %v3394_v29  ;;  %v3390_v48 = vmax.f32 %v3378_v49, 0.0  ;;  %v8336_v23 = vrot.slane %v3610_v60, %v7844_v2  ;;  %v3612_v14 = vld [vmem:[#allocation7 + $0xb6] ss:$8 sm:$0x3] }
 0x90d   :  { %3555 = vmatprep.mubr.bf16.mxu0 %v9051_v1 }
 0x90e   :  { %v3381_v16 = vadd.f32 %v6226_v11, %v8178_v57  ;;  %v6738_v11 = vld [vmem:[#allocation5 + $0x170] ss:$8 sps:$4 sm:$0xff]  }
 0x910   :  { %v3391_v26 = vmax.f32 %v3381_v16, 0.0  ;;  %v6740_v16 = vld [vmem:[#allocation5 + $0x174] ss:$8 sps:$4 sm:$0xff]  }
 0x911   :  { %4125 = vmatprep.subr.bf16.mxu0 %v6740_v16 }
 0x912   :  { %v3395_v56 = vpack.c.bf16 %v3391_v26, %v3390_v48  ;;  %4126 = vmatpush1.bf16.msra.mxu0 %v6738_v11 }
 0x914   :  { %3556 = vmatmul.mubr.bf16.gmra.mxu0 %v3395_v56  ;;  %v6743_v56 = vld [vmem:[#allocation5 + $0x164] ss:$8 sps:$4 sm:$0xff]  }
 0x915   :  { %4157 = vmatprep.mubr.bf16.mxu0 %v9051_v1  ;;  %4127 = vmatprep.subr.bf16.mxu0 %v6743_v56  ;;  %v6750_v56 = vld [vmem:[#allocation5 + $0x130] ss:$8 sps:$4 sm:$0xff]  }
 0x94b   :  { %v3618_v38 = vpop.xlane.xlu1 %3617 }
 0x94c   :  { %v3640_v59 = vmul.f32 0.00390625, %v3618_v38 }
 0x94e   :  { %v3696_v32 = vmul.f32 %v3640_v59, %v3640_v59  ;;  %v3712_v36 = vsub.f32 %v8219_v27, %v3640_v59  ;;  %v3713_v28 = vsub.f32 %v8222_v55, %v3640_v59 }
 0x94f   :  { %v3621_v4 = vpop.xlane.xlu0 %3620  ;;  %v3666_v52 = vpop.xlane.xlu1 %3665 }
 0x950   :  { %v3641_v51 = vmul.f32 0.00390625, %v3621_v4  ;;  %v3688_v6 = vmul.f32 0.00390625, %v3666_v52  ;;  %v8342_v4 = vrot.slane %v3612_v14, %v7842_v35  ;;  %v8345_v52 = vrot.slane %v3612_v14, %v7844_v2 }
 0x952   :  { %v3704_v7 = vsub.f32 %v3688_v6, %v3696_v32  ;;  %v3697_v58 = vmul.f32 %v3641_v51, %v3641_v51  ;;  %v3714_v48 = vsub.f32 %v8231_v43, %v3641_v51  ;;  %v3715_v26 = vsub.f32 %v8234_v3, %v3641_v51 }
 0x953   :  { %v3669_v13 = vpop.xlane.xlu0 %3668  ;;  %v3624_v62 = vpop.xlane.xlu1 %3623 }
 0x954   :  { %v3728_v18 = vadd.f32 1e-05, %v3704_v7  ;;  %v3689_v34 = vmul.f32 0.00390625, %v3669_v13  ;;  %v3642_v57 = vmul.f32 0.00390625, %v3624_v62  ;;  %v6741_v13 = vld [vmem:[#allocation5 + $0x160] ss:$8 sps:$4 sm:$0xff]  }
 0x955   :  { %v6746_v62 = vld [vmem:[#allocation5 + $0x154] ss:$8 sps:$4 sm:$0xff]   ;;  %4128 = vmatpush1.bf16.msra.mxu0 %v6741_v13  ;;  %v6756_v13 = vld [vmem:[#allocation5 + $0x110] ss:$8 sps:$4 sm:$0xff]  }
 0x956   :  { %6834 = vrsqrt.f32 %v3728_v18  ;;  %v3705_v39 = vsub.f32 %v3689_v34, %v3697_v58  ;;  %v3698_v15 = vmul.f32 %v3642_v57, %v3642_v57  ;;  %v3716_v51 = vsub.f32 %v8247_v17, %v3642_v57  ;;  %4129 = vmatprep.subr.bf16.mxu0 %v6746_v62  ;;  %v6761_v62 = vld [vmem:[#allocation5 + $0x104] ss:$8 sps:$4 sm:$0xff]  }
 0x957   :  { %v3627_v30 = vpop.xlane.xlu0 %3626  ;;  %v3672_v9 = vpop.xlane.xlu1 %3671  ;;  %v3717_v18 = vsub.f32 %v8250_v50, %v3642_v57 }
 0x958   :  { %v3729_v21 = vadd.f32 1e-05, %v3705_v39  ;;  %v8326_v24 = vmul.f32 0.00390625, %v3627_v30  ;;  %v3690_v53 = vmul.f32 0.00390625, %v3672_v9 }
 0x95a   :  { %6836 = vrsqrt.f32 %v3729_v21  ;;  %v3706_v47 = vsub.f32 %v3690_v53, %v3698_v15  ;;  %v3699_v31 = vmul.f32 %v8326_v24, %v8326_v24  ;;  %v3718_v57 = vsub.f32 %v8259_v61, %v8326_v24 }
 0x95b   :  { %v3675_v22 = vpop.xlane.xlu0 %3674 }
 0x95c   :  { %v3730_v10 = vadd.f32 1e-05, %v3706_v47  ;;  %v3691_v37 = vmul.f32 0.00390625, %v3675_v22  ;;  %v6744_v22 = vld [vmem:[#allocation5 + $0x150] ss:$8 sps:$4 sm:$0xff]  }
 0x95d   :  { %4130 = vmatpush1.bf16.msra.mxu0 %v6744_v22 }
 0x95e   :  { %6838 = vrsqrt.f32 %v3730_v10  ;;  %v3707_v54 = vsub.f32 %v3691_v37, %v3699_v31  ;;  %v3719_v10 = vsub.f32 %v8262_v41, %v8326_v24  ;;  %v6752_v24 = vld [vmem:[#allocation5 + $0x134] ss:$8 sps:$4 sm:$0xff]  }
 0x960   :  { %v3731_v42 = vadd.f32 1e-05, %v3707_v54  ;;  %v6749_v54 = vld [vmem:[#allocation5 + $0x144] ss:$8 sps:$4 sm:$0xff]  }
 0x961   :  { %4131 = vmatprep.subr.bf16.mxu0 %v6749_v54 }
 0x962   :  { %6840 = vrsqrt.f32 %v3731_v42 }
 0x963   :  { %v6835_v63 = vpop.eup %6834 }
 0x964   :  { %v3744_v29 = vmul.f32 %v6835_v63, %v3712_v36  ;;  %v3745_v49 = vmul.f32 %v6835_v63, %v3713_v28 }
 0x966   :  { %v3772_v59 = vmul.f32 %v8336_v23, %v3745_v49  ;;  %v3771_v32 = vmul.f32 %v8333_v12, %v3744_v29  ;;  %v6747_v29 = vld [vmem:[#allocation5 + $0x140] ss:$8 sps:$4 sm:$0xff]  }
 0x967   :  { %v6837_v38 = vpop.eup %6836  ;;  %4132 = vmatpush1.bf16.msra.mxu0 %v6747_v29 }
 0x968   :  { %v3746_v6 = vmul.f32 %v6837_v38, %v3714_v48  ;;  %v3747_v7 = vmul.f32 %v6837_v38, %v3715_v26  ;;  %v3799_v30 = vadd.f32 %v8345_v52, %v3772_v59  ;;  %v3798_v9 = vadd.f32 %v8342_v4, %v3771_v32  ;;  %4133 = vmatprep.subr.bf16.mxu0 %v6752_v24  ;;  %v6755_v32 = vld [vmem:[#allocation5 + $0x124] ss:$8 sps:$4 sm:$0xff]  }
 0x96a   :  { %v3774_v58 = vmul.f32 %v8336_v23, %v3747_v7  ;;  %v3773_v34 = vmul.f32 %v8333_v12, %v3746_v6  ;;  %v6753_v6 = vld [vmem:[#allocation5 + $0x120] ss:$8 sps:$4 sm:$0xff]   ;;  %v6758_v7 = vld [vmem:[#allocation5 + $0x114] ss:$8 sps:$4 sm:$0xff]  }
 0x96b   :  { %v6839_v39 = vpop.eup %6838  ;;  %4134 = vmatpush1.bf16.msra.mxu0 %v6750_v56 }
 0x96c   :  { %v3801_v21 = vadd.f32 %v8345_v52, %v3774_v58  ;;  %v3800_v15 = vadd.f32 %v8342_v4, %v3773_v34  ;;  %v3749_v53 = vmul.f32 %v6839_v39, %v3717_v18  ;;  %v3748_v47 = vmul.f32 %v6839_v39, %v3716_v51  ;;  %4135 = vmatprep.subr.bf16.mxu0 %v6755_v32  ;;  %v6759_v51 = vld [vmem:[#allocation5 + $0x100] ss:$8 sps:$4 sm:$0xff]  }
 0x96e   :  { %v3815_v31 = vpack.c.bf16 %v3801_v21, %v3799_v30  ;;  %v3814_v37 = vpack.c.bf16 %v3800_v15, %v3798_v9  ;;  %v3776_v36 = vmul.f32 %v8336_v23, %v3749_v53  ;;  %v3775_v63 = vmul.f32 %v8333_v12, %v3748_v47 }
 0x96f   :  { %v6841_v42 = vpop.eup %6840  ;;  %4136 = vmatpush1.bf16.msra.mxu0 %v6753_v6  ;;  %v8424_v6 = vld [vmem:[#allocation7 + $0xc2] ss:$0 sm:$0xff] }
 0x970   :  { %3983 = vmatprep.mubr.bf16.mxu1 %v3815_v31  ;;  %v3751_v60 = vmul.f32 %v6841_v42, %v3719_v10  ;;  %v3750_v28 = vmul.f32 %v6841_v42, %v3718_v57  ;;  %v3803_v11 = vadd.f32 %v8345_v52, %v3776_v36  ;;  %v3802_v48 = vadd.f32 %v8342_v4, %v3775_v63 }
 0x971   :  { %3984 = vmatmul.mubr.bf16.vlgmr.msra.gmra.mxu1 %v3814_v37  ;;  %4137 = vmatprep.subr.bf16.mxu0 %v6758_v7 }
 0x972   :  { %v3778_v14 = vmul.f32 %v8336_v23, %v3751_v60  ;;  %v3777_v49 = vmul.f32 %v8333_v12, %v3750_v28 }
 0x973   :  { %4138 = vmatpush1.bf16.msra.mxu0 %v6756_v13 }
 0x974   :  { %v3805_v16 = vadd.f32 %v8345_v52, %v3778_v14  ;;  %v3804_v26 = vadd.f32 %v8342_v4, %v3777_v49  ;;  %4139 = vmatprep.subr.bf16.mxu0 %v6761_v62 }
 0x976   :  { %v3817_v38 = vpack.c.bf16 %v3805_v16, %v3803_v11  ;;  %v3816_v59 = vpack.c.bf16 %v3804_v26, %v3802_v48 }
 0x977   :  { %4140 = vmatpush1.bf16.msra.mxu0 %v6759_v51 }
 0x978   :  { %3991 = vmatprep.mubr.bf16.mxu1 %v3817_v38 }
 0x979   :  { %3992 = vmatmul.mubr.bf16.gmra.mxu1 %v3816_v59 }
 0x9cc   :  { %v3547_v18 = vpop.f32.mrf.mxu0 }
 0x9cd   :  { %v3574_v58 = vadd.f32 %v3547_v18, %v8125_v40 }
 0x9ce   :  { %v3549_v34 = vpop.f32.mrf.mxu0 }
 0x9cf   :  { %v3575_v39 = vadd.f32 %v3549_v34, %v8128_v0  ;;  %v8371_v9 = vadd.f32 %v8212_v44, %v3574_v58 }
 0x9d0   :  { %v3551_v30 = vpop.f32.mrf.mxu0 }
 0x9d1   :  { %v8374_v21 = vadd.f32 %v8215_v46, %v3575_v39  ;;  %v3576_v15 = vadd.f32 %v3551_v30, %v8137_v5  ;;  %v3656_v5 = vmul.f32 %v8371_v9, %v8371_v9 }
 0x9d2   :  { %v3553_v53 = vpop.f32.mrf.mxu0 }
 0x9d3   :  { %v3577_v47 = vadd.f32 %v3553_v53, %v8140_v33  ;;  %v3628_v22 = vadd.f32 %v8374_v21, %v8371_v9  ;;  %v3657_v40 = vmul.f32 %v8374_v21, %v8374_v21  ;;  %v8383_v0 = vadd.f32 %v8212_v44, %v3576_v15 }
 0x9d4   :  { %v3557_v57 = vpop.f32.mrf.mxu0 }
 0x9d5   :  { %v8386_v10 = vadd.f32 %v8215_v46, %v3577_v47  ;;  %v3578_v31 = vadd.f32 %v3557_v57, %v8153_v8  ;;  %3629 = vadd.xlane.f32.xlu1 %v3628_v22  ;;  %v3676_v54 = vadd.f32 %v3657_v40, %v3656_v5  ;;  %v3658_v28 = vmul.f32 %v8383_v0, %v8383_v0 }
 0x9d6   :  { %v3559_v33 = vpop.f32.mrf.mxu0 }
 0x9d7   :  { %v3579_v37 = vadd.f32 %v3559_v33, %v8156_v45  ;;  %v3631_v42 = vadd.f32 %v8386_v10, %v8383_v0  ;;  %v3659_v60 = vmul.f32 %v8386_v10, %v8386_v10  ;;  %v8399_v8 = vadd.f32 %v8212_v44, %v3578_v31 }
 0x9d8   :  { %v3561_v36 = vpop.f32.mrf.mxu0 }
 0x9d9   :  { %v8402_v63 = vadd.f32 %v8215_v46, %v3579_v37  ;;  %v3580_v29 = vadd.f32 %v3561_v36, %v8165_v20  ;;  %3677 = vadd.xlane.f32.xlu1 %v3676_v54  ;;  %3632 = vadd.xlane.f32.xlu0 %v3631_v42  ;;  %v3679_v49 = vadd.f32 %v3659_v60, %v3658_v28 }
 0x9da   :  { %v3563_v45 = vpop.f32.mrf.mxu0  ;;  %v3660_v20 = vmul.f32 %v8399_v8, %v8399_v8 }
 0x9db   :  { %v3581_v14 = vadd.f32 %v3563_v45, %v8168_v19  ;;  %v3634_v24 = vadd.f32 %v8402_v63, %v8399_v8  ;;  %v3661_v11 = vmul.f32 %v8402_v63, %v8402_v63  ;;  %v8411_v16 = vadd.f32 %v8212_v44, %v3580_v29 }
 0x9dd   :  { %v8414_v48 = vadd.f32 %v8215_v46, %v3581_v14  ;;  %3680 = vadd.xlane.f32.xlu0 %v3679_v49  ;;  %3635 = vadd.xlane.f32.xlu1 %v3634_v24  ;;  %v3682_v26 = vadd.f32 %v3661_v11, %v3660_v20  ;;  %v3662_v44 = vmul.f32 %v8411_v16, %v8411_v16 }
 0x9df   :  { %v3637_v19 = vadd.f32 %v8414_v48, %v8411_v16  ;;  %v3663_v56 = vmul.f32 %v8414_v48, %v8414_v48 }
 0x9e1   :  { %3683 = vadd.xlane.f32.xlu1 %v3682_v26  ;;  %3638 = vadd.xlane.f32.xlu0 %v3637_v19  ;;  %v3685_v38 = vadd.f32 %v3663_v56, %v3662_v44 }
 0x9e5   :  { %3686 = vadd.xlane.f32.xlu0 %v3685_v38 }
 0xa31   :  { %v6243_v46 = vpop.f32.mrf.mxu1 }
 0xa33   :  { %v6244_v59 = vpop.f32.mrf.mxu1 }
 0xa34   :  { %v6245_v32 = vadd.f32 %v6244_v59, %v6243_v46 }
 0xa35   :  { %v6246_v7 = vpop.f32.mrf.mxu1 }
 0xa36   :  { %v3986_v62 = vadd.f32 %v6245_v32, %v8424_v6 }
 0xa37   :  { %v6247_v13 = vpop.f32.mrf.mxu1 }
 0xa38   :  { %v6248_v51 = vadd.f32 %v6247_v13, %v6246_v7  ;;  %v4016_v39 = vmax.f32 %v3986_v62, 0.0 }
 0xa39   :  { %v6249_v18 = vpop.f32.mrf.mxu1 }
 0xa3a   :  { %v3989_v58 = vadd.f32 %v6248_v51, %v8424_v6 }
 0xa3b   :  { %v6250_v34 = vpop.f32.mrf.mxu1 }
 0xa3c   :  { %v4017_v30 = vmax.f32 %v3989_v58, 0.0  ;;  %v6251_v15 = vadd.f32 %v6250_v34, %v6249_v18 }
 0xa3d   :  { %v6252_v53 = vpop.f32.mrf.mxu1 }
 0xa3e   :  { %v4024_v47 = vpack.c.bf16 %v4017_v30, %v4016_v39  ;;  %v3994_v40 = vadd.f32 %v6251_v15, %v8424_v6 }
 0xa3f   :  { %v6253_v22 = vpop.f32.mrf.mxu1 }
 0xa40   :  { %v6254_v57 = vadd.f32 %v6253_v22, %v6252_v53  ;;  %4158 = vmatmul.mubr.bf16.vlgmr.msra.gmra.mxu0 %v4024_v47  ;;  %v4018_v5 = vmax.f32 %v3994_v40, 0.0 }
 0xa41   :  { %4167 = vmatprep.mubr.bf16.mxu0 %v9051_v1 }
 0xa42   :  { %v3997_v31 = vadd.f32 %v6254_v57, %v8424_v6 }
 0xa44   :  { %v4019_v33 = vmax.f32 %v3997_v31, 0.0 }
 0xa46   :  { %v4025_v37 = vpack.c.bf16 %v4019_v33, %v4018_v5 }
 0xa48   :  { %4168 = vmatmul.mubr.bf16.gmra.mxu0 %v4025_v37 }
 0xa49   :  { %4177 = vmatprep.mubr.bf16.mxu0 %v9051_v1 }
 0xa5e   :  { %v3630_v54 = vpop.xlane.xlu1 %3629 }
 0xa5f   :  { %v3644_v42 = vmul.f32 0.00390625, %v3630_v54 }
 0xa61   :  { %v3700_v29 = vmul.f32 %v3644_v42, %v3644_v42  ;;  %v3720_v30 = vsub.f32 %v8371_v9, %v3644_v42  ;;  %v3721_v15 = vsub.f32 %v8374_v21, %v3644_v42 }
 0xa62   :  { %v3633_v60 = vpop.xlane.xlu0 %3632  ;;  %v3678_v36 = vpop.xlane.xlu1 %3677 }
 0xa63   :  { %v3645_v28 = vmul.f32 0.00390625, %v3633_v60  ;;  %v3692_v45 = vmul.f32 0.00390625, %v3678_v36 }
 0xa65   :  { %v3708_v14 = vsub.f32 %v3692_v45, %v3700_v29  ;;  %v3701_v20 = vmul.f32 %v3645_v28, %v3645_v28  ;;  %v3722_v40 = vsub.f32 %v8383_v0, %v3645_v28  ;;  %v3723_v57 = vsub.f32 %v8386_v10, %v3645_v28 }
 0xa66   :  { %v3681_v49 = vpop.xlane.xlu0 %3680  ;;  %v3636_v24 = vpop.xlane.xlu1 %3635 }
 0xa67   :  { %v3732_v11 = vadd.f32 1e-05, %v3708_v14  ;;  %v3693_v26 = vmul.f32 0.00390625, %v3681_v49  ;;  %v3646_v19 = vmul.f32 0.00390625, %v3636_v24 }
 0xa69   :  { %6842 = vrsqrt.f32 %v3732_v11  ;;  %v3709_v56 = vsub.f32 %v3693_v26, %v3701_v20  ;;  %v3702_v32 = vmul.f32 %v3646_v19, %v3646_v19  ;;  %v3724_v60 = vsub.f32 %v8399_v8, %v3646_v19 }
 0xa6a   :  { %v3639_v44 = vpop.xlane.xlu0 %3638  ;;  %v3684_v38 = vpop.xlane.xlu1 %3683  ;;  %v3725_v36 = vsub.f32 %v8402_v63, %v3646_v19 }
 0xa6b   :  { %v3733_v46 = vadd.f32 1e-05, %v3709_v56  ;;  %v3647_v59 = vmul.f32 0.00390625, %v3639_v44  ;;  %v3694_v7 = vmul.f32 0.00390625, %v3684_v38 }
 0xa6d   :  { %6844 = vrsqrt.f32 %v3733_v46  ;;  %v3710_v13 = vsub.f32 %v3694_v7, %v3702_v32  ;;  %v3703_v18 = vmul.f32 %v3647_v59, %v3647_v59  ;;  %v3726_v26 = vsub.f32 %v8411_v16, %v3647_v59 }
 0xa6e   :  { %v3687_v62 = vpop.xlane.xlu0 %3686  ;;  %v3727_v56 = vsub.f32 %v8414_v48, %v3647_v59 }
 0xa6f   :  { %v3734_v51 = vadd.f32 1e-05, %v3710_v13  ;;  %v3695_v58 = vmul.f32 0.00390625, %v3687_v62 }
 0xa71   :  { %6846 = vrsqrt.f32 %v3734_v51  ;;  %v3711_v34 = vsub.f32 %v3695_v58, %v3703_v18 }
 0xa73   :  { %v3735_v39 = vadd.f32 1e-05, %v3711_v34 }
 0xa75   :  { %6848 = vrsqrt.f32 %v3735_v39 }
 0xa76   :  { %v6843_v53 = vpop.eup %6842 }
 0xa77   :  { %v3753_v47 = vmul.f32 %v6843_v53, %v3721_v15  ;;  %v3752_v22 = vmul.f32 %v6843_v53, %v3720_v30  ;;  %v3615_v15 = vld [vmem:[#allocation7 + $0xc6] ss:$8 sm:$0x3] }
 0xa79   :  { %v3780_v5 = vmul.f32 %v8336_v23, %v3753_v47  ;;  %v3779_v33 = vmul.f32 %v8333_v12, %v3752_v22 }
 0xa7a   :  { %v6845_v31 = vpop.eup %6844 }
 0xa7b   :  { %v3755_v37 = vmul.f32 %v6845_v31, %v3723_v57  ;;  %v3754_v54 = vmul.f32 %v6845_v31, %v3722_v40  ;;  %v3807_v14 = vadd.f32 %v8345_v52, %v3780_v5  ;;  %v3806_v28 = vadd.f32 %v8342_v4, %v3779_v33 }
 0xa7d   :  { %v3782_v42 = vmul.f32 %v8336_v23, %v3755_v37  ;;  %v3781_v29 = vmul.f32 %v8333_v12, %v3754_v54 }
 0xa7e   :  { %v6847_v45 = vpop.eup %6846 }
 0xa7f   :  { %v3809_v49 = vadd.f32 %v8345_v52, %v3782_v42  ;;  %v3808_v24 = vadd.f32 %v8342_v4, %v3781_v29  ;;  %v3757_v11 = vmul.f32 %v6847_v45, %v3725_v36  ;;  %v3756_v20 = vmul.f32 %v6847_v45, %v3724_v60 }
 0xa81   :  { %v3819_v19 = vpack.c.bf16 %v3809_v49, %v3807_v14  ;;  %v3818_v44 = vpack.c.bf16 %v3808_v24, %v3806_v28  ;;  %v3784_v32 = vmul.f32 %v8336_v23, %v3757_v11  ;;  %v3783_v13 = vmul.f32 %v8333_v12, %v3756_v20 }
 0xa82   :  { %v6849_v38 = vpop.eup %6848 }
 0xa83   :  { %3999 = vmatprep.mubr.bf16.mxu1 %v3819_v19  ;;  %v3759_v46 = vmul.f32 %v6849_v38, %v3727_v56  ;;  %v3758_v7 = vmul.f32 %v6849_v38, %v3726_v26  ;;  %v3811_v18 = vadd.f32 %v8345_v52, %v3784_v32  ;;  %v3810_v59 = vadd.f32 %v8342_v4, %v3783_v13 }
 0xa84   :  { %4000 = vmatmul.mubr.bf16.gmra.mxu1 %v3818_v44 }
 0xa85   :  { %v3786_v62 = vmul.f32 %v8336_v23, %v3759_v46  ;;  %v3785_v51 = vmul.f32 %v8333_v12, %v3758_v7  ;;  %v8458_v23 = vrot.slane %v3615_v15, %v7842_v35  ;;  %v8461_v12 = vrot.slane %v3615_v15, %v7844_v2  ;;  %v6770_v15 = vld [vmem:[%s8975_s2 + $0x1d8] sm:$0xff]  }
 0xa87   :  { %v3813_v58 = vadd.f32 %v8345_v52, %v3786_v62  ;;  %v3812_v34 = vadd.f32 %v8342_v4, %v3785_v51  ;;  %v6762_v62 = vld [vmem:[%s8975_s2 + $0x1f8] sm:$0xff]  }
 0xa88   :  { %v6763_v51 = vld [vmem:[%s8975_s2 + $0x1b8] sm:$0xff]   ;;  %6267 = vmatprep.subr.bf16.mxu1 %v6762_v62 }
 0xa89   :  { %v3821_v39 = vpack.c.bf16 %v3813_v58, %v3811_v18  ;;  %v3820_v30 = vpack.c.bf16 %v3812_v34, %v3810_v59  ;;  %6268 = vmatpush3.bf16.msra.mxu1 %v6763_v51  ;;  %v6764_v18 = vld [vmem:[%s8975_s2 + $0x1f0] sm:$0xff]   ;;  %v6766_v59 = vld [vmem:[%s8975_s2 + $0x1e8] sm:$0xff]  }
 0xa8a   :  { %v6765_v58 = vld [vmem:[%s8975_s2 + $0x1b0] sm:$0xff]   ;;  %6269 = vmatprep.subr.bf16.mxu1 %v6764_v18  ;;  %v6767_v34 = vld [vmem:[%s8975_s2 + $0x1a8] sm:$0xff]  }
 0xa8b   :  { %4007 = vmatprep.mubr.bf16.mxu1 %v3821_v39  ;;  %v6768_v39 = vld [vmem:[%s8975_s2 + $0x1e0] sm:$0xff]  }
 0xa8c   :  { %4008 = vmatmul.mubr.bf16.gmra.mxu1 %v3820_v30  ;;  %v6769_v30 = vld [vmem:[%s8975_s2 + $0x1a0] sm:$0xff]  }
 0xa8d   :  { %6270 = vmatpush3.bf16.msra.mxu1 %v6765_v58 }
 0xa8e   :  { %6271 = vmatprep.subr.bf16.mxu1 %v6766_v59 }
 0xa91   :  { %6272 = vmatpush3.bf16.msra.mxu1 %v6767_v34 }
 0xa92   :  { %6273 = vmatprep.subr.bf16.mxu1 %v6768_v39 }
 0xa95   :  { %6274 = vmatpush3.bf16.msra.mxu1 %v6769_v30 }
 0xa96   :  { %6275 = vmatprep.subr.bf16.mxu1 %v6770_v15 }
 0xb00   :  { %v4159_v53 = vpop.f32.mrf.mxu0 }
 0xb01   :  { %v4198_v47 = vadd.f32 %v4159_v53, %v8219_v27  ;;  %v6771_v53 = vld [vmem:[%s8975_s2 + $0x198] sm:$0xff]  }
 0xb02   :  { %v4161_v22 = vpop.f32.mrf.mxu0  ;;  %6276 = vmatpush3.bf16.msra.mxu1 %v6771_v53 }
 0xb03   :  { %v4199_v52 = vadd.f32 %v4161_v22, %v8222_v55  ;;  %v8465_v4 = vadd.f32 %v8458_v23, %v4198_v47  ;;  %v6772_v47 = vld [vmem:[%s8975_s2 + $0x1d0] sm:$0xff]  }
 0xb04   :  { %v4163_v40 = vpop.f32.mrf.mxu0  ;;  %v6773_v22 = vld [vmem:[%s8975_s2 + $0x190] sm:$0xff]   ;;  %6277 = vmatprep.subr.bf16.mxu1 %v6772_v47 }
 0xb05   :  { %v8468_v57 = vadd.f32 %v8461_v12, %v4199_v52  ;;  %v4200_v31 = vadd.f32 %v4163_v40, %v8231_v43  ;;  %v4280_v43 = vmul.f32 %v8465_v4, %v8465_v4  ;;  %v6774_v52 = vld [vmem:[%s8975_s2 + $0x1c8] sm:$0xff]  }
 0xb06   :  { %v4165_v5 = vpop.f32.mrf.mxu0  ;;  %6278 = vmatpush3.bf16.msra.mxu1 %v6773_v22  ;;  %v6775_v40 = vld [vmem:[%s8975_s2 + $0x188] sm:$0xff]  }
 0xb07   :  { %v4201_v27 = vadd.f32 %v4165_v5, %v8234_v3  ;;  %v4248_v33 = vadd.f32 %v8468_v57, %v8465_v4  ;;  %v4281_v37 = vmul.f32 %v8468_v57, %v8468_v57  ;;  %v8477_v55 = vadd.f32 %v8458_v23, %v4200_v31  ;;  %6279 = vmatprep.subr.bf16.mxu1 %v6774_v52  ;;  %v6776_v31 = vld [vmem:[%s8975_s2 + $0x1c0] sm:$0xff]  }
 0xb08   :  { %v4169_v54 = vpop.f32.mrf.mxu0  ;;  %v6777_v5 = vld [vmem:[%s8975_s2 + $0x180] sm:$0xff]   ;;  %s6980_s2 = smov 96  }
 0xb09   :  { %v8480_v60 = vadd.f32 %v8461_v12, %v4201_v27  ;;  %v4202_v36 = vadd.f32 %v4169_v54, %v8247_v17  ;;  %4249 = vadd.xlane.f32.xlu1 %v4248_v33  ;;  %v4296_v29 = vadd.f32 %v4281_v37, %v4280_v43  ;;  %v4282_v49 = vmul.f32 %v8477_v55, %v8477_v55 }
 0xb0a   :  { %v4171_v3 = vpop.f32.mrf.mxu0  ;;  %6280 = vmatpush3.bf16.msra.mxu1 %v6775_v40 }
 0xb0b   :  { %v4203_v42 = vadd.f32 %v4171_v3, %v8250_v50  ;;  %v4251_v45 = vadd.f32 %v8480_v60, %v8477_v55  ;;  %v4283_v14 = vmul.f32 %v8480_v60, %v8480_v60  ;;  %v8493_v17 = vadd.f32 %v8458_v23, %v4202_v36  ;;  %6281 = vmatprep.subr.bf16.mxu1 %v6776_v31 }
 0xb0c   :  { %v4173_v28 = vpop.f32.mrf.mxu0 }
 0xb0d   :  { %v8496_v24 = vadd.f32 %v8461_v12, %v4203_v42  ;;  %v4204_v11 = vadd.f32 %v4173_v28, %v8259_v61  ;;  %4297 = vadd.xlane.f32.xlu1 %v4296_v29  ;;  %4252 = vadd.xlane.f32.xlu0 %v4251_v45  ;;  %v4299_v26 = vadd.f32 %v4283_v14, %v4282_v49 }
 0xb0e   :  { %v4175_v50 = vpop.f32.mrf.mxu0  ;;  %v4284_v61 = vmul.f32 %v8493_v17, %v8493_v17  ;;  %6282 = vmatpush3.bf16.msra.mxu1 %v6777_v5 }
 0xb0f   :  { %v4205_v20 = vadd.f32 %v4175_v50, %v8262_v41  ;;  %v4254_v56 = vadd.f32 %v8496_v24, %v8493_v17  ;;  %v4285_v19 = vmul.f32 %v8496_v24, %v8496_v24  ;;  %v8505_v44 = vadd.f32 %v8458_v23, %v4204_v11  ;;  %6436 = vmatprep.subr.mxu1 %v9054_v25 }
 0xb11   :  { %v8508_v38 = vadd.f32 %v8461_v12, %v4205_v20  ;;  %4300 = vadd.xlane.f32.xlu0 %v4299_v26  ;;  %4255 = vadd.xlane.f32.xlu1 %v4254_v56  ;;  %v4302_v46 = vadd.f32 %v4285_v19, %v4284_v61  ;;  %v4286_v7 = vmul.f32 %v8505_v44, %v8505_v44 }
 0xb13   :  { %v4257_v41 = vadd.f32 %v8508_v38, %v8505_v44  ;;  %v4287_v32 = vmul.f32 %v8508_v38, %v8508_v38 }
 0xb15   :  { %4303 = vadd.xlane.f32.xlu1 %v4302_v46  ;;  %4258 = vadd.xlane.f32.xlu0 %v4257_v41  ;;  %v4305_v13 = vadd.f32 %v4287_v32, %v4286_v7 }
 0xb19   :  { %4306 = vadd.xlane.f32.xlu0 %v4305_v13 }
 0xb44   :  { %v6255_v27 = vpop.f32.mrf.mxu1 }
 0xb46   :  { %v6256_v33 = vpop.f32.mrf.mxu1 }
 0xb47   :  { %v6257_v37 = vadd.f32 %v6256_v33, %v6255_v27 }
 0xb48   :  { %v6258_v54 = vpop.f32.mrf.mxu1 }
 0xb49   :  { %v4002_v43 = vadd.f32 %v6257_v37, %v8424_v6 }
 0xb4a   :  { %v6259_v36 = vpop.f32.mrf.mxu1 }
 0xb4b   :  { %v6260_v3 = vadd.f32 %v6259_v36, %v6258_v54  ;;  %v4020_v14 = vmax.f32 %v4002_v43, 0.0 }
 0xb4c   :  { %v6261_v42 = vpop.f32.mrf.mxu1 }
 0xb4d   :  { %v4005_v29 = vadd.f32 %v6260_v3, %v8424_v6 }
 0xb4e   :  { %v6262_v45 = vpop.f32.mrf.mxu1 }
 0xb4f   :  { %v4021_v28 = vmax.f32 %v4005_v29, 0.0  ;;  %v6263_v49 = vadd.f32 %v6262_v45, %v6261_v42  ;;  %v4242_v42 = vld [vmem:[#allocation7 + $0xb3] ss:$8 sm:$0x3] }
 0xb50   :  { %v6264_v11 = vpop.f32.mrf.mxu1 }
 0xb51   :  { %v4026_v50 = vpack.c.bf16 %v4021_v28, %v4020_v14  ;;  %v4010_v26 = vadd.f32 %v6263_v49, %v8424_v6  ;;  %v8580_v49 = vrot.slane %v4242_v42, %v7842_v35 }
 0xb52   :  { %v6265_v20 = vpop.f32.mrf.mxu1 }
 0xb53   :  { %v6266_v56 = vadd.f32 %v6265_v20, %v6264_v11  ;;  %4178 = vmatmul.mubr.bf16.gmra.mxu0 %v4026_v50  ;;  %v4022_v61 = vmax.f32 %v4010_v26, 0.0  ;;  %v8583_v11 = vrot.slane %v4242_v42, %v7844_v2  ;;  %v4244_v20 = vld [vmem:[#allocation7 + $0xb7] ss:$8 sm:$0x3] }
 0xb54   :  { %4187 = vmatprep.mubr.bf16.mxu0 %v9051_v1 }
 0xb55   :  { %v4013_v19 = vadd.f32 %v6266_v56, %v8424_v6  ;;  %v6778_v56 = vld [vmem:[#allocation5 + $0x1f0] ss:$8 sps:$4 sm:$0xff]  }
 0xb57   :  { %v4023_v46 = vmax.f32 %v4013_v19, 0.0  ;;  %v6780_v19 = vld [vmem:[#allocation5 + $0x1f4] ss:$8 sps:$4 sm:$0xff]  }
 0xb58   :  { %4757 = vmatprep.subr.bf16.mxu0 %v6780_v19 }
 0xb59   :  { %v4027_v41 = vpack.c.bf16 %v4023_v46, %v4022_v61  ;;  %4758 = vmatpush1.bf16.msra.mxu0 %v6778_v56 }
 0xb5b   :  { %4188 = vmatmul.mubr.bf16.gmra.mxu0 %v4027_v41  ;;  %v6783_v41 = vld [vmem:[#allocation5 + $0x1e4] ss:$8 sps:$4 sm:$0xff]  }
 0xb5c   :  { %4789 = vmatprep.mubr.bf16.mxu0 %v9051_v1  ;;  %4759 = vmatprep.subr.bf16.mxu0 %v6783_v41  ;;  %v6790_v41 = vld [vmem:[#allocation5 + $0x1b0] ss:$8 sps:$4 sm:$0xff]  }
 0xb92   :  { %v4250_v32 = vpop.xlane.xlu1 %4249 }
 0xb93   :  { %v4272_v7 = vmul.f32 0.00390625, %v4250_v32 }
 0xb95   :  { %v4328_v18 = vmul.f32 %v4272_v7, %v4272_v7  ;;  %v4344_v45 = vsub.f32 %v8465_v4, %v4272_v7  ;;  %v4345_v14 = vsub.f32 %v8468_v57, %v4272_v7 }
 0xb96   :  { %v4253_v13 = vpop.xlane.xlu0 %4252  ;;  %v4298_v62 = vpop.xlane.xlu1 %4297 }
 0xb97   :  { %v4273_v51 = vmul.f32 0.00390625, %v4253_v13  ;;  %v4320_v58 = vmul.f32 0.00390625, %v4298_v62  ;;  %v8590_v62 = vrot.slane %v4244_v20, %v7842_v35 }
 0xb99   :  { %v4336_v59 = vsub.f32 %v4320_v58, %v4328_v18  ;;  %v4329_v15 = vmul.f32 %v4273_v51, %v4273_v51  ;;  %v4346_v61 = vsub.f32 %v8477_v55, %v4273_v51  ;;  %v4347_v46 = vsub.f32 %v8480_v60, %v4273_v51 }
 0xb9a   :  { %v4301_v34 = vpop.xlane.xlu0 %4300  ;;  %v4256_v39 = vpop.xlane.xlu1 %4255  ;;  %v8593_v18 = vrot.slane %v4244_v20, %v7844_v2 }
 0xb9b   :  { %v4360_v30 = vadd.f32 1e-05, %v4336_v59  ;;  %v4321_v53 = vmul.f32 0.00390625, %v4301_v34  ;;  %v4274_v6 = vmul.f32 0.00390625, %v4256_v39  ;;  %v6781_v34 = vld [vmem:[#allocation5 + $0x1e0] ss:$8 sps:$4 sm:$0xff]  }
 0xb9c   :  { %v6786_v39 = vld [vmem:[#allocation5 + $0x1d4] ss:$8 sps:$4 sm:$0xff]   ;;  %4760 = vmatpush1.bf16.msra.mxu0 %v6781_v34  ;;  %v6796_v34 = vld [vmem:[#allocation5 + $0x190] ss:$8 sps:$4 sm:$0xff]  }
 0xb9d   :  { %6850 = vrsqrt.f32 %v4360_v30  ;;  %v4337_v47 = vsub.f32 %v4321_v53, %v4329_v15  ;;  %v4330_v5 = vmul.f32 %v4274_v6, %v4274_v6  ;;  %v4348_v30 = vsub.f32 %v8493_v17, %v4274_v6  ;;  %4761 = vmatprep.subr.bf16.mxu0 %v6786_v39  ;;  %v6801_v39 = vld [vmem:[#allocation5 + $0x184] ss:$8 sps:$4 sm:$0xff]  }
 0xb9e   :  { %v4259_v22 = vpop.xlane.xlu0 %4258  ;;  %v4304_v52 = vpop.xlane.xlu1 %4303  ;;  %v4349_v15 = vsub.f32 %v8496_v24, %v4274_v6 }
 0xb9f   :  { %v4361_v40 = vadd.f32 1e-05, %v4337_v47  ;;  %v8573_v31 = vmul.f32 0.00390625, %v4259_v22  ;;  %v4322_v27 = vmul.f32 0.00390625, %v4304_v52 }
 0xba1   :  { %6852 = vrsqrt.f32 %v4361_v40  ;;  %v4338_v33 = vsub.f32 %v4322_v27, %v4330_v5  ;;  %v4331_v36 = vmul.f32 %v8573_v31, %v8573_v31  ;;  %v4351_v6 = vsub.f32 %v8508_v38, %v8573_v31 }
 0xba2   :  { %v4307_v37 = vpop.xlane.xlu0 %4306 }
 0xba3   :  { %v4362_v54 = vadd.f32 1e-05, %v4338_v33  ;;  %v4323_v43 = vmul.f32 0.00390625, %v4307_v37  ;;  %v6784_v37 = vld [vmem:[#allocation5 + $0x1d0] ss:$8 sps:$4 sm:$0xff]  }
 0xba4   :  { %4762 = vmatpush1.bf16.msra.mxu0 %v6784_v37 }
 0xba5   :  { %6854 = vrsqrt.f32 %v4362_v54  ;;  %v4339_v3 = vsub.f32 %v4323_v43, %v4331_v36  ;;  %v4350_v54 = vsub.f32 %v8505_v44, %v8573_v31  ;;  %v6792_v31 = vld [vmem:[#allocation5 + $0x1b4] ss:$8 sps:$4 sm:$0xff]  }
 0xba7   :  { %v4363_v29 = vadd.f32 1e-05, %v4339_v3  ;;  %v6789_v3 = vld [vmem:[#allocation5 + $0x1c4] ss:$8 sps:$4 sm:$0xff]  }
 0xba8   :  { %4763 = vmatprep.subr.bf16.mxu0 %v6789_v3 }
 0xba9   :  { %6856 = vrsqrt.f32 %v4363_v29 }
 0xbaa   :  { %v6851_v28 = vpop.eup %6850 }
 0xbab   :  { %v4376_v50 = vmul.f32 %v6851_v28, %v4344_v45  ;;  %v4377_v26 = vmul.f32 %v6851_v28, %v4345_v14 }
 0xbad   :  { %v4403_v7 = vmul.f32 %v8580_v49, %v4376_v50  ;;  %v4404_v13 = vmul.f32 %v8583_v11, %v4377_v26  ;;  %v6787_v50 = vld [vmem:[#allocation5 + $0x1c0] ss:$8 sps:$4 sm:$0xff]  }
 0xbae   :  { %v6853_v32 = vpop.eup %6852  ;;  %4764 = vmatpush1.bf16.msra.mxu0 %v6787_v50 }
 0xbaf   :  { %v4378_v58 = vmul.f32 %v6853_v32, %v4346_v61  ;;  %v4379_v59 = vmul.f32 %v6853_v32, %v4347_v46  ;;  %v4431_v22 = vadd.f32 %v8593_v18, %v4404_v13  ;;  %v4430_v52 = vadd.f32 %v8590_v62, %v4403_v7  ;;  %4765 = vmatprep.subr.bf16.mxu0 %v6792_v31  ;;  %v6795_v13 = vld [vmem:[#allocation5 + $0x1a4] ss:$8 sps:$4 sm:$0xff]  }
 0xbb1   :  { %v4405_v51 = vmul.f32 %v8580_v49, %v4378_v58  ;;  %v4406_v53 = vmul.f32 %v8583_v11, %v4379_v59  ;;  %v6793_v58 = vld [vmem:[#allocation5 + $0x1a0] ss:$8 sps:$4 sm:$0xff]   ;;  %v6798_v59 = vld [vmem:[#allocation5 + $0x194] ss:$8 sps:$4 sm:$0xff]  }
 0xbb2   :  { %v6855_v47 = vpop.eup %6854  ;;  %4766 = vmatpush1.bf16.msra.mxu0 %v6790_v41 }
 0xbb3   :  { %v4433_v40 = vadd.f32 %v8593_v18, %v4406_v53  ;;  %v4432_v5 = vadd.f32 %v8590_v62, %v4405_v51  ;;  %v4381_v27 = vmul.f32 %v6855_v47, %v4349_v15  ;;  %v4380_v33 = vmul.f32 %v6855_v47, %v4348_v30  ;;  %4767 = vmatprep.subr.bf16.mxu0 %v6795_v13  ;;  %v6799_v51 = vld [vmem:[#allocation5 + $0x180] ss:$8 sps:$4 sm:$0xff]  }
 0xbb5   :  { %v4447_v36 = vpack.c.bf16 %v4433_v40, %v4431_v22  ;;  %v4446_v43 = vpack.c.bf16 %v4432_v5, %v4430_v52  ;;  %v4408_v45 = vmul.f32 %v8583_v11, %v4381_v27  ;;  %v4407_v28 = vmul.f32 %v8580_v49, %v4380_v33 }
 0xbb6   :  { %v6857_v42 = vpop.eup %6856  ;;  %4768 = vmatpush1.bf16.msra.mxu0 %v6793_v58  ;;  %v8672_v58 = vld [vmem:[#allocation7 + $0xc3] ss:$0 sm:$0xff] }
 0xbb7   :  { %4615 = vmatprep.mubr.bf16.mxu1 %v4447_v36  ;;  %v4383_v29 = vmul.f32 %v6857_v42, %v4351_v6  ;;  %v4382_v14 = vmul.f32 %v6857_v42, %v4350_v54  ;;  %v4435_v56 = vadd.f32 %v8593_v18, %v4408_v45  ;;  %v4434_v61 = vadd.f32 %v8590_v62, %v4407_v28 }
 0xbb8   :  { %4616 = vmatmul.mubr.bf16.vlgmr.msra.gmra.mxu1 %v4446_v43  ;;  %4769 = vmatprep.subr.bf16.mxu0 %v6798_v59 }
 0xbb9   :  { %v4410_v20 = vmul.f32 %v8583_v11, %v4383_v29  ;;  %v4409_v26 = vmul.f32 %v8580_v49, %v4382_v14 }
 0xbba   :  { %4770 = vmatpush1.bf16.msra.mxu0 %v6796_v34 }
 0xbbb   :  { %v4437_v19 = vadd.f32 %v8593_v18, %v4410_v20  ;;  %v4436_v46 = vadd.f32 %v8590_v62, %v4409_v26  ;;  %4771 = vmatprep.subr.bf16.mxu0 %v6801_v39 }
 0xbbd   :  { %v4449_v32 = vpack.c.bf16 %v4437_v19, %v4435_v56  ;;  %v4448_v7 = vpack.c.bf16 %v4436_v46, %v4434_v61 }
 0xbbe   :  { %4772 = vmatpush1.bf16.msra.mxu0 %v6799_v51 }
 0xbbf   :  { %4623 = vmatprep.mubr.bf16.mxu1 %v4449_v32  ;;  %6447 = vmatprep.subr.mxu0 %v9054_v25 }
 0xbc0   :  { %4624 = vmatmul.mubr.bf16.gmra.mxu1 %v4448_v7 }
 0xc13   :  { %v4179_v30 = vpop.f32.mrf.mxu0 }
 0xc14   :  { %v4206_v15 = vadd.f32 %v4179_v30, %v8371_v9 }
 0xc15   :  { %v4181_v53 = vpop.f32.mrf.mxu0 }
 0xc16   :  { %v4207_v47 = vadd.f32 %v4181_v53, %v8374_v21  ;;  %v8619_v52 = vadd.f32 %v8458_v23, %v4206_v15 }
 0xc17   :  { %v4183_v22 = vpop.f32.mrf.mxu0 }
 0xc18   :  { %v8622_v40 = vadd.f32 %v8461_v12, %v4207_v47  ;;  %v4208_v5 = vadd.f32 %v4183_v22, %v8383_v0  ;;  %v4288_v0 = vmul.f32 %v8619_v52, %v8619_v52 }
 0xc19   :  { %v4185_v27 = vpop.f32.mrf.mxu0 }
 0xc1a   :  { %v4209_v33 = vadd.f32 %v4185_v27, %v8386_v10  ;;  %v4260_v37 = vadd.f32 %v8622_v40, %v8619_v52  ;;  %v4289_v9 = vmul.f32 %v8622_v40, %v8622_v40  ;;  %v8631_v21 = vadd.f32 %v8458_v23, %v4208_v5 }
 0xc1b   :  { %v4189_v54 = vpop.f32.mrf.mxu0 }
 0xc1c   :  { %v8634_v6 = vadd.f32 %v8461_v12, %v4209_v33  ;;  %v4210_v36 = vadd.f32 %v4189_v54, %v8399_v8  ;;  %4261 = vadd.xlane.f32.xlu1 %v4260_v37  ;;  %v4308_v3 = vadd.f32 %v4289_v9, %v4288_v0  ;;  %v4290_v14 = vmul.f32 %v8631_v21, %v8631_v21 }
 0xc1d   :  { %v4191_v10 = vpop.f32.mrf.mxu0 }
 0xc1e   :  { %v4211_v43 = vadd.f32 %v4191_v10, %v8402_v63  ;;  %v4263_v42 = vadd.f32 %v8634_v6, %v8631_v21  ;;  %v4291_v29 = vmul.f32 %v8634_v6, %v8634_v6  ;;  %v8647_v8 = vadd.f32 %v8458_v23, %v4210_v36 }
 0xc1f   :  { %v4193_v45 = vpop.f32.mrf.mxu0 }
 0xc20   :  { %v8650_v28 = vadd.f32 %v8461_v12, %v4211_v43  ;;  %v4212_v50 = vadd.f32 %v4193_v45, %v8411_v16  ;;  %4309 = vadd.xlane.f32.xlu1 %v4308_v3  ;;  %4264 = vadd.xlane.f32.xlu0 %v4263_v42  ;;  %v4311_v26 = vadd.f32 %v4291_v29, %v4290_v14 }
 0xc21   :  { %v4195_v63 = vpop.f32.mrf.mxu0  ;;  %v4292_v16 = vmul.f32 %v8647_v8, %v8647_v8 }
 0xc22   :  { %v4213_v20 = vadd.f32 %v4195_v63, %v8414_v48  ;;  %v4266_v31 = vadd.f32 %v8650_v28, %v8647_v8  ;;  %v4293_v56 = vmul.f32 %v8650_v28, %v8650_v28  ;;  %v8659_v19 = vadd.f32 %v8458_v23, %v4212_v50 }
 0xc24   :  { %v8662_v61 = vadd.f32 %v8461_v12, %v4213_v20  ;;  %4312 = vadd.xlane.f32.xlu0 %v4311_v26  ;;  %4267 = vadd.xlane.f32.xlu1 %v4266_v31  ;;  %v4314_v46 = vadd.f32 %v4293_v56, %v4292_v16  ;;  %v4294_v23 = vmul.f32 %v8659_v19, %v8659_v19 }
 0xc26   :  { %v4269_v48 = vadd.f32 %v8662_v61, %v8659_v19  ;;  %v4295_v41 = vmul.f32 %v8662_v61, %v8662_v61 }
 0xc28   :  { %4315 = vadd.xlane.f32.xlu1 %v4314_v46  ;;  %4270 = vadd.xlane.f32.xlu0 %v4269_v48  ;;  %v4317_v32 = vadd.f32 %v4295_v41, %v4294_v23 }
 0xc2c   :  { %4318 = vadd.xlane.f32.xlu0 %v4317_v32 }
 0xc78   :  { %v6283_v12 = vpop.f32.mrf.mxu1 }
 0xc7a   :  { %v6284_v7 = vpop.f32.mrf.mxu1 }
 0xc7b   :  { %v6285_v13 = vadd.f32 %v6284_v7, %v6283_v12 }
 0xc7c   :  { %v6286_v59 = vpop.f32.mrf.mxu1 }
 0xc7d   :  { %v4618_v39 = vadd.f32 %v6285_v13, %v8672_v58 }
 0xc7e   :  { %v6287_v34 = vpop.f32.mrf.mxu1 }
 0xc7f   :  { %v6288_v51 = vadd.f32 %v6287_v34, %v6286_v59  ;;  %v4648_v47 = vmax.f32 %v4618_v39, 0.0 }
 0xc80   :  { %v6289_v30 = vpop.f32.mrf.mxu1 }
 0xc81   :  { %v4621_v15 = vadd.f32 %v6288_v51, %v8672_v58 }
 0xc82   :  { %v6290_v53 = vpop.f32.mrf.mxu1 }
 0xc83   :  { %v4649_v22 = vmax.f32 %v4621_v15, 0.0  ;;  %v6291_v5 = vadd.f32 %v6290_v53, %v6289_v30 }
 0xc84   :  { %v6292_v27 = vpop.f32.mrf.mxu1 }
 0xc85   :  { %v4656_v33 = vpack.c.bf16 %v4649_v22, %v4648_v47  ;;  %v4626_v9 = vadd.f32 %v6291_v5, %v8672_v58 }
 0xc86   :  { %v6293_v37 = vpop.f32.mrf.mxu1 }
 0xc87   :  { %v6294_v54 = vadd.f32 %v6293_v37, %v6292_v27  ;;  %4790 = vmatmul.mubr.bf16.vlgmr.msra.gmra.mxu0 %v4656_v33  ;;  %v4650_v0 = vmax.f32 %v4626_v9, 0.0 }
 0xc88   :  { %4799 = vmatprep.mubr.bf16.mxu0 %v9051_v1 }
 0xc89   :  { %v4629_v36 = vadd.f32 %v6294_v54, %v8672_v58 }
 0xc8b   :  { %v4651_v10 = vmax.f32 %v4629_v36, 0.0 }
 0xc8d   :  { %v4657_v43 = vpack.c.bf16 %v4651_v10, %v4650_v0 }
 0xc8f   :  { %4800 = vmatmul.mubr.bf16.gmra.mxu0 %v4657_v43 }
 0xc90   :  { %4809 = vmatprep.mubr.bf16.mxu0 %v9051_v1 }
 0xca5   :  { %v4262_v3 = vpop.xlane.xlu1 %4261 }
 0xca6   :  { %v4276_v42 = vmul.f32 0.00390625, %v4262_v3 }
 0xca8   :  { %v4332_v50 = vmul.f32 %v4276_v42, %v4276_v42  ;;  %v4352_v22 = vsub.f32 %v8619_v52, %v4276_v42  ;;  %v4353_v5 = vsub.f32 %v8622_v40, %v4276_v42 }
 0xca9   :  { %v4265_v29 = vpop.xlane.xlu0 %4264  ;;  %v4310_v45 = vpop.xlane.xlu1 %4309 }
 0xcaa   :  { %v4277_v14 = vmul.f32 0.00390625, %v4265_v29  ;;  %v4324_v63 = vmul.f32 0.00390625, %v4310_v45 }
 0xcac   :  { %v4340_v20 = vsub.f32 %v4324_v63, %v4332_v50  ;;  %v4333_v16 = vmul.f32 %v4277_v14, %v4277_v14  ;;  %v4354_v9 = vsub.f32 %v8631_v21, %v4277_v14  ;;  %v4355_v54 = vsub.f32 %v8634_v6, %v4277_v14 }
 0xcad   :  { %v4313_v26 = vpop.xlane.xlu0 %4312  ;;  %v4268_v31 = vpop.xlane.xlu1 %4267 }
 0xcae   :  { %v4364_v56 = vadd.f32 1e-05, %v4340_v20  ;;  %v4325_v46 = vmul.f32 0.00390625, %v4313_v26  ;;  %v4278_v48 = vmul.f32 0.00390625, %v4268_v31 }
 0xcb0   :  { %6858 = vrsqrt.f32 %v4364_v56  ;;  %v4341_v41 = vsub.f32 %v4325_v46, %v4333_v16  ;;  %v4334_v13 = vmul.f32 %v4278_v48, %v4278_v48  ;;  %v4356_v29 = vsub.f32 %v8647_v8, %v4278_v48 }
 0xcb1   :  { %v4271_v23 = vpop.xlane.xlu0 %4270  ;;  %v4316_v32 = vpop.xlane.xlu1 %4315  ;;  %v4357_v45 = vsub.f32 %v8650_v28, %v4278_v48 }
 0xcb2   :  { %v4365_v12 = vadd.f32 1e-05, %v4341_v41  ;;  %v4279_v7 = vmul.f32 0.00390625, %v4271_v23  ;;  %v4326_v59 = vmul.f32 0.00390625, %v4316_v32 }
 0xcb4   :  { %6860 = vrsqrt.f32 %v4365_v12  ;;  %v4342_v34 = vsub.f32 %v4326_v59, %v4334_v13  ;;  %v4335_v30 = vmul.f32 %v4279_v7, %v4279_v7  ;;  %v4358_v46 = vsub.f32 %v8659_v19, %v4279_v7 }
 0xcb5   :  { %v4319_v39 = vpop.xlane.xlu0 %4318  ;;  %v4359_v41 = vsub.f32 %v8662_v61, %v4279_v7 }
 0xcb6   :  { %v4366_v51 = vadd.f32 1e-05, %v4342_v34  ;;  %v4327_v15 = vmul.f32 0.00390625, %v4319_v39 }
 0xcb8   :  { %6862 = vrsqrt.f32 %v4366_v51  ;;  %v4343_v53 = vsub.f32 %v4327_v15, %v4335_v30 }
 0xcba   :  { %v4367_v47 = vadd.f32 1e-05, %v4343_v53 }
 0xcbc   :  { %6864 = vrsqrt.f32 %v4367_v47 }
 0xcbd   :  { %v6859_v27 = vpop.eup %6858 }
 0xcbe   :  { %v4385_v33 = vmul.f32 %v6859_v27, %v4353_v5  ;;  %v4384_v37 = vmul.f32 %v6859_v27, %v4352_v22  ;;  %v4247_v5 = vld [vmem:[#allocation7 + $0xc7] ss:$8 sm:$0x3] }
 0xcc0   :  { %v4412_v0 = vmul.f32 %v8583_v11, %v4385_v33  ;;  %v4411_v10 = vmul.f32 %v8580_v49, %v4384_v37 }
 0xcc1   :  { %v6861_v36 = vpop.eup %6860 }
 0xcc2   :  { %v4387_v43 = vmul.f32 %v6861_v36, %v4355_v54  ;;  %v4386_v3 = vmul.f32 %v6861_v36, %v4354_v9  ;;  %v4439_v20 = vadd.f32 %v8593_v18, %v4412_v0  ;;  %v4438_v14 = vadd.f32 %v8590_v62, %v4411_v10 }
 0xcc4   :  { %v4414_v42 = vmul.f32 %v8583_v11, %v4387_v43  ;;  %v4413_v50 = vmul.f32 %v8580_v49, %v4386_v3 }
 0xcc5   :  { %v6863_v63 = vpop.eup %6862 }
 0xcc6   :  { %v4441_v26 = vadd.f32 %v8593_v18, %v4414_v42  ;;  %v4440_v31 = vadd.f32 %v8590_v62, %v4413_v50  ;;  %v4389_v56 = vmul.f32 %v6863_v63, %v4357_v45  ;;  %v4388_v16 = vmul.f32 %v6863_v63, %v4356_v29 }
 0xcc8   :  { %v4451_v48 = vpack.c.bf16 %v4441_v26, %v4439_v20  ;;  %v4450_v23 = vpack.c.bf16 %v4440_v31, %v4438_v14  ;;  %v4416_v13 = vmul.f32 %v8583_v11, %v4389_v56  ;;  %v4415_v34 = vmul.f32 %v8580_v49, %v4388_v16 }
 0xcc9   :  { %v6865_v32 = vpop.eup %6864 }
 0xcca   :  { %4631 = vmatprep.mubr.bf16.mxu1 %v4451_v48  ;;  %v4391_v12 = vmul.f32 %v6865_v32, %v4359_v41  ;;  %v4390_v59 = vmul.f32 %v6865_v32, %v4358_v46  ;;  %v4443_v30 = vadd.f32 %v8593_v18, %v4416_v13  ;;  %v4442_v7 = vadd.f32 %v8590_v62, %v4415_v34 }
 0xccb   :  { %4632 = vmatmul.mubr.bf16.gmra.mxu1 %v4450_v23 }
 0xccc   :  { %v4418_v39 = vmul.f32 %v8583_v11, %v4391_v12  ;;  %v4417_v51 = vmul.f32 %v8580_v49, %v4390_v59  ;;  %v8708_v49 = vrot.slane %v4247_v5, %v7842_v35 }
 0xcce   :  { %v4445_v15 = vadd.f32 %v8593_v18, %v4418_v39  ;;  %v4444_v53 = vadd.f32 %v8590_v62, %v4417_v51  ;;  %v8711_v18 = vrot.slane %v4247_v5, %v7844_v2 }
 0xcd0   :  { %v4453_v47 = vpack.c.bf16 %v4445_v15, %v4443_v30  ;;  %v4452_v22 = vpack.c.bf16 %v4444_v53, %v4442_v7 }
 0xcd2   :  { %4639 = vmatprep.mubr.bf16.mxu1 %v4453_v47 }
 0xcd3   :  { %4640 = vmatmul.mubr.bf16.gmra.mxu1 %v4452_v22 }
 0xcd4   :  { %6444 = vmatprep.mubr.msk.f32.mxu1 %vm6969_vm2, %v9054_v25 }
 0xd47   :  { %v4791_v27 = vpop.f32.mrf.mxu0 }
 0xd48   :  { %v4830_v11 = vadd.f32 %v4791_v27, %v8465_v4 }
 0xd49   :  { %v4793_v33 = vpop.f32.mrf.mxu0 }
 0xd4a   :  { %v4831_v62 = vadd.f32 %v4793_v33, %v8468_v57  ;;  %v4857_v9 = vadd.f32 %v8708_v49, %v4830_v11 }
 0xd4b   :  { %v4795_v37 = vpop.f32.mrf.mxu0 }
 0xd4c   :  { %v4858_v54 = vadd.f32 %v8711_v18, %v4831_v62  ;;  %v4832_v36 = vadd.f32 %v4795_v37, %v8477_v55 }
 0xd4d   :  { %v4797_v0 = vpop.f32.mrf.mxu0 }
 0xd4e   :  { %v4833_v10 = vadd.f32 %v4797_v0, %v8480_v60  ;;  %v4873_v4 = vmax.f32 %v4857_v9, %v4858_v54  ;;  %v4859_v35 = vadd.f32 %v8708_v49, %v4832_v36 }
 0xd4f   :  { %v4801_v43 = vpop.f32.mrf.mxu0 }
 0xd50   :  { %v4860_v2 = vadd.f32 %v8711_v18, %v4833_v10  ;;  %v4834_v3 = vadd.f32 %v4801_v43, %v8493_v17  ;;  %4874 = vmax.xlane.f32.xlu1 %v4873_v4 }
 0xd51   :  { %v4803_v57 = vpop.f32.mrf.mxu0 }
 0xd52   :  { %v4835_v29 = vadd.f32 %v4803_v57, %v8496_v24  ;;  %v4876_v45 = vmax.f32 %v4859_v35, %v4860_v2  ;;  %v4861_v42 = vadd.f32 %v8708_v49, %v4834_v3 }
 0xd53   :  { %v4805_v15 = vpop.f32.mrf.mxu0 }
 0xd54   :  { %v4862_v55 = vadd.f32 %v8711_v18, %v4835_v29  ;;  %4877 = vmax.xlane.f32.xlu0 %v4876_v45 }
 0xd55   :  { %v4807_v7 = vpop.f32.mrf.mxu0 }
 0xd56   :  { %v4879_v50 = vmax.f32 %v4861_v42, %v4862_v55  ;;  %v4837_v5 = vadd.f32 %v4807_v7, %v8508_v38 }
 0xd58   :  { %4880 = vmax.xlane.f32.xlu1 %v4879_v50  ;;  %v4864_v9 = vadd.f32 %v8711_v18, %v4837_v5  ;;  %v4898_v50 = vld [vmem:[#allocation7 + $0xe0] sm:$0xff] }
 0xd8b   :  { %v6295_v60 = vpop.f32.mrf.mxu1 }
 0xd8d   :  { %v6296_v63 = vpop.f32.mrf.mxu1 }
 0xd8e   :  { %v6297_v20 = vadd.f32 %v6296_v63, %v6295_v60  ;;  %v4897_v63 = vld [vmem:[#allocation7 + $0xd0] sm:$0xff] }
 0xd8f   :  { %v6298_v14 = vpop.f32.mrf.mxu1 }
 0xd90   :  { %v4634_v31 = vadd.f32 %v6297_v20, %v8672_v58  ;;  %v4899_v20 = vld [vmem:[#allocation7 + $0xf0] sm:$0xff] }
 0xd91   :  { %v6299_v26 = vpop.f32.mrf.mxu1 }
 0xd92   :  { %v6300_v17 = vadd.f32 %v6299_v26, %v6298_v14  ;;  %v4652_v46 = vmax.f32 %v4634_v31, 0.0 }
 0xd93   :  { %v6301_v56 = vpop.f32.mrf.mxu1 }
 0xd94   :  { %v4637_v16 = vadd.f32 %v6300_v17, %v8672_v58 }
 0xd95   :  { %v6302_v24 = vpop.f32.mrf.mxu1 }
 0xd96   :  { %v4653_v41 = vmax.f32 %v4637_v16, 0.0  ;;  %v6303_v48 = vadd.f32 %v6302_v24, %v6301_v56  ;;  %v4900_v56 = vld [vmem:[#allocation7 + $0x100] sm:$0xff] }
 0xd97   :  { %v6304_v23 = vpop.f32.mrf.mxu1 }
 0xd98   :  { %v4658_v32 = vpack.c.bf16 %v4653_v41, %v4652_v46  ;;  %v4642_v13 = vadd.f32 %v6303_v48, %v8672_v58 }
 0xd99   :  { %v6305_v12 = vpop.f32.mrf.mxu1 }
 0xd9a   :  { %v6306_v59 = vadd.f32 %v6305_v12, %v6304_v23  ;;  %4810 = vmatmul.mubr.bf16.gmra.mxu0 %v4658_v32  ;;  %v4654_v39 = vmax.f32 %v4642_v13, 0.0 }
 0xd9b   :  { %4819 = vmatprep.mubr.bf16.mxu0 %v9051_v1 }
 0xd9c   :  { %v4645_v34 = vadd.f32 %v6306_v59, %v8672_v58  ;;  %v4836_v58 = vadd.f32 %v4805_v15, %v8505_v44 }
 0xd9e   :  { %v4655_v51 = vmax.f32 %v4645_v34, 0.0  ;;  %v4863_v38 = vadd.f32 %v8708_v49, %v4836_v58 }
 0xda0   :  { %v4659_v30 = vpack.c.bf16 %v4655_v51, %v4654_v39 }
 0xda2   :  { %4820 = vmatmul.mubr.bf16.gmra.mxu0 %v4659_v30 }
 0xda3   :  { %6463 = vmatprep.mubr.msk.f32.mxu0 %vm6969_vm2, %v9054_v25 }
 0xdd9   :  { %v4875_v55 = vpop.xlane.xlu1 %4874 }
 0xdda   :  { %v4901_v26 = vmul.f32 %v4897_v63, %v4875_v55 }
 0xddd   :  { %v4878_v60 = vpop.xlane.xlu0 %4877 }
 0xde1   :  { %v4881_v14 = vpop.xlane.xlu1 %4880 }
 0xde2   :  { %v4903_v31 = vmul.f32 %v4899_v20, %v4881_v14 }
 0xe5a   :  { %v4811_v53 = vpop.f32.mrf.mxu0 }
 0xe5b   :  { %v4838_v47 = vadd.f32 %v4811_v53, %v8619_v52 }
 0xe5c   :  { %v4813_v22 = vpop.f32.mrf.mxu0 }
 0xe5d   :  { %v4839_v27 = vadd.f32 %v4813_v22, %v8622_v40  ;;  %v4865_v11 = vadd.f32 %v8708_v49, %v4838_v47 }
 0xe5e   :  { %v4815_v1 = vpop.f32.mrf.mxu0 }
 0xe5f   :  { %v4866_v33 = vadd.f32 %v8711_v18, %v4839_v27  ;;  %v4840_v62 = vadd.f32 %v4815_v1, %v8631_v21  ;;  %v4882_v21 = vmax.f32 %v4863_v38, %v4864_v9 }
 0xe60   :  { %v4817_v37 = vpop.f32.mrf.mxu0 }
 0xe61   :  { %v4841_v54 = vadd.f32 %v4817_v37, %v8634_v6  ;;  %v4885_v52 = vmax.f32 %v4865_v11, %v4866_v33  ;;  %v4867_v40 = vadd.f32 %v8708_v49, %v4840_v62 }
 0xe62   :  { %v4821_v36 = vpop.f32.mrf.mxu0 }
 0xe63   :  { %v4868_v0 = vadd.f32 %v8711_v18, %v4841_v54  ;;  %v4842_v44 = vadd.f32 %v4821_v36, %v8647_v8  ;;  %4886 = vmax.xlane.f32.xlu1 %v4885_v52 }
 0xe64   :  { %v4823_v10 = vpop.f32.mrf.mxu0 }
 0xe65   :  { %v4843_v4 = vadd.f32 %v4823_v10, %v8650_v28  ;;  %v4888_v43 = vmax.f32 %v4867_v40, %v4868_v0  ;;  %v4869_v2 = vadd.f32 %v8708_v49, %v4842_v44 }
 0xe66   :  { %v4825_v35 = vpop.f32.mrf.mxu0 }
 0xe67   :  { %v4870_v6 = vadd.f32 %v8711_v18, %v4843_v4  ;;  %v4844_v3 = vadd.f32 %v4825_v35, %v8659_v19  ;;  %4883 = vmax.xlane.f32.xlu1 %v4882_v21  ;;  %4889 = vmax.xlane.f32.xlu0 %v4888_v43  ;;  %v4902_v19 = vmul.f32 %v4898_v50, %v4878_v60  ;;  %v4938_v4 = vld [vmem:[#allocation7 + $0x1d0] ss:$0 sm:$0xff]  ;;  %v8767_v21 = vld [vmem:[#allocation7 + $0x140] sm:$0xff] }
 0xe68   :  { %v4827_v57 = vpop.f32.mrf.mxu0  ;;  %v8769_v43 = vld [vmem:[#allocation7 + $0x130] sm:$0xff]  ;;  %6437 = vmatpush3.msra.mxu1 %v8767_v21  ;;  %v8773_v35 = vld [vmem:[#allocation7 + $0x120] sm:$0xff] }
 0xe69   :  { %v4845_v29 = vadd.f32 %v4827_v57, %v8662_v61  ;;  %v4891_v45 = vmax.f32 %v4869_v2, %v4870_v6  ;;  %v4871_v8 = vadd.f32 %v8708_v49, %v4844_v3  ;;  %v4907_v61 = vsel %vm4905_vm10, %v4902_v19, 0.0  ;;  %6438 = vmatprep.subr.mxu1 %v9054_v25  ;;  %v8779_v2 = vld [vmem:[#allocation7 + $0x110] sm:$0xff]  ;;  %v8782_v6 = vld [vmem:[#allocation7 + $0x1c0] sm:$0xff] }
 0xe6a   :  { %v4906_v49 = vsel %vm4905_vm10, %v4901_v26, 0.0  ;;  %6439 = vmatpush3.msra.mxu1 %v8769_v43  ;;  %v8784_v3 = vld [vmem:[#allocation7 + $0x1b0] sm:$0xff]  ;;  %6448 = vmatpush3.msra.mxu0 %v8782_v6  ;;  %v8789_v57 = vld [vmem:[#allocation7 + $0x1a0] sm:$0xff] }
 0xe6b   :  { %v4872_v42 = vadd.f32 %v8711_v18, %v4845_v29  ;;  %4892 = vmax.xlane.f32.xlu0 %v4891_v45  ;;  %v4909_v18 = vsel %vm4905_vm10, %v4903_v31, 0.0  ;;  %v4908_v16 = vadd.f32 %v4907_v61, %v4906_v49  ;;  %6440 = vmatprep.subr.mxu1 %v9054_v25  ;;  %v8793_v29 = vld [vmem:[#allocation7 + $0x190] sm:$0xff]  ;;  %v8797_v45 = vld [vmem:[#allocation7 + $0x180] sm:$0xff] }
 0xe6c   :  { %6441 = vmatpush3.msra.mxu1 %v8773_v35  ;;  %6449 = vmatprep.subr.mxu0 %v9054_v25  ;;  %v8807_v61 = vld [vmem:[#allocation7 + $0x170] sm:$0xff] }
 0xe6d   :  { %v4894_v28 = vmax.f32 %v4871_v8, %v4872_v42  ;;  %v4910_v23 = vadd.f32 %v4909_v18, %v4908_v16  ;;  %6442 = vmatprep.subr.mxu1 %v9054_v25  ;;  %6450 = vmatpush3.msra.mxu0 %v8784_v3  ;;  %v8814_v49 = vld [vmem:[#allocation7 + $0x150] sm:$0xff] }
 0xe6e   :  { %6443 = vmatpush3.msra.mxu1 %v8779_v2  ;;  %6451 = vmatprep.subr.mxu0 %v9054_v25  ;;  %v4939_v18 = vld [vmem:[#allocation7 + $0x1d1] ss:$0 sm:$0xff] }
 0xe6f   :  { %4895 = vmax.xlane.f32.xlu0 %v4894_v28  ;;  %6466 = vmatprep.subr.mxu1 %v9054_v25 }
 0xe70   :  { %6452 = vmatpush3.msra.mxu0 %v8789_v57 }
 0xe71   :  { %6453 = vmatprep.subr.mxu0 %v9054_v25 }
 0xe72   :  { %6454 = vmatpush3.msra.mxu0 %v8793_v29 }
 0xe73   :  { %6455 = vmatprep.subr.mxu0 %v9054_v25 }
 0xe74   :  { %6456 = vmatpush3.msra.mxu0 %v8797_v45 }
 0xe75   :  { %6457 = vmatprep.subr.mxu0 %v9054_v25 }
 0xe76   :  { %6458 = vmatpush3.msra.mxu0 %v8807_v61 }
 0xe77   :  { %6459 = vmatprep.subr.mxu0 %v9054_v25 }
 0xeec   :  { %v4887_v17 = vpop.xlane.xlu1 %4886 }
 0xeed   :  { %v4919_v32 = vmul.f32 %v4897_v63, %v4887_v17 }
 0xeef   :  { %v4923_v30 = vsel %vm4905_vm10, %v4919_v32, 0.0 }
 0xef0   :  { %v4890_v24 = vpop.xlane.xlu0 %4889  ;;  %v4884_v46 = vpop.xlane.xlu1 %4883 }
 0xef1   :  { %v4920_v41 = vmul.f32 %v4898_v50, %v4890_v24  ;;  %v4904_v48 = vmul.f32 %v4900_v56, %v4884_v46 }
 0xef3   :  { %v4911_v12 = vsel %vm4905_vm10, %v4904_v48, 0.0  ;;  %v4924_v34 = vsel %vm4905_vm10, %v4920_v41, 0.0 }
 0xef4   :  { %v4912_v13 = vadd.f32 %v4911_v12, %v4910_v23  ;;  %v4893_v59 = vpop.xlane.xlu0 %4892  ;;  %v4925_v7 = vadd.f32 %v4924_v34, %v4923_v30 }
 0xef5   :  { %v4921_v39 = vmul.f32 %v4899_v20, %v4893_v59 }
 0xef6   :  { %v4913_v51 = vrot.slane %v4912_v13, 4 }
 0xef7   :  { %v4926_v15 = vsel %vm4905_vm10, %v4921_v39, 0.0 }
 0xef8   :  { %v4914_v53 = vadd.f32 %v4913_v51, %v4912_v13  ;;  %v4896_v47 = vpop.xlane.xlu0 %4895  ;;  %v4927_v5 = vadd.f32 %v4926_v15, %v4925_v7  ;;  %v5128_v51 = vld [vmem:[#allocation7 + $0x1d2] ss:$0 sm:$0xff] }
 0xef9   :  { %v4922_v22 = vmul.f32 %v4900_v56, %v4896_v47  ;;  %v8811_v56 = vld [vmem:[#allocation7 + $0x160] sm:$0xff] }
 0xefa   :  { %v4915_v1 = vrot.slane %v4914_v53, 2  ;;  %6460 = vmatpush3.msra.mxu0 %v8811_v56 }
 0xefb   :  { %v4928_v27 = vsel %vm4905_vm10, %v4922_v22, 0.0  ;;  %6461 = vmatprep.subr.mxu0 %v9054_v25 }
 0xefc   :  { %v4929_v58 = vadd.f32 %v4928_v27, %v4927_v5  ;;  %v4916_v33 = vadd.f32 %v4915_v1, %v4914_v53  ;;  %6462 = vmatpush3.msra.mxu0 %v8814_v49 }
 0xefd   :  { %6477 = vmatprep.subr.mxu0 %v9054_v25 }
 0xefe   :  { %v4930_v11 = vrot.slane %v4929_v58, 4  ;;  %v4917_v9 = vrot.slane %v4916_v33, 1 }
 0xf00   :  { %v4931_v62 = vadd.f32 %v4930_v11, %v4929_v58  ;;  %v4918_v36 = vadd.f32 %v4917_v9, %v4916_v33 }
 0xf02   :  { %v4932_v37 = vrot.slane %v4931_v62, 2 }
 0xf04   :  { %v4933_v54 = vadd.f32 %v4932_v37, %v4931_v62 }
 0xf06   :  { %v4934_v52 = vrot.slane %v4933_v54, 1 }
 0xf08   :  { %v4935_v38 = vadd.f32 %v4934_v52, %v4933_v54 }
 0xf0a   :  { %v8759_v40 = vsel %vm4936_vm11, %v4918_v36, %v4935_v38 }
 0xf0b   :  { %v4953_v0 = vsel %vm4952_vm12, %v8759_v40, 0.0  ;;  %v4958_v44 = vmul.f32 %v8759_v40, %v8759_v40 }
 0xf0c   :  { %4954 = vadd.xlane.f32.xlu1 %v4953_v0 }
 0xf0d   :  { %v4959_v10 = vsel %vm4952_vm12, %v4958_v44, 0.0 }
 0xf0e   :  { %4960 = vadd.xlane.f32.xlu0 %v4959_v10 }
 0xf1d   :  { %4971 = vrot.lane.b32.xlu1 %v4938_v4, %s6980_s2 }
 0xf24   :  { %5124 = vrot.lane.b32.xlu0 %v4938_v4, %s6981_s20 }
 0xf95   :  { %v4955_v8 = vpop.xlane.xlu1 %4954 }
 0xf96   :  { %v4957_v42 = vmul.f32 0.03125, %v4955_v8 }
 0xf97   :  { %v4961_v28 = vpop.xlane.xlu0 %4960 }
 0xf98   :  { %v4963_v55 = vmul.f32 %v4957_v42, %v4957_v42  ;;  %v4962_v50 = vmul.f32 0.03125, %v4961_v28  ;;  %v4965_v20 = vsub.f32 %v8759_v40, %v4957_v42 }
 0xf99   :  { %v4972_v26 = vpop.permute.xlu1 %4971 }
 0xf9a   :  { %v4964_v60 = vsub.f32 %v4962_v50, %v4963_v55 }
 0xf9b   :  { %v5125_v23 = vpop.permute.xlu0 %5124 }
 0xf9c   :  { %v4966_v63 = vadd.f32 1e-05, %v4964_v60 }
 0xf9e   :  { %6866 = vrsqrt.f32 %v4966_v63 }
 0xfab   :  { %v6867_v14 = vpop.eup %6866 }
 0xfac   :  { %v4968_v19 = vmul.f32 %v6867_v14, %v4965_v20 }
 0xfae   :  { %v4969_v31 = vmul.f32 %v4968_v19, %v4938_v4 }
 0xfb0   :  { %v4974_v17 = vadd.f32 %v4972_v26, %v4969_v31  ;;  %v8884_v26 = vld [vmem:[#allocation7 + $0x148] sm:$0xff]  ;;  %v5355_v31 = vld [vmem:[#allocation7 + $0x138] sm:$0xff] }
 0xfb2   :  { %6445 = vmatmul.mubr.msk.f32.vlgmr.msra.gmra.mxu1 %vm4905_vm10, %v4974_v17  ;;  %v5351_v17 = vld [vmem:[#allocation7 + $0x1d4] ss:$0 sm:$0xff] }
 0xfb3   :  { %6474 = vmatprep.mubr.msk.f32.mxu1 %vm6969_vm2, %v9054_v25 }
0x1072   :  { %v5044_v16 = vpop.f32.mrf.mxu1 }
0x1073   :  { %v5045_v24 = vadd.f32 %v5044_v16, %v4939_v18  ;;  %v8890_v18 = vld [vmem:[#allocation7 + $0x128] sm:$0xff]  ;;  %v8909_v16 = vld [vmem:[#allocation7 + $0x118] sm:$0xff] }
0x1074   :  { %v6446_v46 = vpop.f32.mrf.mxu1 }
0x1075   :  { %v5048_v41 = vmax.f32 %v5045_v24, 0.0 }
0x1077   :  { %6464 = vmatmul.mubr.msk.f32.vlgmr.msra.gmra.mxu0 %vm5049_vm13, %v5048_v41 }
0x1078   :  { %6493 = vmatprep.mubr.msk.f32.mxu0 %vm6969_vm2, %v9054_v25 }
0x1137   :  { %v5119_v48 = vpop.f32.mrf.mxu0 }
0x1138   :  { %v5123_v32 = vadd.f32 %v5119_v48, %v8759_v40 }
0x1139   :  { %v6465_v12 = vpop.f32.mrf.mxu0 }
0x113a   :  { %v8824_v13 = vadd.f32 %v5125_v23, %v5123_v32 }
0x113c   :  { %v5130_v59 = vsel %vm4952_vm12, %v8824_v13, 0.0  ;;  %v5134_v34 = vmul.f32 %v8824_v13, %v8824_v13 }
0x113d   :  { %5131 = vadd.xlane.f32.xlu1 %v5130_v59 }
0x113e   :  { %v5135_v39 = vsel %vm4952_vm12, %v5134_v34, 0.0 }
0x113f   :  { %5136 = vadd.xlane.f32.xlu0 %v5135_v39 }
0x114e   :  { %5161 = vrot.lane.b32.xlu1 %v8767_v21, %s6981_s20 }
0x1152   :  { %5157 = vrot.lane.b32.xlu1 %v8773_v35, %s6981_s20 }
0x1155   :  { %5159 = vrot.lane.b32.xlu0 %v8769_v43, %s6981_s20  ;;  %v5129_v43 = vld [vmem:[#allocation7 + $0x1d3] ss:$0 sm:$0xff] }
0x1156   :  { %5147 = vrot.lane.b32.xlu1 %v5128_v51, %s6980_s2 }
0x1159   :  { %5155 = vrot.lane.b32.xlu0 %v8779_v2, %s6981_s20 }
0x115a   :  { %5263 = vrot.lane.b32.xlu1 %v8782_v6, %s6980_s2 }
0x115d   :  { %5261 = vrot.lane.b32.xlu0 %v8784_v3, %s6980_s2 }
0x115e   :  { %5259 = vrot.lane.b32.xlu1 %v8789_v57, %s6980_s2 }
0x1161   :  { %5257 = vrot.lane.b32.xlu0 %v8793_v29, %s6980_s2 }
0x1162   :  { %5255 = vrot.lane.b32.xlu1 %v8797_v45, %s6980_s2 }
0x1165   :  { %5253 = vrot.lane.b32.xlu0 %v8807_v61, %s6980_s2 }
0x1166   :  { %5251 = vrot.lane.b32.xlu1 %v8811_v56, %s6980_s2 }
0x1169   :  { %5249 = vrot.lane.b32.xlu0 %v8814_v49, %s6980_s2 }
0x116a   :  { %5347 = vrot.lane.b32.xlu1 %v5128_v51, %s6981_s20 }
0x11c6   :  { %v5132_v30 = vpop.xlane.xlu1 %5131 }
0x11c7   :  { %v5133_v15 = vmul.f32 0.03125, %v5132_v30 }
0x11c8   :  { %v5137_v7 = vpop.xlane.xlu0 %5136 }
0x11c9   :  { %v5139_v53 = vmul.f32 %v5133_v15, %v5133_v15  ;;  %v5138_v47 = vmul.f32 0.03125, %v5137_v7  ;;  %v5141_v52 = vsub.f32 %v8824_v13, %v5133_v15 }
0x11ca   :  { %v5162_v22 = vpop.permute.xlu1 %5161 }
0x11cb   :  { %v5140_v5 = vsub.f32 %v5138_v47, %v5139_v53  ;;  %6467 = vmatpush3.msra.mxu1 %v5162_v22 }
0x11cc   :  { %v5160_v27 = vpop.permute.xlu0 %5159  ;;  %6468 = vmatprep.subr.mxu1 %v9054_v25 }
0x11cd   :  { %v5142_v1 = vadd.f32 1e-05, %v5140_v5  ;;  %6469 = vmatpush3.msra.mxu1 %v5160_v27 }
0x11ce   :  { %v5158_v58 = vpop.permute.xlu1 %5157  ;;  %6470 = vmatprep.subr.mxu1 %v9054_v25 }
0x11cf   :  { %6868 = vrsqrt.f32 %v5142_v1  ;;  %6471 = vmatpush3.msra.mxu1 %v5158_v58  ;;  %v5352_v58 = vld [vmem:[#allocation7 + $0x1d5] ss:$0 sm:$0xff] }
0x11d0   :  { %v5156_v11 = vpop.permute.xlu0 %5155  ;;  %6472 = vmatprep.subr.mxu1 %v9054_v25 }
0x11d1   :  { %6473 = vmatpush3.msra.mxu1 %v5156_v11 }
0x11d2   :  { %v5148_v33 = vpop.permute.xlu1 %5147  ;;  %6496 = vmatprep.subr.mxu1 %v9054_v25 }
0x11d4   :  { %v5262_v62 = vpop.permute.xlu0 %5261 }
0x11d6   :  { %v5264_v37 = vpop.permute.xlu1 %5263 }
0x11d7   :  { %6478 = vmatpush3.msra.mxu0 %v5264_v37 }
0x11d8   :  { %6479 = vmatprep.subr.mxu0 %v9054_v25  ;;  %v5258_v9 = vpop.permute.xlu0 %5257 }
0x11d9   :  { %6480 = vmatpush3.msra.mxu0 %v5262_v62 }
0x11da   :  { %6481 = vmatprep.subr.mxu0 %v9054_v25  ;;  %v5260_v54 = vpop.permute.xlu1 %5259 }
0x11db   :  { %6482 = vmatpush3.msra.mxu0 %v5260_v54 }
0x11dc   :  { %v6869_v36 = vpop.eup %6868  ;;  %6483 = vmatprep.subr.mxu0 %v9054_v25  ;;  %v5254_v0 = vpop.permute.xlu0 %5253 }
0x11dd   :  { %v5144_v38 = vmul.f32 %v6869_v36, %v5141_v52  ;;  %6484 = vmatpush3.msra.mxu0 %v5258_v9 }
0x11de   :  { %6485 = vmatprep.subr.mxu0 %v9054_v25  ;;  %v5256_v40 = vpop.permute.xlu1 %5255 }
0x11df   :  { %v5145_v44 = vmul.f32 %v5144_v38, %v5128_v51  ;;  %6486 = vmatpush3.msra.mxu0 %v5256_v40 }
0x11e0   :  { %6487 = vmatprep.subr.mxu0 %v9054_v25  ;;  %v5250_v21 = vpop.permute.xlu0 %5249 }
0x11e1   :  { %v5150_v10 = vadd.f32 %v5148_v33, %v5145_v44  ;;  %6488 = vmatpush3.msra.mxu0 %v5254_v0 }
0x11e2   :  { %6489 = vmatprep.subr.mxu0 %v9054_v25  ;;  %v5252_v4 = vpop.permute.xlu1 %5251 }
0x11e3   :  { %6475 = vmatmul.mubr.msk.f32.vlgmr.msra.gmra.mxu1 %vm4905_vm10, %v5150_v10  ;;  %6490 = vmatpush3.msra.mxu0 %v5252_v4  ;;  %v5554_v10 = vld [vmem:[#allocation7 + $0x1d6] ss:$0 sm:$0xff] }
0x11e4   :  { %6504 = vmatprep.mubr.msk.f32.mxu1 %vm6969_vm2, %v9054_v25  ;;  %6491 = vmatprep.subr.mxu0 %v9054_v25 }
0x11e5   :  { %6492 = vmatpush3.msra.mxu0 %v5250_v21  ;;  %6497 = vmatpush3.msra.mxu1 %v8884_v26 }
0x11e6   :  { %6526 = vmatprep.subr.mxu0 %v9054_v25  ;;  %v5348_v55 = vpop.permute.xlu1 %5347  ;;  %6498 = vmatprep.subr.mxu1 %v9054_v25 }
0x11e7   :  { %6499 = vmatpush3.msra.mxu1 %v5355_v31 }
0x11e8   :  { %6500 = vmatprep.subr.mxu1 %v9054_v25 }
0x11e9   :  { %6501 = vmatpush3.msra.mxu1 %v8890_v18 }
0x11ea   :  { %6502 = vmatprep.subr.mxu1 %v9054_v25 }
0x11eb   :  { %6503 = vmatpush3.msra.mxu1 %v8909_v16 }
0x11ec   :  { %6507 = vmatprep.subr.mxu1 %v9054_v25 }
0x12a3   :  { %v5236_v35 = vpop.f32.mrf.mxu1 }
0x12a4   :  { %v5237_v2 = vadd.f32 %v5236_v35, %v5129_v43 }
0x12a5   :  { %v6476_v8 = vpop.f32.mrf.mxu1 }
0x12a6   :  { %v5240_v42 = vmax.f32 %v5237_v2, 0.0 }
0x12a8   :  { %6494 = vmatmul.mubr.msk.f32.vlgmr.msra.gmra.mxu0 %vm5049_vm13, %v5240_v42 }
0x12a9   :  { %6534 = vmatprep.mubr.msk.f32.mxu0 %vm6969_vm2, %v9054_v25 }
0x1368   :  { %v5342_v28 = vpop.f32.mrf.mxu0 }
0x1369   :  { %v5346_v50 = vadd.f32 %v5342_v28, %v8824_v13 }
0x136a   :  { %v6495_v60 = vpop.f32.mrf.mxu0 }
0x136b   :  { %v8877_v63 = vadd.f32 %v5348_v55, %v5346_v50 }
0x136d   :  { %v5357_v20 = vsel %vm4952_vm12, %v8877_v63, 0.0  ;;  %v5361_v14 = vmul.f32 %v8877_v63, %v8877_v63 }
0x136e   :  { %5358 = vadd.xlane.f32.xlu0 %v5357_v20 }
0x136f   :  { %v5362_v19 = vsel %vm4952_vm12, %v5361_v14, 0.0 }
0x1370   :  { %5363 = vadd.xlane.f32.xlu1 %v5362_v19 }
0x1381   :  { %5466 = vrot.lane.b32.xlu1 %v8782_v6, %s6981_s20 }
0x1384   :  { %5374 = vrot.lane.b32.xlu0 %v5351_v17, %s6980_s2 }
0x1385   :  { %5462 = vrot.lane.b32.xlu1 %v8789_v57, %s6981_s20 }
0x1388   :  { %5464 = vrot.lane.b32.xlu0 %v8784_v3, %s6981_s20 }
0x1389   :  { %5458 = vrot.lane.b32.xlu1 %v8797_v45, %s6981_s20 }
0x138c   :  { %5460 = vrot.lane.b32.xlu0 %v8793_v29, %s6981_s20 }
0x138d   :  { %5454 = vrot.lane.b32.xlu1 %v8811_v56, %s6981_s20 }
0x1390   :  { %5456 = vrot.lane.b32.xlu0 %v8807_v61, %s6981_s20 }
0x1391   :  { %5550 = vrot.lane.b32.xlu1 %v5351_v17, %s6981_s20 }
0x1394   :  { %5452 = vrot.lane.b32.xlu0 %v8814_v49, %s6981_s20 }
0x1395   :  { %5585 = vrot.lane.b32.xlu1 %v5355_v31, %s6981_s20 }
0x13f7   :  { %v5359_v24 = vpop.xlane.xlu0 %5358 }
0x13f8   :  { %v5360_v46 = vmul.f32 0.03125, %v5359_v24 }
0x13f9   :  { %v5364_v41 = vpop.xlane.xlu1 %5363 }
0x13fa   :  { %v5366_v48 = vmul.f32 %v5360_v46, %v5360_v46  ;;  %v5365_v23 = vmul.f32 0.03125, %v5364_v41  ;;  %v5368_v13 = vsub.f32 %v8877_v63, %v5360_v46 }
0x13fb   :  { %v5375_v59 = vpop.permute.xlu0 %5374 }
0x13fc   :  { %v5367_v32 = vsub.f32 %v5365_v23, %v5366_v48 }
0x13fd   :  { %v5467_v51 = vpop.permute.xlu1 %5466 }
0x13fe   :  { %v5369_v12 = vadd.f32 1e-05, %v5367_v32 }
0x13ff   :  { %v5465_v15 = vpop.permute.xlu0 %5464 }
0x1400   :  { %6870 = vrsqrt.f32 %v5369_v12 }
0x1401   :  { %v5463_v53 = vpop.permute.xlu1 %5462 }
0x1403   :  { %v5461_v47 = vpop.permute.xlu0 %5460 }
0x1405   :  { %v5459_v22 = vpop.permute.xlu1 %5458 }
0x1407   :  { %v5457_v5 = vpop.permute.xlu0 %5456 }
0x1409   :  { %v5455_v27 = vpop.permute.xlu1 %5454 }
0x140b   :  { %v5453_v1 = vpop.permute.xlu0 %5452 }
0x140d   :  { %v6871_v34 = vpop.eup %6870  ;;  %v5551_v54 = vpop.permute.xlu1 %5550 }
0x140e   :  { %v5371_v39 = vmul.f32 %v6871_v34, %v5368_v13 }
0x1410   :  { %v5372_v30 = vmul.f32 %v5371_v39, %v5351_v17  ;;  %v5555_v17 = vld [vmem:[#allocation7 + $0x1d7] ss:$0 sm:$0xff] }
0x1411   :  { %v5586_v4 = vpop.permute.xlu1 %5585 }
0x1412   :  { %v5377_v7 = vadd.f32 %v5375_v59, %v5372_v30 }
0x1414   :  { %6505 = vmatmul.mubr.msk.f32.vlgmr.msra.gmra.mxu1 %vm4905_vm10, %v5377_v7 }
0x1415   :  { %6508 = vmatpush3.msra.mxu1 %v5467_v51  ;;  %6523 = vmatprep.mubr.msk.f32.mxu1 %vm6969_vm2, %v9054_v25 }
0x1416   :  { %6509 = vmatprep.subr.mxu1 %v9054_v25 }
0x1417   :  { %6510 = vmatpush3.msra.mxu1 %v5465_v15 }
0x1418   :  { %6511 = vmatprep.subr.mxu1 %v9054_v25 }
0x1419   :  { %6512 = vmatpush3.msra.mxu1 %v5463_v53 }
0x141a   :  { %6513 = vmatprep.subr.mxu1 %v9054_v25 }
0x141b   :  { %6514 = vmatpush3.msra.mxu1 %v5461_v47 }
0x141c   :  { %6515 = vmatprep.subr.mxu1 %v9054_v25 }
0x141d   :  { %6516 = vmatpush3.msra.mxu1 %v5459_v22 }
0x141e   :  { %6517 = vmatprep.subr.mxu1 %v9054_v25 }
0x141f   :  { %6518 = vmatpush3.msra.mxu1 %v5457_v5 }
0x1420   :  { %6519 = vmatprep.subr.mxu1 %v9054_v25 }
0x1421   :  { %6520 = vmatpush3.msra.mxu1 %v5455_v27 }
0x1422   :  { %6521 = vmatprep.subr.mxu1 %v9054_v25 }
0x1423   :  { %6522 = vmatpush3.msra.mxu1 %v5453_v1 }
0x14d4   :  { %v5447_v11 = vpop.f32.mrf.mxu1 }
0x14d5   :  { %v5448_v33 = vadd.f32 %v5447_v11, %v5352_v58 }
0x14d6   :  { %v6506_v62 = vpop.f32.mrf.mxu1 }
0x14d7   :  { %v5451_v37 = vmax.f32 %v5448_v33, 0.0 }
0x14d9   :  { %6524 = vmatmul.mubr.msk.f32.vlgmr.msra.gmra.mxu1 %vm5049_vm13, %v5451_v37 }
0x1599   :  { %v5545_v9 = vpop.f32.mrf.mxu1 }
0x159a   :  { %v5549_v52 = vadd.f32 %v5545_v9, %v8877_v63 }
0x159b   :  { %v6525_v36 = vpop.f32.mrf.mxu1 }
0x159c   :  { %v8929_v38 = vadd.f32 %v5551_v54, %v5549_v52 }
0x159e   :  { %v5556_v40 = vsel %vm4952_vm12, %v8929_v38, 0.0  ;;  %v5560_v0 = vmul.f32 %v8929_v38, %v8929_v38 }
0x159f   :  { %5557 = vadd.xlane.f32.xlu0 %v5556_v40 }
0x15a0   :  { %v5561_v44 = vsel %vm4952_vm12, %v5560_v0, 0.0 }
0x15a1   :  { %5562 = vadd.xlane.f32.xlu1 %v5561_v44 }
0x15b2   :  { %5573 = vrot.lane.b32.xlu1 %v5554_v10, %s6980_s2 }
0x15b5   :  { %5587 = vrot.lane.b32.xlu0 %v8884_v26, %s6981_s20 }
0x15b6   :  { %5681 = vrot.lane.b32.xlu1 %v8782_v6, %s6982_s21 }
0x15b9   :  { %5583 = vrot.lane.b32.xlu0 %v8890_v18, %s6981_s20 }
0x15ba   :  { %5677 = vrot.lane.b32.xlu1 %v8789_v57, %s6982_s21 }
0x15bd   :  { %5581 = vrot.lane.b32.xlu0 %v8909_v16, %s6981_s20 }
0x15be   :  { %5673 = vrot.lane.b32.xlu1 %v8797_v45, %s6982_s21 }
0x15c1   :  { %5679 = vrot.lane.b32.xlu0 %v8784_v3, %s6982_s21 }
0x15c2   :  { %5669 = vrot.lane.b32.xlu1 %v8811_v56, %s6982_s21 }
0x15c5   :  { %5675 = vrot.lane.b32.xlu0 %v8793_v29, %s6982_s21 }
0x15c6   :  { %5765 = vrot.lane.b32.xlu1 %v5554_v10, %s6981_s20 }
0x15c9   :  { %5671 = vrot.lane.b32.xlu0 %v8807_v61, %s6982_s21 }
0x15cd   :  { %5667 = vrot.lane.b32.xlu0 %v8814_v49, %s6982_s21 }
0x1628   :  { %v5558_v21 = vpop.xlane.xlu0 %5557 }
0x1629   :  { %v5559_v43 = vmul.f32 0.03125, %v5558_v21 }
0x162a   :  { %v5563_v6 = vpop.xlane.xlu1 %5562 }
0x162b   :  { %v5565_v35 = vmul.f32 %v5559_v43, %v5559_v43  ;;  %v5564_v3 = vmul.f32 0.03125, %v5563_v6  ;;  %v5567_v49 = vsub.f32 %v8929_v38, %v5559_v43 }
0x162c   :  { %v5588_v2 = vpop.permute.xlu0 %5587 }
0x162d   :  { %v5566_v57 = vsub.f32 %v5564_v3, %v5565_v35  ;;  %6527 = vmatpush3.msra.mxu0 %v5588_v2 }
0x162e   :  { %6528 = vmatprep.subr.mxu0 %v9054_v25  ;;  %v5574_v56 = vpop.permute.xlu1 %5573 }
0x162f   :  { %v5568_v29 = vadd.f32 1e-05, %v5566_v57  ;;  %6529 = vmatpush3.msra.mxu0 %v5586_v4 }
0x1630   :  { %v5584_v45 = vpop.permute.xlu0 %5583  ;;  %6530 = vmatprep.subr.mxu0 %v9054_v25 }
0x1631   :  { %6872 = vrsqrt.f32 %v5568_v29  ;;  %6531 = vmatpush3.msra.mxu0 %v5584_v45 }
0x1632   :  { %6532 = vmatprep.subr.mxu0 %v9054_v25  ;;  %v5682_v28 = vpop.permute.xlu1 %5681 }
0x1634   :  { %v5582_v61 = vpop.permute.xlu0 %5581 }
0x1635   :  { %6533 = vmatpush3.msra.mxu0 %v5582_v61 }
0x1636   :  { %6537 = vmatprep.subr.mxu0 %v9054_v25  ;;  %v5678_v63 = vpop.permute.xlu1 %5677 }
0x1638   :  { %v5680_v50 = vpop.permute.xlu0 %5679 }
0x163a   :  { %v5674_v14 = vpop.permute.xlu1 %5673 }
0x163c   :  { %v5676_v20 = vpop.permute.xlu0 %5675 }
0x163e   :  { %v6873_v8 = vpop.eup %6872  ;;  %v5670_v26 = vpop.permute.xlu1 %5669 }
0x163f   :  { %v5570_v42 = vmul.f32 %v6873_v8, %v5567_v49 }
0x1640   :  { %v5672_v19 = vpop.permute.xlu0 %5671 }
0x1641   :  { %v5571_v55 = vmul.f32 %v5570_v42, %v5554_v10 }
0x1642   :  { %v5766_v48 = vpop.permute.xlu1 %5765 }
0x1643   :  { %v5576_v60 = vadd.f32 %v5574_v56, %v5571_v55 }
0x1644   :  { %v5668_v31 = vpop.permute.xlu0 %5667 }
0x1645   :  { %6535 = vmatmul.mubr.msk.f32.vlgmr.msra.gmra.mxu0 %vm4905_vm10, %v5576_v60 }
0x1646   :  { %6538 = vmatpush3.msra.mxu0 %v5682_v28  ;;  %6553 = vmatprep.mubr.msk.f32.mxu0 %vm6969_vm2, %v9054_v25 }
0x1647   :  { %6539 = vmatprep.subr.mxu0 %v9054_v25 }
0x1648   :  { %6540 = vmatpush3.msra.mxu0 %v5680_v50 }
0x1649   :  { %6541 = vmatprep.subr.mxu0 %v9054_v25 }
0x164a   :  { %6542 = vmatpush3.msra.mxu0 %v5678_v63 }
0x164b   :  { %6543 = vmatprep.subr.mxu0 %v9054_v25 }
0x164c   :  { %6544 = vmatpush3.msra.mxu0 %v5676_v20 }
0x164d   :  { %6545 = vmatprep.subr.mxu0 %v9054_v25 }
0x164e   :  { %6546 = vmatpush3.msra.mxu0 %v5674_v14 }
0x164f   :  { %6547 = vmatprep.subr.mxu0 %v9054_v25 }
0x1650   :  { %6548 = vmatpush3.msra.mxu0 %v5672_v19 }
0x1651   :  { %6549 = vmatprep.subr.mxu0 %v9054_v25 }
0x1652   :  { %6550 = vmatpush3.msra.mxu0 %v5670_v26 }
0x1653   :  { %6551 = vmatprep.subr.mxu0 %v9054_v25 }
0x1654   :  { %6552 = vmatpush3.msra.mxu0 %v5668_v31 }
0x1705   :  { %v5662_v18 = vpop.f32.mrf.mxu0 }
0x1706   :  { %v5663_v16 = vadd.f32 %v5662_v18, %v5555_v17 }
0x1707   :  { %v6536_v24 = vpop.f32.mrf.mxu0 }
0x1708   :  { %v5666_v46 = vmax.f32 %v5663_v16, 0.0 }
0x170a   :  { %6554 = vmatmul.mubr.msk.f32.vlgmr.msra.gmra.mxu0 %vm5049_vm13, %v5666_v46 }
0x17ca   :  { %v5760_v41 = vpop.f32.mrf.mxu0 }
0x17cb   :  { %v5764_v23 = vadd.f32 %v5760_v41, %v8929_v38 }
0x17cc   :  { %v6555_v32 = vpop.f32.mrf.mxu0 }
0x17cd   :  { %v5768_v12 = vadd.f32 %v5766_v48, %v5764_v23 }
0x17cf   :  { %5769 = vst.msk [vmem:[#allocation8] sm:$0x3] %vm4952_vm12, %v5768_v12 }
0x17d0   :  { %6945 = shalt.err (!%p6942_p5)
}
0x17d1   :  { %5779 = dma.vmem_to_hbm [thread:$0]  %s5777_s23, 32, %s8978_s5, [#allocation4]  }
0x17d2   :  { %6958 = dma.done.wait [#allocation4], 32  }
0x17d3   :  { %6959 = vsyncadd [#allocation4], 4294967264 }
0x17d4   :  { %5783 = vsyncpa [#allocation3], 1 }
0x17d5   :  { %5784 = vsyncpa [#allocation6], 1 }
0x17d6   :  { %5785 = vsyncpa [#allocation4], 1 }

</bundles_post_ra>
